<compile_context>
chip_gen: v5e
topology: v5e:2x2
jax: 0.10.0
libtpu: 0.0.40
codegen_flags: <defaults>
</compile_context>

<pallas_src>
import jax
import jax.numpy as jnp
from jax.experimental import pallas as pl
from jax.experimental.pallas import tpu as pltpu

C_IN, C1, C2, C3 = 3, 64, 128, 1024     # conv channel sizes
F1, F2, F3 = 512, 256, 9                # fc sizes


def _conv_max_kernel(x_ref, w1_ref, b1_ref, w2_ref, b2_ref, w3_ref, o_ref, m_ref):
    """Grid = (batch, point-tiles); the point-tile axis is the max-pool reduction axis.

    Layout: channels on sublanes, points on lanes.  The x block is lane-dense
    (1, 3, tile_n); every matmul is a standard [Cout, K] x [K, tile_n] MXU dot.
    """
    t = pl.program_id(1)
    tile_n = x_ref.shape[2]

    @pl.when(t == 0)
    def _init():
        m_ref[...] = jnp.full(m_ref.shape, -jnp.inf, dtype=m_ref.dtype)

    # --- per-point MLP (bf16 operands, f32 accumulation) -------------------------------
    x = x_ref[0].astype(jnp.bfloat16)                                      # (3, tile_n)
    h1 = jnp.dot(w1_ref[...], x, preferred_element_type=jnp.float32) + b1_ref[...]
    h1 = jnp.maximum(h1, 0.0)                                              # relu(conv1)
    h2 = jnp.dot(w2_ref[...], h1.astype(jnp.bfloat16),
                 preferred_element_type=jnp.float32) + b2_ref[...]
    h2 = jnp.maximum(h2, 0.0)                                              # relu(conv2)
    h3 = jnp.dot(w3_ref[...], h2.astype(jnp.bfloat16),
                 preferred_element_type=jnp.float32)                       # (1024, tile_n)
    # conv3 bias + relu are hoisted past the max (both commute with it) -> wrapper.

    # --- running max over points: pure-VPU fold of 128-lane chunks into (1024, 128) ----
    m = h3[:, 0:128]
    for i in range(1, tile_n // 128):
        m = jnp.maximum(m, h3[:, i * 128:(i + 1) * 128])
    m_ref[...] = jnp.maximum(m_ref[...], m)

    # --- finalize: single cross-lane collapse per batch --------------------------------
    @pl.when(t == pl.num_programs(1) - 1)
    def _finalize():
        o_ref[0] = jnp.max(m_ref[...], axis=1, keepdims=True)              # (1024, 1)


def stn3d_forward(x_bcn, params, *, target_tile=2048):
    """x_bcn: (B, 3, N) float32 (PyTorch NCW layout). Returns (B, 3, 3) transform."""
    B, cin, N = x_bcn.shape
    assert cin == C_IN

    # Pick num_tiles from the target tile size, then size tiles (multiple of 128 lanes)
    # to cover N with minimal edge-replication padding.  Duplicated points are real
    # points, so they never change the max.
    num_tiles = pl.cdiv(N, target_tile)
    tile_n = pl.cdiv(pl.cdiv(N, num_tiles), 128) * 128
    n_pad = num_tiles * tile_n
    x = x_bcn
    if n_pad != N:
        x = jnp.pad(x, ((0, 0), (0, 0), (0, n_pad - N)), mode="edge")

    bf16, f32 = jnp.bfloat16, jnp.float32
    # conv weights are used in their native PyTorch (Cout, Cin) orientation.
    w1 = params["w1"].astype(bf16)
    b1 = params["b1"].reshape(C1, 1).astype(f32)
    w2 = params["w2"].astype(bf16)
    b2 = params["b2"].reshape(C2, 1).astype(f32)
    w3 = params["w3"].astype(bf16)

    const = lambda shape: pl.BlockSpec(shape, lambda b, t: (0, 0))

    pooled_raw = pl.pallas_call(
        _conv_max_kernel,
        out_shape=jax.ShapeDtypeStruct((B, C3, 1), f32),
        grid_spec=pltpu.PrefetchScalarGridSpec(
            num_scalar_prefetch=0,
            grid=(B, num_tiles),
            in_specs=[
                pl.BlockSpec((1, C_IN, tile_n), lambda b, t: (b, 0, t)),   # lane-dense x
                const((C1, C_IN)), const((C1, 1)),
                const((C2, C1)),   const((C2, 1)),
                const((C3, C2)),
            ],
            out_specs=pl.BlockSpec((1, C3, 1), lambda b, t: (b, 0, 0)),
            scratch_shapes=[pltpu.VMEM((C3, 128), f32)],
        ),
        compiler_params=pltpu.CompilerParams(
            dimension_semantics=("parallel", "arbitrary"),
            vmem_limit_bytes=48 * 1024 * 1024),
    )(x, w1, b1, w2, b2, w3)

    pooled = pooled_raw[:, :, 0]                                           # (B, 1024)

    # Hoisted conv3 bias + relu, then the tiny FC head as batched f32 XLA matmuls
    # (per perf review: keeps FC weights out of per-tile VMEM, lane-dense kernel output).
    g = jnp.maximum(pooled + params["b3"][None, :], 0.0)                   # relu(conv3)
    f = jnp.maximum(g @ params["w_fc1"].T + params["b_fc1"], 0.0)          # relu(fc1)
    f = jnp.maximum(f @ params["w_fc2"].T + params["b_fc2"], 0.0)          # relu(fc2)
    f = f @ params["w_fc3"].T + params["b_fc3"]                            # fc3
    iden = jnp.array([1, 0, 0, 0, 1, 0, 0, 0, 1], f32)
    return (f + iden).reshape(B, 3, 3)


def _reference(x_bcn, params):
    """Pure-JAX f32 reference of the STN3d forward pass."""
    p = params
    x = x_bcn.astype(jnp.float32)
    h = jnp.maximum(jnp.einsum("bcn,dc->bdn", x, p["w1"]) + p["b1"][None, :, None], 0.0)
    h = jnp.maximum(jnp.einsum("bcn,dc->bdn", h, p["w2"]) + p["b2"][None, :, None], 0.0)
    h = jnp.maximum(jnp.einsum("bcn,dc->bdn", h, p["w3"]) + p["b3"][None, :, None], 0.0)
    g = jnp.max(h, axis=2)                                                 # (B, 1024)
    f = jnp.maximum(g @ p["w_fc1"].T + p["b_fc1"], 0.0)
    f = jnp.maximum(f @ p["w_fc2"].T + p["b_fc2"], 0.0)
    f = f @ p["w_fc3"].T + p["b_fc3"]
    iden = jnp.array([1, 0, 0, 0, 1, 0, 0, 0, 1], jnp.float32)
    return (f + iden).reshape(-1, 3, 3)


def make_params(key):
    ks = jax.random.split(key, 12)
    r = lambda k, shape, s=0.1: (s * jax.random.normal(k, shape)).astype(jnp.float32)
    return {
        # conv weights in PyTorch Conv1d orientation (Cout, Cin) (kernel dim squeezed)
        "w1": r(ks[0], (C1, C_IN)), "b1": r(ks[1], (C1,)),
        "w2": r(ks[2], (C2, C1)),   "b2": r(ks[3], (C2,)),
        "w3": r(ks[4], (C3, C2)),   "b3": r(ks[5], (C3,)),
        # fc weights in PyTorch Linear orientation (out, in)
        "w_fc1": r(ks[6], (F1, C3)),  "b_fc1": r(ks[7], (F1,)),
        "w_fc2": r(ks[8], (F2, F1)),  "b_fc2": r(ks[9], (F2,)),
        "w_fc3": r(ks[10], (F3, F2)), "b_fc3": r(ks[11], (F3,)),
    }


if __name__ == "__main__":
    key = jax.random.PRNGKey(0)
    kx, kp = jax.random.split(key)

    # Small test shapes; N deliberately not a multiple of 128 to exercise edge padding.
    B, N = 2, 700
    x = jax.random.normal(kx, (B, C_IN, N), dtype=jnp.float32)   # PyTorch NCW input
    params = make_params(kp)

    out = stn3d_forward(x, params)
    out = jax.block_until_ready(out)
    assert out.shape == (B, 3, 3), out.shape

    ref = _reference(x, params)
    err = float(jnp.max(jnp.abs(out - ref)))
    # bf16 conv-path operands (f32 accumulation) -> loosened tolerance vs f32 reference.
    assert jnp.allclose(out, ref, atol=5e-2, rtol=5e-2), err

    print("KERNEL_OK")
</pallas_src>

<mosaic_0001>
module attributes {stable_mosaic.version = 11 : i64} {
  func.func @_conv_max_kernel(%arg0: i32, %arg1: i32, %arg2: memref<1x3x768xf32, #tpu.memory_space<vmem>>, %arg3: memref<64x3xbf16, #tpu.memory_space<vmem>>, %arg4: memref<64x1xf32, #tpu.memory_space<vmem>>, %arg5: memref<128x64xbf16, #tpu.memory_space<vmem>>, %arg6: memref<128x1xf32, #tpu.memory_space<vmem>>, %arg7: memref<1024x128xbf16, #tpu.memory_space<vmem>>, %arg8: memref<1x1024x1xf32, #tpu.memory_space<vmem>>, %arg9: memref<1024x128xf32, #tpu.memory_space<vmem>>) attributes {dimension_semantics = [#tpu.dimension_semantics<parallel>, #tpu.dimension_semantics<arbitrary>], iteration_bounds = array<i64: 2, 1>, scalar_prefetch = 0 : i64, scratch_operands = 1 : i64, tpu.core_type = #tpu.core_type<tc>, window_params = [{transform_indices = @transform_0, window_bounds = array<i64: 1, 3, 768>}, {pipeline_mode = #tpu.pipeline_mode<synchronous>, transform_indices = @transform_1, window_bounds = array<i64: 64, 3>}, {pipeline_mode = #tpu.pipeline_mode<synchronous>, transform_indices = @transform_2, window_bounds = array<i64: 64, 1>}, {pipeline_mode = #tpu.pipeline_mode<synchronous>, transform_indices = @transform_3, window_bounds = array<i64: 128, 64>}, {pipeline_mode = #tpu.pipeline_mode<synchronous>, transform_indices = @transform_4, window_bounds = array<i64: 128, 1>}, {pipeline_mode = #tpu.pipeline_mode<synchronous>, transform_indices = @transform_5, window_bounds = array<i64: 1024, 128>}, {transform_indices = @transform_6, window_bounds = array<i64: 1, 1024, 1>}]} {
    %c0_i32 = arith.constant 0 : i32
    %0 = arith.cmpi eq, %arg1, %c0_i32 : i32
    %1 = arith.extui %0 : i1 to i32
    %c0_i32_0 = arith.constant 0 : i32
    %2 = arith.cmpi ne, %1, %c0_i32_0 : i32
    scf.if %2 {
      %cst_23 = arith.constant 0xFF800000 : f32
      %41 = vector.broadcast %cst_23 : f32 to vector<1024x128xf32>
      %c0_24 = arith.constant 0 : index
      %c0_25 = arith.constant 0 : index
      %42 = vector.load %arg9[%c0_24, %c0_25] : memref<1024x128xf32, #tpu.memory_space<vmem>>, vector<1024x128xf32>
      tpu.vector_store %arg9[%c0_24, %c0_25], %41 {strides = array<i32>} : memref<1024x128xf32, #tpu.memory_space<vmem>>, vector<1024x128xf32>,
    } else {
    }
    %c0 = arith.constant 0 : index
    %c0_1 = arith.constant 0 : index
    %c0_2 = arith.constant 0 : index
    %3 = vector.load %arg2[%c0, %c0_1, %c0_2] : memref<1x3x768xf32, #tpu.memory_space<vmem>>, vector<1x3x768xf32>
    %4 = vector.shape_cast %3 : vector<1x3x768xf32> to vector<3x768xf32>
    %5 = arith.truncf %4 : vector<3x768xf32> to vector<3x768xbf16>
    %c0_3 = arith.constant 0 : index
    %c0_4 = arith.constant 0 : index
    %6 = vector.load %arg3[%c0_3, %c0_4] : memref<64x3xbf16, #tpu.memory_space<vmem>>, vector<64x3xbf16>
    %cst = arith.constant dense<0.000000e+00> : vector<64x768xf32>
    %7 = tpu.matmul %6, %5, %cst {dimension_numbers = #tpu.dot_dimension_numbers<[1], [0], [0], [1], [0, 0, 1, 1], [], []>} : vector<64x3xbf16>, vector<3x768xbf16>, vector<64x768xf32> -> vector<64x768xf32>
    %c0_5 = arith.constant 0 : index
    %c0_6 = arith.constant 0 : index
    %8 = vector.load %arg4[%c0_5, %c0_6] : memref<64x1xf32, #tpu.memory_space<vmem>>, vector<64x1xf32>
    %9 = vector.broadcast %8 : vector<64x1xf32> to vector<64x768xf32>
    %10 = arith.addf %7, %9 : vector<64x768xf32>
    %cst_7 = arith.constant 0.000000e+00 : f32
    %11 = vector.broadcast %cst_7 : f32 to vector<64x768xf32>
    %12 = arith.maximumf %10, %11 : vector<64x768xf32>
    %c0_8 = arith.constant 0 : index
    %c0_9 = arith.constant 0 : index
    %13 = vector.load %arg5[%c0_8, %c0_9] : memref<128x64xbf16, #tpu.memory_space<vmem>>, vector<128x64xbf16>
    %14 = arith.truncf %12 : vector<64x768xf32> to vector<64x768xbf16>
    %cst_10 = arith.constant dense<0.000000e+00> : vector<128x768xf32>
    %15 = tpu.matmul %13, %14, %cst_10 {dimension_numbers = #tpu.dot_dimension_numbers<[1], [0], [0], [1], [0, 0, 1, 1], [], []>} : vector<128x64xbf16>, vector<64x768xbf16>, vector<128x768xf32> -> vector<128x768xf32>
    %c0_11 = arith.constant 0 : index
    %c0_12 = arith.constant 0 : index
    %16 = vector.load %arg6[%c0_11, %c0_12] : memref<128x1xf32, #tpu.memory_space<vmem>>, vector<128x1xf32>
    %17 = vector.broadcast %16 : vector<128x1xf32> to vector<128x768xf32>
    %18 = arith.addf %15, %17 : vector<128x768xf32>
    %cst_13 = arith.constant 0.000000e+00 : f32
    %19 = vector.broadcast %cst_13 : f32 to vector<128x768xf32>
    %20 = arith.maximumf %18, %19 : vector<128x768xf32>
    %c0_14 = arith.constant 0 : index
    %c0_15 = arith.constant 0 : index
    %21 = vector.load %arg7[%c0_14, %c0_15] : memref<1024x128xbf16, #tpu.memory_space<vmem>>, vector<1024x128xbf16>
    %22 = arith.truncf %20 : vector<128x768xf32> to vector<128x768xbf16>
    %cst_16 = arith.constant dense<0.000000e+00> : vector<1024x768xf32>
    %23 = tpu.matmul %21, %22, %cst_16 {dimension_numbers = #tpu.dot_dimension_numbers<[1], [0], [0], [1], [0, 0, 1, 1], [], []>} : vector<1024x128xbf16>, vector<128x768xbf16>, vector<1024x768xf32> -> vector<1024x768xf32>
    %24 = vector.extract_strided_slice %23 {offsets = [0, 0], sizes = [1024, 128], strides = [1, 1]} : vector<1024x768xf32> to vector<1024x128xf32>
    %25 = vector.extract_strided_slice %23 {offsets = [0, 128], sizes = [1024, 128], strides = [1, 1]} : vector<1024x768xf32> to vector<1024x128xf32>
    %26 = arith.maximumf %24, %25 : vector<1024x128xf32>
    %27 = vector.extract_strided_slice %23 {offsets = [0, 256], sizes = [1024, 128], strides = [1, 1]} : vector<1024x768xf32> to vector<1024x128xf32>
    %28 = arith.maximumf %26, %27 : vector<1024x128xf32>
    %29 = vector.extract_strided_slice %23 {offsets = [0, 384], sizes = [1024, 128], strides = [1, 1]} : vector<1024x768xf32> to vector<1024x128xf32>
    %30 = arith.maximumf %28, %29 : vector<1024x128xf32>
    %31 = vector.extract_strided_slice %23 {offsets = [0, 512], sizes = [1024, 128], strides = [1, 1]} : vector<1024x768xf32> to vector<1024x128xf32>
    %32 = arith.maximumf %30, %31 : vector<1024x128xf32>
    %33 = vector.extract_strided_slice %23 {offsets = [0, 640], sizes = [1024, 128], strides = [1, 1]} : vector<1024x768xf32> to vector<1024x128xf32>
    %34 = arith.maximumf %32, %33 : vector<1024x128xf32>
    %c0_17 = arith.constant 0 : index
    %c0_18 = arith.constant 0 : index
    %35 = vector.load %arg9[%c0_17, %c0_18] : memref<1024x128xf32, #tpu.memory_space<vmem>>, vector<1024x128xf32>
    %36 = arith.maximumf %35, %34 : vector<1024x128xf32>
    %c0_19 = arith.constant 0 : index
    %c0_20 = arith.constant 0 : index
    %37 = vector.load %arg9[%c0_19, %c0_20] : memref<1024x128xf32, #tpu.memory_space<vmem>>, vector<1024x128xf32>
    tpu.vector_store %arg9[%c0_19, %c0_20], %36 {strides = array<i32>} : memref<1024x128xf32, #tpu.memory_space<vmem>>, vector<1024x128xf32>,
    %c0_i32_21 = arith.constant 0 : i32
    %38 = arith.cmpi eq, %arg1, %c0_i32_21 : i32
    %39 = arith.extui %38 : i1 to i32
    %c0_i32_22 = arith.constant 0 : i32
    %40 = arith.cmpi ne, %39, %c0_i32_22 : i32
    scf.if %40 {
      %c0_23 = arith.constant 0 : index
      %c0_24 = arith.constant 0 : index
      %41 = vector.load %arg9[%c0_23, %c0_24] : memref<1024x128xf32, #tpu.memory_space<vmem>>, vector<1024x128xf32>
      %cst_25 = arith.constant dense<0xFF800000> : vector<1024xf32>
      %42 = vector.multi_reduction <maximumf>, %41, %cst_25 [1] : vector<1024x128xf32> to vector<1024xf32>
      %43 = vector.shape_cast %42 : vector<1024xf32> to vector<1024x1xf32>
      %c0_26 = arith.constant 0 : index
      %c0_27 = arith.constant 0 : index
      %c0_28 = arith.constant 0 : index
      %44 = vector.load %arg8[%c0_26, %c0_27, %c0_28] : memref<1x1024x1xf32, #tpu.memory_space<vmem>>, vector<1x1024x1xf32>
      %45 = vector.shape_cast %44 : vector<1x1024x1xf32> to vector<1024x1xf32>
      %46 = vector.shape_cast %43 : vector<1024x1xf32> to vector<1x1024x1xf32>
      tpu.vector_store %arg8[%c0_26, %c0_27, %c0_28], %46 {strides = array<i32>} : memref<1x1024x1xf32, #tpu.memory_space<vmem>>, vector<1x1024x1xf32>,
    } else {
    }
    return
  }
  func.func @transform_0(%arg0: i32, %arg1: i32) -> (i32, i32, i32) {
    %c0_i32 = arith.constant 0 : i32
    %c0_i32_0 = arith.constant 0 : i32
    return %arg0, %c0_i32, %arg1 : i32, i32, i32
  }
  func.func @transform_1(%arg0: i32, %arg1: i32) -> (i32, i32) {
    %c0_i32 = arith.constant 0 : i32
    %c0_i32_0 = arith.constant 0 : i32
    %c0_i32_1 = arith.constant 0 : i32
    return %c0_i32, %c0_i32_0 : i32, i32
  }
  func.func @transform_2(%arg0: i32, %arg1: i32) -> (i32, i32) {
    %c0_i32 = arith.constant 0 : i32
    %c0_i32_0 = arith.constant 0 : i32
    %c0_i32_1 = arith.constant 0 : i32
    return %c0_i32, %c0_i32_0 : i32, i32
  }
  func.func @transform_3(%arg0: i32, %arg1: i32) -> (i32, i32) {
    %c0_i32 = arith.constant 0 : i32
    %c0_i32_0 = arith.constant 0 : i32
    %c0_i32_1 = arith.constant 0 : i32
    return %c0_i32, %c0_i32_0 : i32, i32
  }
  func.func @transform_4(%arg0: i32, %arg1: i32) -> (i32, i32) {
    %c0_i32 = arith.constant 0 : i32
    %c0_i32_0 = arith.constant 0 : i32
    %c0_i32_1 = arith.constant 0 : i32
    return %c0_i32, %c0_i32_0 : i32, i32
  }
  func.func @transform_5(%arg0: i32, %arg1: i32) -> (i32, i32) {
    %c0_i32 = arith.constant 0 : i32
    %c0_i32_0 = arith.constant 0 : i32
    %c0_i32_1 = arith.constant 0 : i32
    return %c0_i32, %c0_i32_0 : i32, i32
  }
  func.func @transform_6(%arg0: i32, %arg1: i32) -> (i32, i32, i32) {
    %c0_i32 = arith.constant 0 : i32
    %c0_i32_0 = arith.constant 0 : i32
    %c0_i32_1 = arith.constant 0 : i32
    return %arg0, %c0_i32, %c0_i32_0 : i32, i32, i32
  }
}

</mosaic_0001>

<bundles_post_ra>
// kernel: tpu_custom_call.1
= control target key start
LH: loop header
LB: loop body
LE: loop exit
PB: predicated region body
PF: predicated region fallthrough
CT: control target
= control target key end

     0   :  { %11 = vsyncpa [#allocation4], 0  ;;  %s6225_s21 = smov 0   ;;  %s6227_s22 = smov 0   ;;  %s9386_s0 = inlined_call_operand.vmem [shape: f32[2,3,768], index: 0, kind: input, shape index: {}]   ;;  %s9387_s1 = inlined_call_operand.vmem [shape: bf16[64,3], index: 1, kind: input, shape index: {}]   ;;  %s9388_s2 = inlined_call_operand.vmem [shape: f32[64,1], index: 2, kind: input, shape index: {}]   ;;  %s9389_s3 = inlined_call_operand.vmem [shape: bf16[128,64], index: 3, kind: input, shape index: {}]   ;;  %s9390_s4 = inlined_call_operand.vmem [shape: f32[128,1], index: 4, kind: input, shape index: {}]   ;;  %s9391_s5 = inlined_call_operand.hbm [shape: bf16[1024,128], index: 5, kind: input, shape index: {}]   ;;  %s9392_s6 = inlined_call_operand.vmem [shape: f32[2,1024,1], index: 6, kind: output, shape index: {}]  }
   0x1   :  { %s6229_s23 = smov 0  }
   0x2 LB: > { %s5539_s24 = sadd.s32 4294967295, %s6183_s23   ;;  %s29_s25 = sadd.s32 1, %s6179_s22  ;;  %s6183_s23 = sphi %s6229_s23, %s17_s23   ;;  %s6179_s22 = sphi %s6227_s22, %s10234_s22   ;;  %s6175_s21 = sphi %s6225_s21, %s10233_s21  }
   0x3   : > { %p31_p0 = scmp.ge.s32.totalorder %s29_s25, 2  ;;  %p5541_p1 = scmp.ge.s32.totalorder %s6183_s23, 1 }
   0x4   : > { %p193_p2 = scmp.lt.s32.totalorder %s6183_s23, 3  ;;  %p6029_p4 = scmp.eq.s32.totalorder %s5539_s24, 0 }
   0x5   : > { %s10236_s25 = smov (%p31_p0, %s29_s25), 0  ;;  %s216_s28 = sshll.u32 %s9391_s5, 4  ;;  %s217_s28 = int_to_ptr.hbm [resolvable:$true] %s216_s28 }
   0x6   : > { %p194_p3 = pnand %p5541_p1, %p193_p2  ;;  %s6185_s29 = smov [#allocation3]  }
   0x7   : > { %s218_s30 = sshll.u32 %s6185_s29, 4  ;;  %s6186_s7 = smov 64   ;;  %s219_s30 = int_to_ptr.vmem [resolvable:$true] %s218_s30 }
   0x8   : > { %p6025_p5 = pneg %p194_p3  ;;  %s6187_s8 = smov 4  }
   0x9   : > { %247 = sbr.rel (%p194_p3) target bundleno = 2337 (0x921), region = 44 }
   0xa   : > { %p6026_p6 = pnand %p6029_p4, %p6025_p5 }
   0xc   : > { %6028 = dma.hbm_to_vmem [thread:$0]  (!%p6026_p6), %s217_s28, 8192, %s219_s30, [#allocation4], %s6186_s7, %s6186_s7, %s6187_s8  }
   0xe   : > { %6170 = dma.done.wait (%p6029_p4), [#allocation4], 8192  }
   0xf   : > { %6172 = vsyncadd (%p6029_p4), [#allocation4], 4294959104  ;;  %p283_p7 = scmp.lt.s32.totalorder %s6175_s21, 1  ;;  %v6188_v0 = vmov 0   ;;  %v473_v1 = vld [vmem:[%s9388_s2 + $0x30] sm:$0xff]  ;;  %vm548_vm0 = vcmask 1040384  }
  0x10   : > { %6060 = vset.pattern.permute.xlu0 %v6188_v0  ;;  %6061 = vset.pattern.permute.xlu1 %v6188_v0  ;;  %v471_v4 = vld [vmem:[%s9388_s2 + $0x20] sm:$0xff]  ;;  %vm549_vm1 = vcmask 1041408   ;;  %v6189_v5 = vmov 65535   ;;  %v474_v7 = vld [vmem:[%s9388_s2 + $0x38] sm:$0xff]  ;;  %v472_v9 = vld [vmem:[%s9388_s2 + $0x28] sm:$0xff]  ;;  %vm535_vm2 = vcmask 23552  }
  0x11   : > { %s10238_s21 = smov (!%p283_p7, %s6175_s21), 1  ;;  %6062 = vset.pattern.permute.xlu2 %v6188_v0  ;;  %507 = vperm.xlu0 %6060, %v473_v1   ;;  %v550_v6 = vsel %vm548_vm0, 4294967295, %v6189_v5  ;;  %v6278_v22 = vld [vmem:[%s9387_s1] sm:$0xff]  ;;  %v468_v24 = vld [vmem:[%s9388_s2 + $0x8] sm:$0xff]  ;;  %v469_v25 = vld [vmem:[%s9388_s2 + $0x10] sm:$0xff]  ;;  %vm968_vm3 = vcmask 523264  }
  0x12   : > { %s6020_s9 = smul.u32 24, %s10238_s21  ;;  %497 = vperm.xlu1 %6061, %v471_v4   ;;  %v6266_v8 = vsel %vm549_vm1, %v550_v6, 0  ;;  %v467_v23 = vld [vmem:[%s9388_s2] sm:$0xff]  ;;  %487 = vperm.xlu2 %6062, %v469_v25   ;;  %v847_v26 = vld [vmem:[%s9390_s4 + $0x78] sm:$0xff]  ;;  %v5929_v29 = vld [vmem:[%s9387_s1 + $0x8] sm:$0xff]  ;;  %s5927_s30 = sshll.u32 %s10238_s21, 10 }
  0x13   : > { %v844_v27 = vld [vmem:[%s9390_s4 + $0x60] sm:$0xff]  ;;  %v470_v28 = vld [vmem:[%s9388_s2 + $0x18] sm:$0xff]  ;;  %v842_v30 = vld [vmem:[%s9390_s4 + $0x50] sm:$0xff]  ;;  %vm5328_vm4 = vcmask 7168  }
  0x14   : > { %s6253_s12 = scalar_lea.vmem %s9386_s0, %s6020_s9  ;;  %v843_v31 = vld [vmem:[%s9390_s4 + $0x58] sm:$0xff]  ;;  %v846_v32 = vld [vmem:[%s9390_s4 + $0x70] sm:$0xff]  ;;  %v841_v34 = vld [vmem:[%s9390_s4 + $0x48] sm:$0xff]  ;;  %s7976_s9 = scalar_lea.vmem %s9392_s6, %s5927_s30 }
  0x15   : > { %v430_v2 = vld [vmem:[%s6253_s12] sm:$0x77]  ;;  %v431_v3 = vld [vmem:[%s6253_s12 + $0x8] sm:$0x77]  ;;  %v432_v33 = vld [vmem:[%s6253_s12 + $0x10] sm:$0x77] }
  0x16   : > { %436 = vst [vmem:[#allocation1] ss:$2 sm:$0xff] %v430_v2  ;;  %v838_v35 = vld [vmem:[%s9390_s4 + $0x30] sm:$0xff]  ;;  %v845_v36 = vld [vmem:[%s9390_s4 + $0x68] sm:$0xff]  ;;  %v836_v44 = vld [vmem:[%s9390_s4 + $0x20] sm:$0xff] }
  0x17   : > { %438 = vst [vmem:[#allocation1 + $0x10] ss:$2 sm:$0xff] %v431_v3  ;;  %v5930_v41 = vld [vmem:[%s9387_s1 + $0x10] sm:$0xff]  ;;  %v837_v45 = vld [vmem:[%s9390_s4 + $0x28] sm:$0xff]  ;;  %v840_v46 = vld [vmem:[%s9390_s4 + $0x40] sm:$0xff] }
  0x18   : > { %440 = vst [vmem:[#allocation1 + $0x20] ss:$2 sm:$0xff] %v432_v33  ;;  %v835_v47 = vld [vmem:[%s9390_s4 + $0x18] sm:$0xff]  ;;  %v832_v48 = vld [vmem:[%s9390_s4] sm:$0xff]  ;;  %v834_v51 = vld [vmem:[%s9390_s4 + $0x10] sm:$0xff] }
  0x19   : > { %512 = vperm.xlu0 %6060, %v474_v7   ;;  %v839_v49 = vld [vmem:[%s9390_s4 + $0x38] sm:$0xff]  ;;  %v833_v52 = vld [vmem:[%s9390_s4 + $0x8] sm:$0xff] }
  0x1a   : > { %502 = vperm.xlu1 %6061, %v472_v9   ;;  %492 = vperm.xlu2 %6062, %v470_v28   ;;  %v5931_v50 = vld [vmem:[%s9387_s1 + $0x18] sm:$0xff] }
  0x1d   : > { %v441_v10 = vld.sshfl [vmem:[#allocation1] sm:$0xff pattern:$0x75316420]  ;;  %v442_v11 = vld.sshfl [vmem:[#allocation1 + $0x8] sm:$0xff pattern:$0x75316420] }
  0x1e   : > { %v453_v12 = vpack.c.bf16 %v441_v10, %v441_v10  ;;  %v454_v13 = vpack.c.bf16 %v442_v11, %v442_v11  ;;  %v443_v14 = vld.sshfl [vmem:[#allocation1 + $0x10] sm:$0xff pattern:$0x75316420]  ;;  %v444_v15 = vld.sshfl [vmem:[#allocation1 + $0x18] sm:$0xff pattern:$0x75316420] }
  0x1f   : > { %v455_v16 = vpack.c.bf16 %v443_v14, %v443_v14  ;;  %v456_v17 = vpack.c.bf16 %v444_v15, %v444_v15  ;;  %v445_v37 = vld.sshfl [vmem:[#allocation1 + $0x20] sm:$0xff pattern:$0x75316420]  ;;  %v446_v38 = vld.sshfl [vmem:[#allocation1 + $0x28] sm:$0xff pattern:$0x75316420] }
  0x20   : > { %v553_v18 = vand.u32 %v6266_v8, %v453_v12  ;;  %v556_v19 = vand.u32 %v6266_v8, %v454_v13  ;;  %v457_v39 = vpack.c.bf16 %v445_v37, %v445_v37  ;;  %v458_v40 = vpack.c.bf16 %v446_v38, %v446_v38 }
  0x21   : > { %v559_v20 = vand.u32 %v6266_v8, %v455_v16  ;;  %v562_v21 = vand.u32 %v6266_v8, %v456_v17  ;;  %477 = vperm.xlu0 %6060, %v467_v23  }
  0x22   : > { %577 = vmatpush.bf16.msra.mxu0 %v553_v18  ;;  %606 = vmatpush.bf16.msra.mxu1 %v556_v19  ;;  %v565_v42 = vand.u32 %v6266_v8, %v457_v39  ;;  %v568_v43 = vand.u32 %v6266_v8, %v458_v40 }
  0x23   : > { %635 = vmatpush.bf16.msra.mxu2 %v559_v20  ;;  %664 = vmatpush.bf16.msra.mxu3 %v562_v21 }
  0x24   : > { %482 = vperm.xlu1 %6061, %v468_v24   ;;  %920 = vperm.xlu2 %6062, %v846_v32  }
  0x25   : > { %5565 = vmatmul.msk.bf16.vlgmr.msra.gmra.mxu0 %vm535_vm2, %v6278_v22  ;;  %5569 = vmatmul.msk.bf16.vlgmr.msra.gmra.mxu1 %vm535_vm2, %v6278_v22 }
  0x26   : > { %5573 = vmatmul.msk.bf16.vlgmr.msra.gmra.mxu2 %vm535_vm2, %v6278_v22  ;;  %5577 = vmatmul.msk.bf16.vlgmr.msra.gmra.mxu3 %vm535_vm2, %v6278_v22 }
  0x27   : > { %693 = vmatpush.bf16.msrb.mxu0 %v565_v42  ;;  %722 = vmatpush.bf16.msrb.mxu1 %v568_v43 }
  0x29   : > { %925 = vperm.xlu0 %6060, %v847_v26  }
  0x2c   : > { %910 = vperm.xlu1 %6061, %v844_v27   ;;  %915 = vperm.xlu2 %6062, %v845_v36  }
  0x31   : > { %900 = vperm.xlu0 %6060, %v842_v30  }
  0x34   : > { %905 = vperm.xlu1 %6061, %v843_v31   ;;  %890 = vperm.xlu2 %6062, %v840_v46  }
  0x35   : > { %5566 = vmatmul.msk.bf16.gmra.mxu0 %vm535_vm2, %v5929_v29  ;;  %5570 = vmatmul.msk.bf16.gmra.mxu1 %vm535_vm2, %v5929_v29 }
  0x36   : > { %5574 = vmatmul.msk.bf16.gmra.mxu2 %vm535_vm2, %v5929_v29  ;;  %5578 = vmatmul.msk.bf16.gmra.mxu3 %vm535_vm2, %v5929_v29 }
  0x39   : > { %895 = vperm.xlu0 %6060, %v841_v34  }
  0x3c   : > { %880 = vperm.xlu1 %6061, %v838_v35   ;;  %885 = vperm.xlu2 %6062, %v839_v49  }
  0x41   : > { %870 = vperm.xlu0 %6060, %v836_v44  }
  0x44   : > { %875 = vperm.xlu1 %6061, %v837_v45   ;;  %860 = vperm.xlu2 %6062, %v834_v51  }
  0x45   : > { %5567 = vmatmul.msk.bf16.gmra.mxu0 %vm535_vm2, %v5930_v41  ;;  %5571 = vmatmul.msk.bf16.gmra.mxu1 %vm535_vm2, %v5930_v41 }
  0x46   : > { %5575 = vmatmul.msk.bf16.gmra.mxu2 %vm535_vm2, %v5930_v41  ;;  %5579 = vmatmul.msk.bf16.gmra.mxu3 %vm535_vm2, %v5930_v41 }
  0x49   : > { %865 = vperm.xlu0 %6060, %v835_v47  }
  0x4c   : > { %850 = vperm.xlu1 %6061, %v832_v48   ;;  %855 = vperm.xlu2 %6062, %v833_v52  }
  0x55   : > { %5568 = vmatmul.msk.bf16.gmra.mxu0 %vm535_vm2, %v5931_v50  ;;  %5572 = vmatmul.msk.bf16.gmra.mxu1 %vm535_vm2, %v5931_v50 }
  0x56   : > { %5576 = vmatmul.msk.bf16.gmra.mxu2 %vm535_vm2, %v5931_v50  ;;  %5580 = vmatmul.msk.bf16.gmra.mxu3 %vm535_vm2, %v5931_v50 }
  0x65   : > { %5581 = vmatmul.msk.bf16.vlgmr.msrb.gmra.mxu0 %vm535_vm2, %v6278_v22  ;;  %5585 = vmatmul.msk.bf16.vlgmr.msrb.gmra.mxu1 %vm535_vm2, %v6278_v22 }
  0x6c   : > { %v6402_v19 = vpop.permute.xlu2 %487 }
  0x74   : > { %v6434_v40 = vpop.permute.xlu2 %492 }
  0x75   : > { %5582 = vmatmul.msk.bf16.gmra.mxu0 %vm535_vm2, %v5929_v29  ;;  %5586 = vmatmul.msk.bf16.gmra.mxu1 %vm535_vm2, %v5929_v29 }
  0x83   : > { %v6394_v7 = vpop.permute.xlu0 %507 }
  0x84   : > { %v6396_v8 = vpop.permute.xlu1 %497 }
  0x85   : > { %5583 = vmatmul.msk.bf16.gmra.mxu0 %vm535_vm2, %v5930_v41  ;;  %5587 = vmatmul.msk.bf16.gmra.mxu1 %vm535_vm2, %v5930_v41 }
  0x8b   : > { %v6398_v13 = vpop.permute.xlu0 %512 }
  0x8c   : > { %v6400_v14 = vpop.permute.xlu1 %502 }
  0x93   : > { %v6404_v20 = vpop.permute.xlu0 %477 }
  0x95   : > { %5584 = vmatmul.msk.bf16.gmra.mxu0 %vm535_vm2, %v5931_v50  ;;  %5588 = vmatmul.msk.bf16.gmra.mxu1 %vm535_vm2, %v5931_v50 }
  0x96   : > { %v6406_v21 = vpop.permute.xlu1 %482 }
  0xa2   : > { %v579_v53 = vpop.f32.mrf.mxu0  ;;  %v608_v54 = vpop.f32.mrf.mxu1 }
  0xa3   : > { %v6411_v26 = vadd.f32 %v579_v53, %v6404_v20  ;;  %v6414_v27 = vadd.f32 %v608_v54, %v6404_v20 }
  0xa9   : > { %v6382_v55 = vpop.f32.mrf.mxu2  ;;  %v6384_v56 = vpop.f32.mrf.mxu3 }
  0xaa   : > { %v581_v57 = vpop.f32.mrf.mxu0  ;;  %v610_v58 = vpop.f32.mrf.mxu1 }
  0xab   : > { %v6427_v36 = vadd.f32 %v581_v57, %v6406_v21  ;;  %v6430_v37 = vadd.f32 %v610_v58, %v6406_v21 }
  0xb1   : > { %v6386_v59 = vpop.f32.mrf.mxu2  ;;  %v6388_v60 = vpop.f32.mrf.mxu3 }
  0xb2   : > { %v584_v61 = vpop.f32.mrf.mxu0  ;;  %v613_v62 = vpop.f32.mrf.mxu1 }
  0xb3   : > { %v6417_v28 = vadd.f32 %v584_v61, %v6402_v19  ;;  %v6420_v29 = vadd.f32 %v613_v62, %v6402_v19 }
  0xb5   : > { %v756_v45 = vmax.f32 %v6417_v28, 0.0  ;;  %v757_v46 = vmax.f32 %v6420_v29, 0.0 }
  0xb9   : > { %v642_v63 = vpop.f32.mrf.mxu2  ;;  %v671_v0 = vpop.f32.mrf.mxu3 }
  0xba   : > { %v586_v1 = vpop.f32.mrf.mxu0  ;;  %v615_v2 = vpop.f32.mrf.mxu1  ;;  %v6441_v53 = vadd.f32 %v642_v63, %v6402_v19  ;;  %v6444_v54 = vadd.f32 %v671_v0, %v6402_v19 }
  0xbb   : > { %v587_v47 = vadd.f32 %v586_v1, %v6434_v40  ;;  %v616_v48 = vadd.f32 %v615_v2, %v6434_v40 }
  0xc1   : > { %v6390_v3 = vpop.f32.mrf.mxu2  ;;  %v6392_v4 = vpop.f32.mrf.mxu3 }
  0xc2   : > { %v589_v5 = vpop.f32.mrf.mxu0  ;;  %v618_v6 = vpop.f32.mrf.mxu1 }
  0xc3   : > { %v590_v38 = vadd.f32 %v589_v5, %v6396_v8  ;;  %v619_v39 = vadd.f32 %v618_v6, %v6396_v8 }
  0xc5   : > { %v768_v61 = vmax.f32 %v590_v38, 0.0  ;;  %v769_v62 = vmax.f32 %v619_v39, 0.0  ;;  %v750_v38 = vmax.f32 %v6427_v36, 0.0  ;;  %v751_v39 = vmax.f32 %v6430_v37, 0.0 }
  0xc6   : > { %v669_v36 = vadd.f32 %v6388_v60, %v6406_v21  ;;  %v758_v37 = vmax.f32 %v6441_v53, 0.0 }
  0xc8   : > { %v753_v53 = vmax.f32 %v669_v36, 0.0 }
  0xc9   : > { %v647_v9 = vpop.f32.mrf.mxu2  ;;  %v676_v10 = vpop.f32.mrf.mxu3 }
  0xca   : > { %v591_v11 = vpop.f32.mrf.mxu0  ;;  %v620_v12 = vpop.f32.mrf.mxu1  ;;  %v648_v1 = vadd.f32 %v647_v9, %v6396_v8  ;;  %v677_v2 = vadd.f32 %v676_v10, %v6396_v8  ;;  %v763_v9 = vmax.f32 %v616_v48, 0.0 }
  0xcb   : > { %v592_v32 = vadd.f32 %v591_v11, %v6400_v14  ;;  %v621_v33 = vadd.f32 %v620_v12, %v6400_v14 }
  0xcd   : > { %v774_v49 = vmax.f32 %v592_v32, 0.0  ;;  %v775_v50 = vmax.f32 %v621_v33, 0.0 }
  0xcf   : > { %v821_v10 = vpack.c.bf16 %v775_v50, %v769_v62 }
  0xd1   : > { %v649_v15 = vpop.f32.mrf.mxu2  ;;  %v678_v16 = vpop.f32.mrf.mxu3 }
  0xd2   : > { %v594_v17 = vpop.f32.mrf.mxu0  ;;  %v623_v18 = vpop.f32.mrf.mxu1  ;;  %v650_v63 = vadd.f32 %v649_v15, %v6400_v14  ;;  %v679_v11 = vadd.f32 %v678_v16, %v6400_v14  ;;  %v645_v15 = vadd.f32 %v6390_v3, %v6434_v40  ;;  %v674_v16 = vadd.f32 %v6392_v4, %v6434_v40 }
  0xd3   : > { %v595_v22 = vadd.f32 %v594_v17, %v6394_v7  ;;  %v624_v23 = vadd.f32 %v623_v18, %v6394_v7  ;;  %v745_v3 = vmax.f32 %v6414_v27, 0.0  ;;  %v638_v4 = vadd.f32 %v6382_v55, %v6404_v20 }
  0xd4   : > { %v776_v32 = vmax.f32 %v650_v63, 0.0  ;;  %v777_v33 = vmax.f32 %v679_v11, 0.0  ;;  %v764_v27 = vmax.f32 %v645_v15, 0.0 }
  0xd5   : > { %v780_v41 = vmax.f32 %v595_v22, 0.0  ;;  %v781_v42 = vmax.f32 %v624_v23, 0.0  ;;  %v762_v22 = vmax.f32 %v587_v47, 0.0  ;;  %v820_v23 = vpack.c.bf16 %v774_v49, %v768_v61 }
  0xd6   : > { %v640_v47 = vadd.f32 %v6386_v59, %v6406_v21  ;;  %v809_v50 = vpack.c.bf16 %v751_v39, %v745_v3  ;;  %v746_v59 = vmax.f32 %v638_v4, 0.0 }
  0xd9   : > { %v652_v24 = vpop.f32.mrf.mxu2  ;;  %v681_v25 = vpop.f32.mrf.mxu3 }
  0xda   : > { %v596_v30 = vpop.f32.mrf.mxu0  ;;  %v625_v31 = vpop.f32.mrf.mxu1  ;;  %v653_v57 = vadd.f32 %v652_v24, %v6394_v7  ;;  %v682_v58 = vadd.f32 %v681_v25, %v6394_v7 }
  0xdb   : > { %v597_v34 = vadd.f32 %v596_v30, %v6398_v13  ;;  %v626_v35 = vadd.f32 %v625_v31, %v6398_v13  ;;  %v770_v30 = vmax.f32 %v648_v1, 0.0  ;;  %v771_v31 = vmax.f32 %v677_v2, 0.0 }
  0xdc   : > { %v782_v24 = vmax.f32 %v653_v57, 0.0  ;;  %v783_v25 = vmax.f32 %v682_v58, 0.0 }
  0xdd   : > { %v786_v43 = vmax.f32 %v597_v34, 0.0  ;;  %v787_v44 = vmax.f32 %v626_v35, 0.0  ;;  %v823_v48 = vpack.c.bf16 %v777_v33, %v771_v31 }
  0xdf   : > { %v826_v51 = vpack.c.bf16 %v786_v43, %v780_v41  ;;  %v827_v52 = vpack.c.bf16 %v787_v44, %v781_v42  ;;  %v814_v41 = vpack.c.bf16 %v762_v22, %v756_v45  ;;  %v815_v42 = vpack.c.bf16 %v763_v9, %v757_v46  ;;  %v6509_v22 = vld [vmem:[%s9389_s3 + $0x10] sm:$0xff] }
  0xe0   : > { %v744_v43 = vmax.f32 %v6411_v26, 0.0  ;;  %v667_v44 = vadd.f32 %v6384_v56, %v6404_v20  ;;  %v759_v26 = vmax.f32 %v6444_v54, 0.0  ;;  %v765_v45 = vmax.f32 %v674_v16, 0.0 }
  0xe1   : > { %v654_v5 = vpop.f32.mrf.mxu2  ;;  %v683_v6 = vpop.f32.mrf.mxu3  ;;  %997 = vmatpush.bf16.msrb.mxu2 %v826_v51  ;;  %1046 = vmatpush.bf16.msrb.mxu3 %v827_v52  ;;  %v822_v56 = vpack.c.bf16 %v776_v32, %v770_v30  ;;  %v752_v51 = vmax.f32 %v640_v47, 0.0  ;;  %v6483_v52 = vld [vmem:[%s9389_s3] sm:$0xff]  ;;  %v816_v54 = vpack.c.bf16 %v764_v27, %v758_v37 }
  0xe2   : > { %v655_v0 = vadd.f32 %v654_v5, %v6398_v13  ;;  %v684_v12 = vadd.f32 %v683_v6, %v6398_v13  ;;  %v6454_v17 = vpop.f32.mrf.mxu0  ;;  %v6456_v18 = vpop.f32.mrf.mxu1  ;;  %v808_v49 = vpack.c.bf16 %v750_v38, %v744_v43  ;;  %v747_v60 = vmax.f32 %v667_v44, 0.0  ;;  %v6496_v6 = vld [vmem:[%s9389_s3 + $0x8] sm:$0xff] }
  0xe3   : > { %v817_v57 = vpack.c.bf16 %v765_v45, %v759_v26  ;;  %v810_v62 = vpack.c.bf16 %v752_v51, %v746_v59  ;;  %v696_v45 = vadd.f32 %v6454_v17, %v6404_v20  ;;  %v6578_v51 = vpop.permute.xlu2 %920 }
  0xe4   : > { %v788_v28 = vmax.f32 %v655_v0, 0.0  ;;  %v789_v29 = vmax.f32 %v684_v12, 0.0  ;;  %v811_v1 = vpack.c.bf16 %v753_v53, %v747_v60  ;;  %v6568_v60 = vld [vmem:[%s9389_s3 + $0x28] sm:$0xff]  ;;  %v6583_v53 = vld [vmem:[%s9389_s3 + $0x30] sm:$0xff] }
  0xe5   : > { %998 = vmatpush.bf16.msrb.mxu2 %v820_v23  ;;  %1047 = vmatpush.bf16.msrb.mxu3 %v821_v10 }
  0xe6   : > { %v828_v34 = vpack.c.bf16 %v788_v28, %v782_v24  ;;  %v829_v35 = vpack.c.bf16 %v789_v29, %v783_v25 }
  0xe8   : > { %1095 = vmatpush.bf16.msra.mxu0 %v828_v34  ;;  %1144 = vmatpush.bf16.msra.mxu1 %v829_v35  ;;  %v6528_v35 = vld [vmem:[%s9389_s3 + $0x18] sm:$0xff] }
  0xe9   : > { %999 = vmatpush.bf16.msrb.mxu2 %v814_v41  ;;  %1048 = vmatpush.bf16.msrb.mxu3 %v815_v42 }
  0xea   : > { %v6476_v55 = vpop.f32.mrf.mxu0  ;;  %v6478_v46 = vpop.f32.mrf.mxu1 }
  0xeb   : > { %v698_v47 = vadd.f32 %v6476_v55, %v6406_v21 }
  0xec   : > { %1096 = vmatpush.bf16.msra.mxu0 %v822_v56  ;;  %1145 = vmatpush.bf16.msra.mxu1 %v823_v48 }
  0xed   : > { %1000 = vmatpush.bf16.msrb.mxu2 %v808_v49  ;;  %1049 = vmatpush.bf16.msrb.mxu3 %v809_v50  ;;  %v748_v50 = vmax.f32 %v696_v45, 0.0 }
  0xf0   : > { %1097 = vmatpush.bf16.msra.mxu0 %v816_v54  ;;  %1146 = vmatpush.bf16.msra.mxu1 %v817_v57  ;;  %v6589_v54 = vpop.permute.xlu1 %910  ;;  %v6591_v57 = vpop.permute.xlu2 %915 }
  0xf1   : > { %5621 = vmatmul.msk.bf16.vlgmr.msrb.gmra.mxu2 %vm968_vm3, %v6483_v52  ;;  %5629 = vmatmul.msk.bf16.vlgmr.msrb.gmra.mxu3 %vm968_vm3, %v6483_v52 }
  0xf2   : > { %v700_v58 = vpop.f32.mrf.mxu0  ;;  %v729_v61 = vpop.f32.mrf.mxu1 }
  0xf3   : > { %v701_v3 = vadd.f32 %v700_v58, %v6402_v19  ;;  %v730_v4 = vadd.f32 %v729_v61, %v6402_v19  ;;  %v725_v19 = vadd.f32 %v6456_v18, %v6404_v20  ;;  %v6555_v18 = vld [vmem:[%s9389_s3 + $0x20] sm:$0xff] }
  0xf4   : > { %1098 = vmatpush.bf16.msra.mxu0 %v810_v62  ;;  %1147 = vmatpush.bf16.msra.mxu1 %v811_v1  ;;  %v6604_v62 = vld [vmem:[%s9389_s3 + $0x38] sm:$0xff]  ;;  %v6610_v1 = vpop.permute.xlu0 %925 }
  0xf5   : > { %v760_v56 = vmax.f32 %v701_v3, 0.0  ;;  %v761_v48 = vmax.f32 %v730_v4, 0.0  ;;  %v749_v59 = vmax.f32 %v725_v19, 0.0 }
  0xf7   : > { %5637 = vmatmul.msk.bf16.vlgmr.msra.gmra.mxu0 %vm968_vm3, %v6483_v52  ;;  %5645 = vmatmul.msk.bf16.vlgmr.msra.gmra.mxu1 %vm968_vm3, %v6483_v52 }
  0xf8   : > { %v6597_v58 = vpop.permute.xlu1 %905  ;;  %v6599_v61 = vpop.permute.xlu2 %890 }
  0xfa   : > { %v702_v2 = vpop.f32.mrf.mxu0  ;;  %v731_v5 = vpop.f32.mrf.mxu1 }
  0xfb   : > { %v732_v42 = vadd.f32 %v731_v5, %v6434_v40 }
  0xfd   : > { %v767_v37 = vmax.f32 %v732_v42, 0.0 }
  0xff   : > { %v819_v49 = vpack.c.bf16 %v767_v37, %v761_v48 }
 0x100   : > { %v6614_v5 = vpop.permute.xlu2 %885 }
 0x101   : > { %5622 = vmatmul.msk.bf16.gmra.mxu2 %vm968_vm3, %v6496_v6  ;;  %5630 = vmatmul.msk.bf16.gmra.mxu3 %vm968_vm3, %v6496_v6 }
 0x102   : > { %v705_v63 = vpop.f32.mrf.mxu0  ;;  %v734_v11 = vpop.f32.mrf.mxu1 }
 0x103   : > { %v735_v38 = vadd.f32 %v734_v11, %v6396_v8 }
 0x107   : > { %5638 = vmatmul.msk.bf16.gmra.mxu0 %vm968_vm3, %v6496_v6  ;;  %5646 = vmatmul.msk.bf16.gmra.mxu1 %vm968_vm3, %v6496_v6 }
 0x10a   : > { %v707_v0 = vpop.f32.mrf.mxu0  ;;  %v736_v12 = vpop.f32.mrf.mxu1 }
 0x10b   : > { %v708_v16 = vadd.f32 %v707_v0, %v6400_v14  ;;  %v737_v30 = vadd.f32 %v736_v12, %v6400_v14  ;;  %v6624_v0 = vpop.permute.xlu2 %860 }
 0x10c   : > { %9626 = vst [vmem:[#allocation6_spill] sm:$0xff] %v6624_v0 }
 0x10d   : > { %v778_v14 = vmax.f32 %v708_v16, 0.0  ;;  %v779_v43 = vmax.f32 %v737_v30, 0.0 }
 0x111   : > { %5623 = vmatmul.msk.bf16.gmra.mxu2 %vm968_vm3, %v6509_v22  ;;  %5631 = vmatmul.msk.bf16.gmra.mxu3 %vm968_vm3, %v6509_v22 }
 0x112   : > { %v710_v9 = vpop.f32.mrf.mxu0  ;;  %v739_v23 = vpop.f32.mrf.mxu1 }
 0x113   : > { %v711_v10 = vadd.f32 %v710_v9, %v6394_v7  ;;  %v740_v24 = vadd.f32 %v739_v23, %v6394_v7  ;;  %v706_v7 = vadd.f32 %v705_v63, %v6396_v8  ;;  %v773_v8 = vmax.f32 %v735_v38, 0.0  ;;  %v6620_v63 = vpop.permute.xlu0 %900 }
 0x115   : > { %v784_v31 = vmax.f32 %v711_v10, 0.0  ;;  %v785_v32 = vmax.f32 %v740_v24, 0.0  ;;  %v772_v44 = vmax.f32 %v706_v7, 0.0  ;;  %v825_v27 = vpack.c.bf16 %v779_v43, %v773_v8 }
 0x117   : > { %5639 = vmatmul.msk.bf16.gmra.mxu0 %vm968_vm3, %v6509_v22  ;;  %5647 = vmatmul.msk.bf16.gmra.mxu1 %vm968_vm3, %v6509_v22  ;;  %v824_v26 = vpack.c.bf16 %v778_v14, %v772_v44 }
 0x11a   : > { %v712_v25 = vpop.f32.mrf.mxu0  ;;  %v741_v28 = vpop.f32.mrf.mxu1 }
 0x11b   : > { %v713_v29 = vadd.f32 %v712_v25, %v6398_v13  ;;  %v742_v15 = vadd.f32 %v741_v28, %v6398_v13  ;;  %v703_v13 = vadd.f32 %v702_v2, %v6434_v40  ;;  %v727_v40 = vadd.f32 %v6478_v46, %v6406_v21  ;;  %v6612_v2 = vpop.permute.xlu1 %880  ;;  %v6634_v24 = vpop.permute.xlu0 %895 }
 0x11c   : > { %v754_v21 = vmax.f32 %v698_v47, 0.0  ;;  %v6638_v28 = vpop.permute.xlu2 %855 }
 0x11d   : > { %v790_v33 = vmax.f32 %v713_v29, 0.0  ;;  %v791_v34 = vmax.f32 %v742_v15, 0.0  ;;  %v766_v36 = vmax.f32 %v703_v13, 0.0  ;;  %v755_v55 = vmax.f32 %v727_v40, 0.0  ;;  %9630 = vst [vmem:[#allocation10_spill] sm:$0xff] %v6638_v28 }
 0x11e   : > { %v812_v17 = vpack.c.bf16 %v754_v21, %v748_v50 }
 0x11f   : > { %v830_v39 = vpack.c.bf16 %v790_v33, %v784_v31  ;;  %v831_v41 = vpack.c.bf16 %v791_v34, %v785_v32  ;;  %v818_v46 = vpack.c.bf16 %v766_v36, %v760_v56  ;;  %v813_v20 = vpack.c.bf16 %v755_v55, %v749_v59 }
 0x121   : > { %5624 = vmatmul.msk.bf16.gmra.mxu2 %vm968_vm3, %v6528_v35  ;;  %5632 = vmatmul.msk.bf16.gmra.mxu3 %vm968_vm3, %v6528_v35 }
 0x122   : > { %1193 = vmatpush.bf16.msra.mxu2 %v830_v39  ;;  %1242 = vmatpush.bf16.msra.mxu3 %v831_v41 }
 0x123   : > { %v6622_v11 = vpop.permute.xlu1 %875  ;;  %v6648_v41 = vpop.permute.xlu0 %870 }
 0x124   : > { %9633 = vst [vmem:[#allocation13_spill] sm:$0xff] %v6648_v41 }
 0x126   : > { %1194 = vmatpush.bf16.msra.mxu2 %v824_v26  ;;  %1243 = vmatpush.bf16.msra.mxu3 %v825_v27 }
 0x127   : > { %5640 = vmatmul.msk.bf16.gmra.mxu0 %vm968_vm3, %v6528_v35  ;;  %5648 = vmatmul.msk.bf16.gmra.mxu1 %vm968_vm3, %v6528_v35 }
 0x12a   : > { %1195 = vmatpush.bf16.msra.mxu2 %v818_v46  ;;  %1244 = vmatpush.bf16.msra.mxu3 %v819_v49 }
 0x12b   : > { %v6636_v25 = vpop.permute.xlu1 %850  ;;  %v6662_v44 = vpop.permute.xlu0 %865 }
 0x12c   : > { %9629 = vst [vmem:[#allocation9_spill] sm:$0xff] %v6636_v25 }
 0x12d   : > { %9636 = vst [vmem:[#allocation16_spill] sm:$0xff] %v6662_v44 }
 0x12e   : > { %1196 = vmatpush.bf16.msra.mxu2 %v812_v17  ;;  %1245 = vmatpush.bf16.msra.mxu3 %v813_v20 }
 0x131   : > { %5625 = vmatmul.msk.bf16.gmra.mxu2 %vm968_vm3, %v6555_v18  ;;  %5633 = vmatmul.msk.bf16.gmra.mxu3 %vm968_vm3, %v6555_v18 }
 0x137   : > { %5641 = vmatmul.msk.bf16.gmra.mxu0 %vm968_vm3, %v6555_v18  ;;  %5649 = vmatmul.msk.bf16.gmra.mxu1 %vm968_vm3, %v6555_v18 }
 0x141   : > { %5626 = vmatmul.msk.bf16.gmra.mxu2 %vm968_vm3, %v6568_v60  ;;  %5634 = vmatmul.msk.bf16.gmra.mxu3 %vm968_vm3, %v6568_v60 }
 0x147   : > { %5642 = vmatmul.msk.bf16.gmra.mxu0 %vm968_vm3, %v6568_v60  ;;  %5650 = vmatmul.msk.bf16.gmra.mxu1 %vm968_vm3, %v6568_v60 }
 0x151   : > { %5627 = vmatmul.msk.bf16.gmra.mxu2 %vm968_vm3, %v6583_v53  ;;  %5635 = vmatmul.msk.bf16.gmra.mxu3 %vm968_vm3, %v6583_v53 }
 0x157   : > { %5643 = vmatmul.msk.bf16.gmra.mxu0 %vm968_vm3, %v6583_v53  ;;  %5651 = vmatmul.msk.bf16.gmra.mxu1 %vm968_vm3, %v6583_v53 }
 0x161   : > { %5628 = vmatmul.msk.bf16.gmra.mxu2 %vm968_vm3, %v6604_v62  ;;  %5636 = vmatmul.msk.bf16.gmra.mxu3 %vm968_vm3, %v6604_v62 }
 0x167   : > { %5644 = vmatmul.msk.bf16.gmra.mxu0 %vm968_vm3, %v6604_v62  ;;  %5652 = vmatmul.msk.bf16.gmra.mxu1 %vm968_vm3, %v6604_v62 }
 0x171   : > { %5653 = vmatmul.msk.bf16.vlgmr.msra.gmra.mxu2 %vm968_vm3, %v6483_v52  ;;  %5661 = vmatmul.msk.bf16.vlgmr.msra.gmra.mxu3 %vm968_vm3, %v6483_v52 }
 0x174   : > { %v1002_v12 = vpop.f32.mrf.mxu2  ;;  %v1051_v9 = vpop.f32.mrf.mxu3 }
 0x175   : > { %v6630_v23 = vpop.f32.mrf.mxu0  ;;  %v6632_v10 = vpop.f32.mrf.mxu1  ;;  %v1003_v29 = vadd.f32 %v1002_v12, %v6636_v25  ;;  %v1052_v15 = vadd.f32 %v1051_v9, %v6636_v25 }
 0x176   : > { %9627 = vst [vmem:[#allocation7_spill] sm:$0xff] %v6630_v23 }
 0x177   : > { %9628 = vst [vmem:[#allocation8_spill] sm:$0xff] %v6632_v10  ;;  %v1287_v34 = vmax.f32 %v1003_v29, 0.0  ;;  %v1288_v7 = vmax.f32 %v1052_v15, 0.0 }
 0x17c   : > { %v1004_v16 = vpop.f32.mrf.mxu2  ;;  %v1053_v30 = vpop.f32.mrf.mxu3 }
 0x17d   : > { %v1005_v52 = vadd.f32 %v1004_v16, %v6638_v28  ;;  %v1054_v31 = vadd.f32 %v1053_v30, %v6638_v28  ;;  %v6644_v32 = vpop.f32.mrf.mxu0  ;;  %v6646_v33 = vpop.f32.mrf.mxu1 }
 0x17e   : > { %9631 = vst [vmem:[#allocation11_spill] sm:$0xff] %v6644_v32 }
 0x17f   : > { %9632 = vst [vmem:[#allocation12_spill] sm:$0xff] %v6646_v33  ;;  %v1293_v38 = vmax.f32 %v1005_v52, 0.0  ;;  %v1294_v39 = vmax.f32 %v1054_v31, 0.0 }
 0x181   : > { %5654 = vmatmul.msk.bf16.gmra.mxu2 %vm968_vm3, %v6496_v6  ;;  %5662 = vmatmul.msk.bf16.gmra.mxu3 %vm968_vm3, %v6496_v6  ;;  %v6654_v13 = vpack.c.bf16 %v1293_v38, %v1287_v34  ;;  %v6656_v42 = vpack.c.bf16 %v1294_v39, %v1288_v7 }
 0x184   : > { %v1007_v14 = vpop.f32.mrf.mxu2  ;;  %v1056_v43 = vpop.f32.mrf.mxu3 }
 0x185   : > { %v6658_v3 = vpop.f32.mrf.mxu0  ;;  %v6660_v4 = vpop.f32.mrf.mxu1  ;;  %v1008_v8 = vadd.f32 %v1007_v14, %v6624_v0  ;;  %v1057_v47 = vadd.f32 %v1056_v43, %v6624_v0 }
 0x186   : > { %9634 = vst [vmem:[#allocation14_spill] sm:$0xff] %v6658_v3 }
 0x187   : > { %9635 = vst [vmem:[#allocation15_spill] sm:$0xff] %v6660_v4  ;;  %v1299_v45 = vmax.f32 %v1008_v8, 0.0  ;;  %v1300_v19 = vmax.f32 %v1057_v47, 0.0 }
 0x18c   : > { %v1009_v40 = vpop.f32.mrf.mxu2  ;;  %v1058_v36 = vpop.f32.mrf.mxu3 }
 0x18d   : > { %v1010_v6 = vadd.f32 %v1009_v40, %v6662_v44  ;;  %v1059_v37 = vadd.f32 %v1058_v36, %v6662_v44  ;;  %v6668_v26 = vpop.f32.mrf.mxu0  ;;  %v6670_v27 = vpop.f32.mrf.mxu1 }
 0x18e   : > { %9637 = vst [vmem:[#allocation17_spill] sm:$0xff] %v6668_v26 }
 0x18f   : > { %9638 = vst [vmem:[#allocation18_spill] sm:$0xff] %v6670_v27  ;;  %v1305_v56 = vmax.f32 %v1010_v6, 0.0  ;;  %v1306_v48 = vmax.f32 %v1059_v37, 0.0 }
 0x191   : > { %5655 = vmatmul.msk.bf16.gmra.mxu2 %vm968_vm3, %v6509_v22  ;;  %5663 = vmatmul.msk.bf16.gmra.mxu3 %vm968_vm3, %v6509_v22  ;;  %v6676_v21 = vpack.c.bf16 %v1305_v56, %v1299_v45  ;;  %v6678_v55 = vpack.c.bf16 %v1306_v48, %v1300_v19 }
 0x194   : > { %v1012_v46 = vpop.f32.mrf.mxu2  ;;  %v1061_v49 = vpop.f32.mrf.mxu3 }
 0x195   : > { %v6680_v50 = vpop.f32.mrf.mxu0  ;;  %v6682_v59 = vpop.f32.mrf.mxu1  ;;  %v1013_v17 = vadd.f32 %v1012_v46, %v6648_v41  ;;  %v1062_v20 = vadd.f32 %v1061_v49, %v6648_v41 }
 0x196   : > { %9639 = vst [vmem:[#allocation19_spill] sm:$0xff] %v6680_v50 }
 0x197   : > { %9640 = vst [vmem:[#allocation20_spill] sm:$0xff] %v6682_v59  ;;  %v1311_v15 = vmax.f32 %v1013_v17, 0.0  ;;  %v1312_v16 = vmax.f32 %v1062_v20, 0.0 }
 0x19c   : > { %v1014_v12 = vpop.f32.mrf.mxu2  ;;  %v1063_v9 = vpop.f32.mrf.mxu3 }
 0x19d   : > { %v1015_v29 = vadd.f32 %v1014_v12, %v6622_v11  ;;  %v1064_v22 = vadd.f32 %v1063_v9, %v6622_v11  ;;  %v6688_v31 = vpop.f32.mrf.mxu0  ;;  %v6690_v34 = vpop.f32.mrf.mxu1 }
 0x19e   : > { %9641 = vst [vmem:[#allocation21_spill] sm:$0xff] %v6688_v31 }
 0x19f   : > { %v1317_v30 = vmax.f32 %v1015_v29, 0.0  ;;  %v1318_v52 = vmax.f32 %v1064_v22, 0.0  ;;  %9642 = vst [vmem:[#allocation22_spill] sm:$0xff] %v6690_v34 }
 0x1a1   : > { %5656 = vmatmul.msk.bf16.gmra.mxu2 %vm968_vm3, %v6528_v35  ;;  %5664 = vmatmul.msk.bf16.gmra.mxu3 %vm968_vm3, %v6528_v35  ;;  %v6696_v7 = vpack.c.bf16 %v1317_v30, %v1311_v15  ;;  %v6698_v38 = vpack.c.bf16 %v1318_v52, %v1312_v16 }
 0x1a4   : > { %v1017_v39 = vpop.f32.mrf.mxu2  ;;  %v1066_v14 = vpop.f32.mrf.mxu3 }
 0x1a5   : > { %v6700_v43 = vpop.f32.mrf.mxu0  ;;  %v6702_v8 = vpop.f32.mrf.mxu1  ;;  %v1018_v47 = vadd.f32 %v1017_v39, %v6612_v2  ;;  %v1067_v40 = vadd.f32 %v1066_v14, %v6612_v2 }
 0x1a7   : > { %v1323_v45 = vmax.f32 %v1018_v47, 0.0  ;;  %v1324_v19 = vmax.f32 %v1067_v40, 0.0 }
 0x1ac   : > { %v1019_v36 = vpop.f32.mrf.mxu2  ;;  %v1068_v6 = vpop.f32.mrf.mxu3 }
 0x1ad   : > { %v1020_v37 = vadd.f32 %v1019_v36, %v6614_v5  ;;  %v1069_v35 = vadd.f32 %v1068_v6, %v6614_v5  ;;  %v6716_v17 = vpop.f32.mrf.mxu0  ;;  %v6718_v20 = vpop.f32.mrf.mxu1 }
 0x1af   : > { %v1329_v56 = vmax.f32 %v1020_v37, 0.0  ;;  %v1330_v48 = vmax.f32 %v1069_v35, 0.0 }
 0x1b1   : > { %5657 = vmatmul.msk.bf16.gmra.mxu2 %vm968_vm3, %v6555_v18  ;;  %5665 = vmatmul.msk.bf16.gmra.mxu3 %vm968_vm3, %v6555_v18  ;;  %v6712_v46 = vpack.c.bf16 %v1329_v56, %v1323_v45  ;;  %v6714_v49 = vpack.c.bf16 %v1330_v48, %v1324_v19 }
 0x1b4   : > { %v6720_v12 = vpop.f32.mrf.mxu2  ;;  %v6722_v9 = vpop.f32.mrf.mxu3 }
 0x1b5   : > { %v6724_v15 = vpop.f32.mrf.mxu0  ;;  %v6726_v16 = vpop.f32.mrf.mxu1 }
 0x1bc   : > { %v1024_v29 = vpop.f32.mrf.mxu2  ;;  %v1073_v22 = vpop.f32.mrf.mxu3 }
 0x1bd   : > { %v6732_v52 = vpop.f32.mrf.mxu0  ;;  %v6734_v39 = vpop.f32.mrf.mxu1 }
 0x1c1   : > { %5658 = vmatmul.msk.bf16.gmra.mxu2 %vm968_vm3, %v6568_v60  ;;  %5666 = vmatmul.msk.bf16.gmra.mxu3 %vm968_vm3, %v6568_v60 }
 0x1c4   : > { %v1027_v18 = vpop.f32.mrf.mxu2  ;;  %v1076_v30 = vpop.f32.mrf.mxu3 }
 0x1c5   : > { %v6736_v40 = vpop.f32.mrf.mxu0  ;;  %v6738_v36 = vpop.f32.mrf.mxu1 }
 0x1cc   : > { %v1029_v14 = vpop.f32.mrf.mxu2  ;;  %v1078_v47 = vpop.f32.mrf.mxu3 }
 0x1cd   : > { %v6744_v37 = vpop.f32.mrf.mxu0  ;;  %v6746_v35 = vpop.f32.mrf.mxu1 }
 0x1d1   : > { %5659 = vmatmul.msk.bf16.gmra.mxu2 %vm968_vm3, %v6583_v53  ;;  %5667 = vmatmul.msk.bf16.gmra.mxu3 %vm968_vm3, %v6583_v53 }
 0x1d4   : > { %v1032_v6 = vpop.f32.mrf.mxu2  ;;  %v1081_v60 = vpop.f32.mrf.mxu3 }
 0x1d5   : > { %v6752_v10 = vpop.f32.mrf.mxu0  ;;  %v6754_v23 = vpop.f32.mrf.mxu1  ;;  %v1082_v50 = vadd.f32 %v1081_v60, %v6589_v54 }
 0x1dc   : > { %v1034_v45 = vpop.f32.mrf.mxu2  ;;  %v1083_v19 = vpop.f32.mrf.mxu3 }
 0x1dd   : > { %v1035_v28 = vadd.f32 %v1034_v45, %v6591_v57  ;;  %v1084_v0 = vadd.f32 %v1083_v19, %v6591_v57  ;;  %v6763_v27 = vpop.f32.mrf.mxu0  ;;  %v6765_v26 = vpop.f32.mrf.mxu1  ;;  %v1030_v45 = vadd.f32 %v1029_v14, %v6597_v58  ;;  %v1028_v19 = vadd.f32 %v1027_v18, %v6620_v63 }
 0x1df   : > { %v1365_v41 = vmax.f32 %v1035_v28, 0.0  ;;  %v1025_v28 = vadd.f32 %v1024_v29, %v6634_v24  ;;  %v1347_v60 = vmax.f32 %v1028_v19, 0.0 }
 0x1e1   : > { %5660 = vmatmul.msk.bf16.gmra.mxu2 %vm968_vm3, %v6604_v62  ;;  %5668 = vmatmul.msk.bf16.gmra.mxu3 %vm968_vm3, %v6604_v62  ;;  %v1033_v62 = vadd.f32 %v1032_v6, %v6589_v54  ;;  %v1366_v6 = vmax.f32 %v1084_v0, 0.0  ;;  %v1074_v0 = vadd.f32 %v1073_v22, %v6634_v24 }
 0x1e3   : > { %v1359_v31 = vmax.f32 %v1033_v62, 0.0 }
 0x1e4   : > { %v1037_v56 = vpop.f32.mrf.mxu2  ;;  %v1086_v48 = vpop.f32.mrf.mxu3 }
 0x1e5   : > { %v1038_v53 = vadd.f32 %v1037_v56, %v6578_v51  ;;  %v1087_v25 = vadd.f32 %v1086_v48, %v6578_v51  ;;  %v1135_v29 = vpop.f32.mrf.mxu0  ;;  %v1184_v62 = vpop.f32.mrf.mxu1 }
 0x1e7   : > { %v1371_v44 = vmax.f32 %v1038_v53, 0.0  ;;  %v1372_v56 = vmax.f32 %v1087_v25, 0.0  ;;  %v1077_v53 = vadd.f32 %v1076_v30, %v6620_v63  ;;  %v1360_v25 = vmax.f32 %v1082_v50, 0.0 }
 0x1e8   : > { %v1072_v50 = vadd.f32 %v6722_v9, %v6599_v61  ;;  %v1341_v30 = vmax.f32 %v1025_v28, 0.0 }
 0x1e9   : > { %v1548_v18 = vpack.c.bf16 %v1366_v6, %v1360_v25 }
 0x1ec   : > { %v1039_v33 = vpop.f32.mrf.mxu2  ;;  %v1088_v32 = vpop.f32.mrf.mxu3 }
 0x1ed   : > { %v1040_v4 = vadd.f32 %v1039_v33, %v6610_v1  ;;  %v1089_v3 = vadd.f32 %v1088_v32, %v6610_v1  ;;  %v1079_v32 = vadd.f32 %v1078_v47, %v6597_v58  ;;  %v1023_v47 = vadd.f32 %v6720_v12, %v6599_v61  ;;  %v1186_v6 = vpop.f32.mrf.mxu1 }
 0x1ee   : > { %v1187_v28 = vadd.f32 %v1186_v6, %v6610_v1 }
 0x1ef   : > { %v1377_v59 = vmax.f32 %v1040_v4, 0.0  ;;  %v1378_v48 = vmax.f32 %v1089_v3, 0.0  ;;  %v1354_v14 = vmax.f32 %v1079_v32, 0.0  ;;  %v1137_v32 = vpop.f32.mrf.mxu0 }
 0x1f0   : > { %v1138_v25 = vadd.f32 %v1137_v32, %v6610_v1  ;;  %v1167_v32 = vadd.f32 %v6718_v20, %v6614_v5 }
 0x1f1   : > { %v1553_v33 = vpack.c.bf16 %v1377_v59, %v1371_v44  ;;  %v1554_v34 = vpack.c.bf16 %v1378_v48, %v1372_v56  ;;  %v1353_v44 = vmax.f32 %v1030_v45, 0.0  ;;  %v1547_v59 = vpack.c.bf16 %v1365_v41, %v1359_v31 }
 0x1f2   : > { %v1342_v31 = vmax.f32 %v1074_v0, 0.0  ;;  %v1335_v56 = vmax.f32 %v1023_v47, 0.0  ;;  %v1336_v48 = vmax.f32 %v1072_v50, 0.0  ;;  %v1379_v0 = vmax.f32 %v1138_v25, 0.0  ;;  %v5940_v50 = vld [vmem:[#allocation3] sm:$0xff] }
 0x1f3   : > { %1943 = vmatpush.bf16.msrb.mxu0 %v1553_v33  ;;  %6004 = vmatpush.bf16.msrb.mxu2 %v1553_v33  ;;  %v1541_v41 = vpack.c.bf16 %v1353_v44, %v1347_v60  ;;  %v1133_v44 = vadd.f32 %v6763_v27, %v6591_v57  ;;  %v1131_v27 = vadd.f32 %v6752_v10, %v6589_v54 }
 0x1f4   : > { %2272 = vmatpush.bf16.msrb.mxu1 %v1554_v34  ;;  %6012 = vmatpush.bf16.msrb.mxu3 %v1554_v34  ;;  %v6772_v3 = vpop.f32.mrf.mxu2  ;;  %v6774_v4 = vpop.f32.mrf.mxu3  ;;  %v1348_v34 = vmax.f32 %v1077_v53, 0.0  ;;  %v1535_v9 = vpack.c.bf16 %v1341_v30, %v1335_v56  ;;  %v1536_v33 = vpack.c.bf16 %v1342_v31, %v1336_v48  ;;  %v1128_v60 = vadd.f32 %v6744_v37, %v6597_v58 }
 0x1f5   : > { %v1175_v10 = vadd.f32 %v6738_v36, %v6620_v63  ;;  %v1361_v37 = vmax.f32 %v1131_v27, 0.0  ;;  %v1121_v48 = vadd.f32 %v6724_v15, %v6599_v61  ;;  %v1116_v15 = vadd.f32 %v6700_v43, %v6612_v2 }
 0x1f6   : > { %v1542_v22 = vpack.c.bf16 %v1354_v14, %v1348_v34  ;;  %v1380_v14 = vmax.f32 %v1187_v28, 0.0  ;;  %v1367_v34 = vmax.f32 %v1133_v44, 0.0  ;;  %v1355_v31 = vmax.f32 %v1128_v60, 0.0  ;;  %v9645_v60 = vld [vmem:[#allocation13_spill] sm:$0xff] }
 0x1f7   : > { %1944 = vmatpush.bf16.msrb.mxu0 %v1547_v59  ;;  %6005 = vmatpush.bf16.msrb.mxu2 %v1547_v59  ;;  %v1182_v59 = vadd.f32 %v6765_v26, %v6591_v57  ;;  %v1180_v26 = vadd.f32 %v6754_v23, %v6589_v54  ;;  %v1126_v23 = vadd.f32 %v6736_v40, %v6620_v63  ;;  %v1332_v27 = vmax.f32 %v1167_v32, 0.0 }
 0x1f8   : > { %2273 = vmatpush.bf16.msrb.mxu1 %v1548_v18  ;;  %6013 = vmatpush.bf16.msrb.mxu3 %v1548_v18  ;;  %v1549_v40 = vpack.c.bf16 %v1367_v34, %v1361_v37  ;;  %v1325_v34 = vmax.f32 %v1116_v15, 0.0 }
 0x1f9   : > { %v1368_v30 = vmax.f32 %v1182_v59, 0.0  ;;  %v9643_v59 = vld [vmem:[#allocation21_spill] sm:$0xff] }
 0x1fb   : > { %1945 = vmatpush.bf16.msrb.mxu0 %v1541_v41  ;;  %6006 = vmatpush.bf16.msrb.mxu2 %v1541_v41  ;;  %v1123_v41 = vadd.f32 %v6732_v52, %v6634_v24  ;;  %v1170_v52 = vadd.f32 %v6726_v16, %v6599_v61  ;;  %v1165_v16 = vadd.f32 %v6702_v8, %v6612_v2  ;;  %v9646_v8 = vld [vmem:[#allocation19_spill] sm:$0xff] }
 0x1fc   : > { %2274 = vmatpush.bf16.msrb.mxu1 %v1542_v22  ;;  %6014 = vmatpush.bf16.msrb.mxu3 %v1542_v22  ;;  %v6782_v12 = vpop.f32.mrf.mxu2  ;;  %v6784_v45 = vpop.f32.mrf.mxu3 }
 0x1fd   : > { %v1343_v6 = vmax.f32 %v1123_v41, 0.0  ;;  %v1338_v44 = vmax.f32 %v1170_v52, 0.0  ;;  %v5975_v41 = vld [vmem:[#allocation3 + $0x118] sm:$0xff] }
 0x1ff   : > { %1946 = vmatpush.bf16.msrb.mxu0 %v1535_v9  ;;  %6007 = vmatpush.bf16.msrb.mxu2 %v1535_v9  ;;  %v1349_v9 = vmax.f32 %v1126_v23, 0.0 }
 0x200   : > { %2275 = vmatpush.bf16.msrb.mxu1 %v1536_v33  ;;  %6015 = vmatpush.bf16.msrb.mxu3 %v1536_v33  ;;  %v1118_v33 = vadd.f32 %v6716_v17, %v6614_v5  ;;  %v1113_v17 = vadd.f32 %v9643_v59, %v6622_v11 }
 0x201   : > { %v1543_v28 = vpack.c.bf16 %v1355_v31, %v1349_v9  ;;  %v9653_v9 = vld [vmem:[#allocation15_spill] sm:$0xff] }
 0x203   : > { %1947 = vmatpush.bf16.msrb.mxu0 %v6712_v46  ;;  %6008 = vmatpush.bf16.msrb.mxu2 %v6712_v46  ;;  %v1136_v46 = vadd.f32 %v1135_v29, %v6578_v51 }
 0x204   : > { %2276 = vmatpush.bf16.msrb.mxu1 %v6714_v49  ;;  %6016 = vmatpush.bf16.msrb.mxu3 %v6714_v49  ;;  %v6790_v19 = vpop.f32.mrf.mxu2  ;;  %v6792_v53 = vpop.f32.mrf.mxu3  ;;  %v1185_v49 = vadd.f32 %v1184_v62, %v6578_v51 }
 0x205   : > { %v1373_v18 = vmax.f32 %v1136_v46, 0.0 }
 0x206   : > { %v1374_v47 = vmax.f32 %v1185_v49, 0.0  ;;  %v1337_v49 = vmax.f32 %v1121_v48, 0.0  ;;  %v9652_v48 = vld [vmem:[#allocation14_spill] sm:$0xff] }
 0x207   : > { %1948 = vmatpush.bf16.msrb.mxu0 %v6696_v7  ;;  %6009 = vmatpush.bf16.msrb.mxu2 %v6696_v7  ;;  %v1555_v29 = vpack.c.bf16 %v1379_v0, %v1373_v18  ;;  %v9644_v0 = vld [vmem:[#allocation22_spill] sm:$0xff] }
 0x208   : > { %2277 = vmatpush.bf16.msrb.mxu1 %v6698_v38  ;;  %6017 = vmatpush.bf16.msrb.mxu3 %v6698_v38  ;;  %v1556_v62 = vpack.c.bf16 %v1380_v14, %v1374_v47  ;;  %v1162_v20 = vadd.f32 %v9644_v0, %v6622_v11  ;;  %v1331_v14 = vmax.f32 %v1118_v33, 0.0 }
 0x20a   : > { %v1320_v31 = vmax.f32 %v1162_v20, 0.0  ;;  %v9657_v20 = vld [vmem:[#allocation9_spill] sm:$0xff] }
 0x20b   : > { %1949 = vmatpush.bf16.msrb.mxu0 %v6676_v21  ;;  %6010 = vmatpush.bf16.msrb.mxu2 %v6676_v21  ;;  %v1177_v21 = vadd.f32 %v6746_v35, %v6597_v58  ;;  %v1362_v35 = vmax.f32 %v1180_v26, 0.0  ;;  %v1537_v26 = vpack.c.bf16 %v1343_v6, %v1337_v49  ;;  %v9654_v6 = vld [vmem:[#allocation10_spill] sm:$0xff] }
 0x20c   : > { %2278 = vmatpush.bf16.msrb.mxu1 %v6678_v55  ;;  %6018 = vmatpush.bf16.msrb.mxu3 %v6678_v55  ;;  %v6810_v7 = vpop.f32.mrf.mxu2  ;;  %v6812_v38 = vpop.f32.mrf.mxu3  ;;  %v5974_v55 = vld [vmem:[#allocation3 + $0x110] sm:$0xff] }
 0x20d   : > { %v1550_v22 = vpack.c.bf16 %v1368_v30, %v1362_v35  ;;  %v1326_v30 = vmax.f32 %v1165_v16, 0.0  ;;  %v5941_v35 = vld [vmem:[#allocation3 + $0x8] sm:$0xff] }
 0x20f   : > { %1950 = vmatpush.bf16.msrb.mxu0 %v6654_v13  ;;  %6011 = vmatpush.bf16.msrb.mxu2 %v6654_v13  ;;  %v1172_v13 = vadd.f32 %v6734_v39, %v6634_v24  ;;  %v1350_v39 = vmax.f32 %v1175_v10, 0.0  ;;  %v9650_v10 = vld [vmem:[#allocation18_spill] sm:$0xff] }
 0x210   : > { %2279 = vmatpush.bf16.msrb.mxu1 %v6656_v42  ;;  %6019 = vmatpush.bf16.msrb.mxu3 %v6656_v42  ;;  %v1356_v42 = vmax.f32 %v1177_v21, 0.0  ;;  %v1111_v21 = vadd.f32 %v9646_v8, %v9645_v60 }
 0x211   : > { %v1344_v25 = vmax.f32 %v1172_v13, 0.0  ;;  %v1319_v13 = vmax.f32 %v1113_v17, 0.0 }
 0x212   : > { %1951 = vmatmul.bf16.vlgmr.msrb.gmra.mxu0 %v5940_v50  ;;  %2121 = vmatmul.bf16.vlgmr.msrb.gmra.mxu2 %v5974_v55  ;;  %v1544_v46 = vpack.c.bf16 %v1356_v42, %v1350_v39  ;;  %v1531_v42 = vpack.c.bf16 %v1331_v14, %v1325_v34  ;;  %v1313_v33 = vmax.f32 %v1111_v21, 0.0  ;;  %v9658_v14 = vld [vmem:[#allocation7_spill] sm:$0xff] }
 0x213   : > { %2601 = vmatpush.bf16.msra.mxu2 %v1555_v29  ;;  %2280 = vmatmul.bf16.vlgmr.msrb.gmra.mxu1 %v5940_v50  ;;  %v1538_v18 = vpack.c.bf16 %v1344_v25, %v1338_v44  ;;  %v9647_v50 = vld [vmem:[#allocation20_spill] sm:$0xff]  ;;  %v9655_v25 = vld [vmem:[#allocation11_spill] sm:$0xff] }
 0x214   : > { %2930 = vmatpush.bf16.msra.mxu3 %v1556_v62  ;;  %v6834_v56 = vpop.f32.mrf.mxu2  ;;  %v6836_v36 = vpop.f32.mrf.mxu3  ;;  %v9648_v29 = vld [vmem:[#allocation16_spill] sm:$0xff]  ;;  %v9649_v62 = vld [vmem:[#allocation17_spill] sm:$0xff]  ;;  %v1525_v44 = vpack.c.bf16 %v1319_v13, %v1313_v33 }
 0x215   : > { %2450 = vmatmul.bf16.vlgmr.msrb.gmra.mxu3 %v5974_v55  ;;  %v1160_v55 = vadd.f32 %v9647_v50, %v9645_v60  ;;  %v1108_v23 = vadd.f32 %v9649_v62, %v9648_v29  ;;  %v1157_v37 = vadd.f32 %v9650_v10, %v9648_v29  ;;  %v5942_v13 = vld [vmem:[#allocation3 + $0x10] sm:$0xff] }
 0x217   : > { %2602 = vmatpush.bf16.msra.mxu2 %v1549_v40  ;;  %v1532_v40 = vpack.c.bf16 %v1332_v27, %v1326_v30  ;;  %v1314_v32 = vmax.f32 %v1160_v55, 0.0  ;;  %v1307_v16 = vmax.f32 %v1108_v23, 0.0  ;;  %v1308_v49 = vmax.f32 %v1157_v37, 0.0 }
 0x218   : > { %2931 = vmatpush.bf16.msra.mxu3 %v1550_v22  ;;  %v9651_v22 = vld [vmem:[#allocation6_spill] sm:$0xff]  ;;  %v1101_v27 = vadd.f32 %v9658_v14, %v9657_v20  ;;  %v5945_v14 = vld [vmem:[#allocation3 + $0x28] sm:$0xff] }
 0x219   : > { %v1106_v52 = vadd.f32 %v9652_v48, %v9651_v22  ;;  %v1155_v39 = vadd.f32 %v9653_v9, %v9651_v22  ;;  %v1526_v59 = vpack.c.bf16 %v1320_v31, %v1314_v32  ;;  %v5976_v31 = vld [vmem:[#allocation3 + $0x120] sm:$0xff]  ;;  %v5943_v9 = vld [vmem:[#allocation3 + $0x18] sm:$0xff] }
 0x21a   : > { %v1289_v62 = vmax.f32 %v1101_v27, 0.0  ;;  %v5979_v27 = vld [vmem:[#allocation3 + $0x138] sm:$0xff] }
 0x21b   : > { %2603 = vmatpush.bf16.msra.mxu2 %v1543_v28  ;;  %v1103_v28 = vadd.f32 %v9655_v25, %v9654_v6  ;;  %v1301_v8 = vmax.f32 %v1106_v52, 0.0  ;;  %v1302_v21 = vmax.f32 %v1155_v39, 0.0  ;;  %v5977_v39 = vld [vmem:[#allocation3 + $0x128] sm:$0xff] }
 0x21c   : > { %2932 = vmatpush.bf16.msra.mxu3 %v1544_v46  ;;  %v6854_v47 = vpop.f32.mrf.mxu2  ;;  %v6856_v43 = vpop.f32.mrf.mxu3  ;;  %v9656_v46 = vld [vmem:[#allocation12_spill] sm:$0xff] }
 0x21d   : > { %v1152_v15 = vadd.f32 %v9656_v46, %v9654_v6  ;;  %v1295_v50 = vmax.f32 %v1103_v28, 0.0  ;;  %v1519_v34 = vpack.c.bf16 %v1307_v16, %v1301_v8  ;;  %v1520_v30 = vpack.c.bf16 %v1308_v49, %v1302_v21  ;;  %v5944_v46 = vld [vmem:[#allocation3 + $0x20] sm:$0xff] }
 0x21f   : > { %2604 = vmatpush.bf16.msra.mxu2 %v1537_v26  ;;  %v9659_v26 = vld [vmem:[#allocation8_spill] sm:$0xff]  ;;  %v1296_v55 = vmax.f32 %v1152_v15, 0.0  ;;  %v1513_v10 = vpack.c.bf16 %v1295_v50, %v1289_v62 }
 0x220   : > { %2933 = vmatpush.bf16.msra.mxu3 %v1538_v18  ;;  %v1150_v18 = vadd.f32 %v9659_v26, %v9657_v20  ;;  %v5978_v15 = vld [vmem:[#allocation3 + $0x130] sm:$0xff] }
 0x222   : > { %1956 = vmatmul.bf16.gmra.mxu0 %v5941_v35  ;;  %2126 = vmatmul.bf16.gmra.mxu2 %v5975_v41  ;;  %v1290_v23 = vmax.f32 %v1150_v18, 0.0 }
 0x223   : > { %2605 = vmatpush.bf16.msra.mxu2 %v1531_v42  ;;  %2285 = vmatmul.bf16.gmra.mxu1 %v5941_v35 }
 0x224   : > { %2934 = vmatpush.bf16.msra.mxu3 %v1532_v40  ;;  %v6874_v17 = vpop.f32.mrf.mxu2  ;;  %v6876_v0 = vpop.f32.mrf.mxu3  ;;  %v1514_v37 = vpack.c.bf16 %v1296_v55, %v1290_v23 }
 0x225   : > { %2455 = vmatmul.bf16.gmra.mxu3 %v5975_v41 }
 0x227   : > { %2606 = vmatpush.bf16.msra.mxu2 %v1525_v44 }
 0x228   : > { %2935 = vmatpush.bf16.msra.mxu3 %v1526_v59 }
 0x22b   : > { %2607 = vmatpush.bf16.msra.mxu2 %v1519_v34 }
 0x22c   : > { %2936 = vmatpush.bf16.msra.mxu3 %v1520_v30  ;;  %v6882_v35 = vpop.f32.mrf.mxu2  ;;  %v6884_v41 = vpop.f32.mrf.mxu3 }
 0x22f   : > { %2608 = vmatpush.bf16.msra.mxu2 %v1513_v10 }
 0x230   : > { %2937 = vmatpush.bf16.msra.mxu3 %v1514_v37 }
 0x232   : > { %1961 = vmatmul.bf16.gmra.mxu0 %v5942_v13  ;;  %2131 = vmatmul.bf16.gmra.mxu2 %v5976_v31 }
 0x233   : > { %2290 = vmatmul.bf16.gmra.mxu1 %v5942_v13  ;;  %v5946_v13 = vld [vmem:[#allocation3 + $0x30] sm:$0xff] }
 0x234   : > { %v6886_v42 = vpop.f32.mrf.mxu2  ;;  %v6888_v40 = vpop.f32.mrf.mxu3 }
 0x235   : > { %2460 = vmatmul.bf16.gmra.mxu3 %v5976_v31  ;;  %v5980_v31 = vld [vmem:[#allocation3 + $0x140] sm:$0xff] }
 0x23c   : > { %v1220_v48 = vpop.f32.mrf.mxu2  ;;  %v1269_v52 = vpop.f32.mrf.mxu3 }
 0x242   : > { %1966 = vmatmul.bf16.gmra.mxu0 %v5943_v9  ;;  %2136 = vmatmul.bf16.gmra.mxu2 %v5977_v39 }
 0x243   : > { %2295 = vmatmul.bf16.gmra.mxu1 %v5943_v9 }
 0x244   : > { %v1223_v33 = vpop.f32.mrf.mxu2  ;;  %v1272_v32 = vpop.f32.mrf.mxu3 }
 0x245   : > { %2465 = vmatmul.bf16.gmra.mxu3 %v5977_v39 }
 0x24c   : > { %v1225_v25 = vpop.f32.mrf.mxu2  ;;  %v1274_v28 = vpop.f32.mrf.mxu3 }
 0x252   : > { %1971 = vmatmul.bf16.gmra.mxu0 %v5944_v46  ;;  %2141 = vmatmul.bf16.gmra.mxu2 %v5978_v15 }
 0x253   : > { %2300 = vmatmul.bf16.gmra.mxu1 %v5944_v46 }
 0x254   : > { %v1228_v16 = vpop.f32.mrf.mxu2  ;;  %v1277_v49 = vpop.f32.mrf.mxu3 }
 0x255   : > { %2470 = vmatmul.bf16.gmra.mxu3 %v5978_v15  ;;  %v1229_v10 = vadd.f32 %v1228_v16, %v6589_v54  ;;  %v1278_v37 = vadd.f32 %v1277_v49, %v6589_v54  ;;  %v1226_v15 = vadd.f32 %v1225_v25, %v6597_v58  ;;  %v1273_v54 = vadd.f32 %v1272_v32, %v6620_v63 }
 0x256   : > { %v1270_v25 = vadd.f32 %v1269_v52, %v6634_v24 }
 0x257   : > { %v1363_v16 = vmax.f32 %v1229_v10, 0.0  ;;  %v1364_v49 = vmax.f32 %v1278_v37, 0.0  ;;  %v1352_v32 = vmax.f32 %v1273_v54, 0.0  ;;  %v5947_v37 = vld [vmem:[#allocation3 + $0x38] sm:$0xff] }
 0x25c   : > { %v1230_v44 = vpop.f32.mrf.mxu2  ;;  %v1279_v59 = vpop.f32.mrf.mxu3 }
 0x25d   : > { %v1231_v34 = vadd.f32 %v1230_v44, %v6591_v57  ;;  %v1280_v30 = vadd.f32 %v1279_v59, %v6591_v57  ;;  %v1275_v44 = vadd.f32 %v1274_v28, %v6597_v58  ;;  %v1357_v58 = vmax.f32 %v1226_v15, 0.0 }
 0x25f   : > { %v1370_v57 = vmax.f32 %v1280_v30, 0.0  ;;  %v1358_v28 = vmax.f32 %v1275_v44, 0.0 }
 0x262   : > { %1976 = vmatmul.bf16.gmra.mxu0 %v5945_v14  ;;  %2146 = vmatmul.bf16.gmra.mxu2 %v5979_v27 }
 0x263   : > { %2305 = vmatmul.bf16.gmra.mxu1 %v5945_v14  ;;  %v1369_v14 = vmax.f32 %v1231_v34, 0.0  ;;  %v1546_v34 = vpack.c.bf16 %v1358_v28, %v1352_v32  ;;  %v5949_v32 = vld [vmem:[#allocation3 + $0x48] sm:$0xff] }
 0x264   : > { %v1233_v26 = vpop.f32.mrf.mxu2  ;;  %v1282_v18 = vpop.f32.mrf.mxu3 }
 0x265   : > { %2475 = vmatmul.bf16.gmra.mxu3 %v5979_v27  ;;  %v1234_v8 = vadd.f32 %v1233_v26, %v6578_v51  ;;  %v1283_v21 = vadd.f32 %v1282_v18, %v6578_v51  ;;  %v1221_v26 = vadd.f32 %v1220_v48, %v6634_v24  ;;  %v1551_v18 = vpack.c.bf16 %v1369_v14, %v1363_v16 }
 0x266   : > { %v1216_v48 = vadd.f32 %v6882_v35, %v6614_v5  ;;  %v1265_v24 = vadd.f32 %v6884_v41, %v6614_v5  ;;  %v1211_v35 = vadd.f32 %v6854_v47, %v6622_v11  ;;  %v1260_v5 = vadd.f32 %v6856_v43, %v6622_v11 }
 0x267   : > { %v1375_v9 = vmax.f32 %v1234_v8, 0.0  ;;  %v1376_v39 = vmax.f32 %v1283_v21, 0.0  ;;  %v1552_v8 = vpack.c.bf16 %v1370_v57, %v1364_v49  ;;  %v1219_v21 = vadd.f32 %v6886_v42, %v6599_v61  ;;  %v5948_v49 = vld [vmem:[#allocation3 + $0x40] sm:$0xff] }
 0x268   : > { %v1345_v52 = vmax.f32 %v1221_v26, 0.0  ;;  %v1214_v42 = vadd.f32 %v6874_v17, %v6612_v2  ;;  %v1333_v41 = vmax.f32 %v1216_v48, 0.0  ;;  %v1209_v17 = vadd.f32 %v6834_v56, %v9645_v60  ;;  %v5982_v26 = vld [vmem:[#allocation3 + $0x150] sm:$0xff]  ;;  %v5983_v48 = vld [vmem:[#allocation3 + $0x158] sm:$0xff] }
 0x269   : > { %v1206_v47 = vadd.f32 %v6810_v7, %v9648_v29  ;;  %v1255_v11 = vadd.f32 %v6812_v38, %v9648_v29  ;;  %v1321_v43 = vmax.f32 %v1211_v35, 0.0  ;;  %v1204_v56 = vadd.f32 %v6790_v19, %v9651_v22  ;;  %v5989_v35 = vld [vmem:[#allocation3 + $0x188] sm:$0xff] }
 0x26a   : > { %v1201_v7 = vadd.f32 %v6782_v12, %v9654_v6  ;;  %v1250_v38 = vadd.f32 %v6784_v45, %v9654_v6  ;;  %v1199_v19 = vadd.f32 %v6772_v3, %v9657_v20 }
 0x26b   : > { %v1309_v29 = vmax.f32 %v1206_v47, 0.0  ;;  %v1310_v15 = vmax.f32 %v1255_v11, 0.0  ;;  %v5955_v47 = vld [vmem:[#allocation3 + $0x78] sm:$0xff] }
 0x26c   : > { %v1235_v50 = vpop.f32.mrf.mxu2  ;;  %v1284_v55 = vpop.f32.mrf.mxu3  ;;  %v1297_v12 = vmax.f32 %v1201_v7, 0.0  ;;  %v1291_v6 = vmax.f32 %v1199_v19, 0.0  ;;  %v5956_v7 = vld [vmem:[#allocation3 + $0x80] sm:$0xff] }
 0x26d   : > { %v1236_v62 = vadd.f32 %v1235_v50, %v6610_v1  ;;  %v1285_v23 = vadd.f32 %v1284_v55, %v6610_v1  ;;  %v1224_v1 = vadd.f32 %v1223_v33, %v6620_v63  ;;  %v1268_v63 = vadd.f32 %v6888_v40, %v6599_v61 }
 0x26e   : > { %v1346_v50 = vmax.f32 %v1270_v25, 0.0  ;;  %v1263_v61 = vadd.f32 %v6876_v0, %v6612_v2  ;;  %v1339_v40 = vmax.f32 %v1219_v21, 0.0  ;;  %v1258_v2 = vadd.f32 %v6836_v36, %v9645_v60 }
 0x26f   : > { %v1381_v46 = vmax.f32 %v1236_v62, 0.0  ;;  %v1382_v51 = vmax.f32 %v1285_v23, 0.0  ;;  %v1351_v33 = vmax.f32 %v1224_v1, 0.0  ;;  %v1340_v30 = vmax.f32 %v1268_v63, 0.0 }
 0x270   : > { %v1334_v62 = vmax.f32 %v1265_v24, 0.0  ;;  %v1539_v23 = vpack.c.bf16 %v1345_v52, %v1339_v40  ;;  %v1327_v0 = vmax.f32 %v1214_v42, 0.0  ;;  %v1253_v36 = vadd.f32 %v6792_v53, %v9651_v22 }
 0x271   : > { %v1557_v59 = vpack.c.bf16 %v1381_v46, %v1375_v9  ;;  %v1558_v27 = vpack.c.bf16 %v1382_v51, %v1376_v39  ;;  %v1545_v55 = vpack.c.bf16 %v1357_v58, %v1351_v33  ;;  %v1540_v10 = vpack.c.bf16 %v1346_v50, %v1340_v30 }
 0x272   : > { %1981 = vmatmul.bf16.gmra.mxu0 %v5946_v13  ;;  %2151 = vmatmul.bf16.gmra.mxu2 %v5980_v31  ;;  %v1322_v9 = vmax.f32 %v1260_v5, 0.0  ;;  %v1533_v39 = vpack.c.bf16 %v1333_v41, %v1327_v0  ;;  %v1315_v60 = vmax.f32 %v1209_v17, 0.0  ;;  %v1316_v51 = vmax.f32 %v1258_v2, 0.0 }
 0x273   : > { %3259 = vmatpush.bf16.msra.mxu0 %v1557_v59  ;;  %3588 = vmatpush.bf16.msra.mxu1 %v1558_v27  ;;  %v1248_v53 = vadd.f32 %v6774_v4, %v9657_v20  ;;  %v1303_v22 = vmax.f32 %v1204_v56, 0.0  ;;  %v1304_v57 = vmax.f32 %v1253_v36, 0.0  ;;  %v1298_v59 = vmax.f32 %v1250_v38, 0.0  ;;  %v5985_v56 = vld [vmem:[#allocation3 + $0x168] sm:$0xff] }
 0x274   : > { %2310 = vmatmul.bf16.gmra.mxu1 %v5946_v13  ;;  %v5981_v13 = vld [vmem:[#allocation3 + $0x148] sm:$0xff]  ;;  %v1527_v44 = vpack.c.bf16 %v1321_v43, %v1315_v60  ;;  %v1528_v14 = vpack.c.bf16 %v1322_v9, %v1316_v51  ;;  %v1515_v54 = vpack.c.bf16 %v1297_v12, %v1291_v6  ;;  %v5986_v12 = vld [vmem:[#allocation3 + $0x170] sm:$0xff] }
 0x275   : > { %2480 = vmatmul.bf16.gmra.mxu3 %v5980_v31  ;;  %v1328_v31 = vmax.f32 %v1263_v61, 0.0  ;;  %v1521_v27 = vpack.c.bf16 %v1309_v29, %v1303_v22  ;;  %v1522_v45 = vpack.c.bf16 %v1310_v15, %v1304_v57  ;;  %v1292_v1 = vmax.f32 %v1248_v53, 0.0  ;;  %v5952_v57 = vld [vmem:[#allocation3 + $0x60] sm:$0xff] }
 0x277   : > { %3260 = vmatpush.bf16.msra.mxu0 %v1551_v18  ;;  %3589 = vmatpush.bf16.msra.mxu1 %v1552_v8  ;;  %v1534_v46 = vpack.c.bf16 %v1334_v62, %v1328_v31  ;;  %v1516_v16 = vpack.c.bf16 %v1298_v59, %v1292_v1  ;;  %v5950_v62 = vld [vmem:[#allocation3 + $0x50] sm:$0xff] }
 0x27b   : > { %3261 = vmatpush.bf16.msra.mxu0 %v1545_v55  ;;  %3590 = vmatpush.bf16.msra.mxu1 %v1546_v34 }
 0x27f   : > { %3262 = vmatpush.bf16.msra.mxu0 %v1539_v23  ;;  %3591 = vmatpush.bf16.msra.mxu1 %v1540_v10  ;;  %v5984_v23 = vld [vmem:[#allocation3 + $0x160] sm:$0xff] }
 0x282   : > { %1986 = vmatmul.bf16.gmra.mxu0 %v5947_v37  ;;  %2156 = vmatmul.bf16.gmra.mxu2 %v5981_v13 }
 0x283   : > { %3263 = vmatpush.bf16.msra.mxu0 %v1533_v39  ;;  %3592 = vmatpush.bf16.msra.mxu1 %v1534_v46  ;;  %v5951_v46 = vld [vmem:[#allocation3 + $0x58] sm:$0xff] }
 0x284   : > { %2315 = vmatmul.bf16.gmra.mxu1 %v5947_v37 }
 0x285   : > { %2485 = vmatmul.bf16.gmra.mxu3 %v5981_v13 }
 0x287   : > { %3264 = vmatpush.bf16.msra.mxu0 %v1527_v44  ;;  %3593 = vmatpush.bf16.msra.mxu1 %v1528_v14 }
 0x28b   : > { %3265 = vmatpush.bf16.msra.mxu0 %v1521_v27  ;;  %3594 = vmatpush.bf16.msra.mxu1 %v1522_v45 }
 0x28f   : > { %v6940_v3 = vpop.f32.mrf.mxu0  ;;  %3266 = vmatpush.bf16.msra.mxu0 %v1515_v54  ;;  %3595 = vmatpush.bf16.msra.mxu1 %v1516_v16 }
 0x290   : > { %v6942_v4 = vpop.f32.mrf.mxu1 }
 0x292   : > { %1991 = vmatmul.bf16.gmra.mxu0 %v5948_v49  ;;  %2161 = vmatmul.bf16.gmra.mxu2 %v5982_v26 }
 0x294   : > { %2320 = vmatmul.bf16.gmra.mxu1 %v5948_v49 }
 0x295   : > { %2490 = vmatmul.bf16.gmra.mxu3 %v5982_v26  ;;  %v6946_v25 = vpop.f32.mrf.mxu2 }
 0x296   : > { %9660 = vst [vmem:[#allocation21_spill] sm:$0xff] %v6946_v25  ;;  %v5963_v25 = vld [vmem:[#allocation3 + $0xb8] sm:$0xff] }
 0x297   : > { %v6950_v28 = vpop.f32.mrf.mxu0 }
 0x298   : > { %v6948_v58 = vpop.f32.mrf.mxu3  ;;  %v6954_v8 = vpop.f32.mrf.mxu1 }
 0x299   : > { %9661 = vst [vmem:[#allocation22_spill] sm:$0xff] %v6948_v58 }
 0x29d   : > { %v6958_v63 = vpop.f32.mrf.mxu2 }
 0x29e   : > { %9662 = vst [vmem:[#allocation13_spill] sm:$0xff] %v6958_v63 }
 0x29f   : > { %v6962_v24 = vpop.f32.mrf.mxu0 }
 0x2a0   : > { %v6960_v33 = vpop.f32.mrf.mxu3  ;;  %v6966_v50 = vpop.f32.mrf.mxu1 }
 0x2a1   : > { %9663 = vst [vmem:[#allocation19_spill] sm:$0xff] %v6960_v33 }
 0x2a2   : > { %1996 = vmatmul.bf16.gmra.mxu0 %v5949_v32  ;;  %2166 = vmatmul.bf16.gmra.mxu2 %v5983_v48 }
 0x2a4   : > { %2325 = vmatmul.bf16.gmra.mxu1 %v5949_v32 }
 0x2a5   : > { %2495 = vmatmul.bf16.gmra.mxu3 %v5983_v48  ;;  %v6970_v34 = vpop.f32.mrf.mxu2 }
 0x2a6   : > { %9664 = vst [vmem:[#allocation20_spill] sm:$0xff] %v6970_v34  ;;  %v5962_v34 = vld [vmem:[#allocation3 + $0xb0] sm:$0xff] }
 0x2a7   : > { %v6974_v61 = vpop.f32.mrf.mxu0 }
 0x2a8   : > { %v6972_v42 = vpop.f32.mrf.mxu3  ;;  %v6978_v30 = vpop.f32.mrf.mxu1 }
 0x2a9   : > { %9665 = vst [vmem:[#allocation16_spill] sm:$0xff] %v6972_v42 }
 0x2ad   : > { %v6982_v5 = vpop.f32.mrf.mxu2 }
 0x2ae   : > { %9666 = vst [vmem:[#allocation17_spill] sm:$0xff] %v6982_v5 }
 0x2af   : > { %v6986_v10 = vpop.f32.mrf.mxu0 }
 0x2b0   : > { %v6984_v41 = vpop.f32.mrf.mxu3  ;;  %v6990_v13 = vpop.f32.mrf.mxu1 }
 0x2b1   : > { %9667 = vst [vmem:[#allocation18_spill] sm:$0xff] %v6984_v41 }
 0x2b2   : > { %2001 = vmatmul.bf16.gmra.mxu0 %v5950_v62  ;;  %2171 = vmatmul.bf16.gmra.mxu2 %v5984_v23 }
 0x2b4   : > { %2330 = vmatmul.bf16.gmra.mxu1 %v5950_v62 }
 0x2b5   : > { %2500 = vmatmul.bf16.gmra.mxu3 %v5984_v23  ;;  %v6994_v2 = vpop.f32.mrf.mxu2  ;;  %v5953_v23 = vld [vmem:[#allocation3 + $0x68] sm:$0xff] }
 0x2b6   : > { %9668 = vst [vmem:[#allocation6_spill] sm:$0xff] %v6994_v2  ;;  %v5961_v2 = vld [vmem:[#allocation3 + $0xa8] sm:$0xff] }
 0x2b7   : > { %v6998_v31 = vpop.f32.mrf.mxu0 }
 0x2b8   : > { %v6996_v0 = vpop.f32.mrf.mxu3  ;;  %v7002_v11 = vpop.f32.mrf.mxu1 }
 0x2b9   : > { %9669 = vst [vmem:[#allocation14_spill] sm:$0xff] %v6996_v0 }
 0x2bd   : > { %v7006_v9 = vpop.f32.mrf.mxu2 }
 0x2be   : > { %9670 = vst [vmem:[#allocation15_spill] sm:$0xff] %v7006_v9 }
 0x2bf   : > { %v7010_v36 = vpop.f32.mrf.mxu0 }
 0x2c0   : > { %v7008_v39 = vpop.f32.mrf.mxu3  ;;  %v7014_v51 = vpop.f32.mrf.mxu1 }
 0x2c1   : > { %9671 = vst [vmem:[#allocation10_spill] sm:$0xff] %v7008_v39 }
 0x2c2   : > { %2006 = vmatmul.bf16.gmra.mxu0 %v5951_v46  ;;  %2176 = vmatmul.bf16.gmra.mxu2 %v5985_v56 }
 0x2c4   : > { %2335 = vmatmul.bf16.gmra.mxu1 %v5951_v46  ;;  %v5987_v46 = vld [vmem:[#allocation3 + $0x178] sm:$0xff] }
 0x2c5   : > { %2505 = vmatmul.bf16.gmra.mxu3 %v5985_v56  ;;  %v7018_v38 = vpop.f32.mrf.mxu2 }
 0x2c6   : > { %9672 = vst [vmem:[#allocation11_spill] sm:$0xff] %v7018_v38  ;;  %v5960_v38 = vld [vmem:[#allocation3 + $0xa0] sm:$0xff] }
 0x2c7   : > { %v7022_v15 = vpop.f32.mrf.mxu0 }
 0x2c8   : > { %v7020_v29 = vpop.f32.mrf.mxu3  ;;  %v7026_v14 = vpop.f32.mrf.mxu1 }
 0x2c9   : > { %9673 = vst [vmem:[#allocation12_spill] sm:$0xff] %v7020_v29 }
 0x2cd   : > { %v7030_v53 = vpop.f32.mrf.mxu2 }
 0x2ce   : > { %9674 = vst [vmem:[#allocation9_spill] sm:$0xff] %v7030_v53 }
 0x2cf   : > { %v7034_v59 = vpop.f32.mrf.mxu0 }
 0x2d0   : > { %v7032_v22 = vpop.f32.mrf.mxu3  ;;  %v7038_v45 = vpop.f32.mrf.mxu1 }
 0x2d1   : > { %9675 = vst [vmem:[#allocation7_spill] sm:$0xff] %v7032_v22 }
 0x2d2   : > { %2011 = vmatmul.bf16.gmra.mxu0 %v5952_v57  ;;  %2181 = vmatmul.bf16.gmra.mxu2 %v5986_v12 }
 0x2d4   : > { %2340 = vmatmul.bf16.gmra.mxu1 %v5952_v57 }
 0x2d5   : > { %2510 = vmatmul.bf16.gmra.mxu3 %v5986_v12  ;;  %v7042_v1 = vpop.f32.mrf.mxu2 }
 0x2d6   : > { %9676 = vst [vmem:[#allocation8_spill] sm:$0xff] %v7042_v1  ;;  %v5959_v1 = vld [vmem:[#allocation3 + $0x98] sm:$0xff] }
 0x2d7   : > { %v7046_v16 = vpop.f32.mrf.mxu0 }
 0x2d8   : > { %v7044_v54 = vpop.f32.mrf.mxu3  ;;  %v7050_v26 = vpop.f32.mrf.mxu1 }
 0x2d9   : > { %9677 = vst [vmem:[#allocation23_spill] sm:$0xff] %v7044_v54 }
 0x2dd   : > { %v7054_v48 = vpop.f32.mrf.mxu2 }
 0x2de   : > { %9678 = vst [vmem:[#allocation24_spill] sm:$0xff] %v7054_v48 }
 0x2df   : > { %v7058_v56 = vpop.f32.mrf.mxu0 }
 0x2e0   : > { %v7056_v62 = vpop.f32.mrf.mxu3  ;;  %v7062_v12 = vpop.f32.mrf.mxu1 }
 0x2e1   : > { %9679 = vst [vmem:[#allocation25_spill] sm:$0xff] %v7056_v62 }
 0x2e2   : > { %2016 = vmatmul.bf16.gmra.mxu0 %v5953_v23  ;;  %2186 = vmatmul.bf16.gmra.mxu2 %v5987_v46 }
 0x2e4   : > { %2345 = vmatmul.bf16.gmra.mxu1 %v5953_v23  ;;  %v5954_v23 = vld [vmem:[#allocation3 + $0x70] sm:$0xff] }
 0x2e5   : > { %2515 = vmatmul.bf16.gmra.mxu3 %v5987_v46  ;;  %v7066_v27 = vpop.f32.mrf.mxu2  ;;  %v5988_v46 = vld [vmem:[#allocation3 + $0x180] sm:$0xff] }
 0x2e6   : > { %9680 = vst [vmem:[#allocation26_spill] sm:$0xff] %v7066_v27  ;;  %v5958_v27 = vld [vmem:[#allocation3 + $0x90] sm:$0xff] }
 0x2e7   : > { %v7070_v60 = vpop.f32.mrf.mxu0 }
 0x2e8   : > { %v7068_v44 = vpop.f32.mrf.mxu3  ;;  %v7074_v37 = vpop.f32.mrf.mxu1 }
 0x2e9   : > { %9681 = vst [vmem:[#allocation27_spill] sm:$0xff] %v7068_v44 }
 0x2ed   : > { %v7078_v40 = vpop.f32.mrf.mxu2 }
 0x2ee   : > { %9682 = vst [vmem:[#allocation28_spill] sm:$0xff] %v7078_v40 }
 0x2ef   : > { %v7082_v18 = vpop.f32.mrf.mxu0 }
 0x2f0   : > { %v7080_v52 = vpop.f32.mrf.mxu3 }
 0x2f1   : > { %9683 = vst [vmem:[#allocation29_spill] sm:$0xff] %v7080_v52  ;;  %v7086_v32 = vpop.f32.mrf.mxu1 }
 0x2f2   : > { %2021 = vmatmul.bf16.gmra.mxu0 %v5954_v23  ;;  %2191 = vmatmul.bf16.gmra.mxu2 %v5988_v46 }
 0x2f4   : > { %2350 = vmatmul.bf16.gmra.mxu1 %v5954_v23 }
 0x2f5   : > { %2520 = vmatmul.bf16.gmra.mxu3 %v5988_v46  ;;  %v7090_v57 = vpop.f32.mrf.mxu2 }
 0x2f6   : > { %9684 = vst [vmem:[#allocation30_spill] sm:$0xff] %v7090_v57  ;;  %v5957_v57 = vld [vmem:[#allocation3 + $0x88] sm:$0xff] }
 0x2f7   : > { %v7092_v6 = vpop.f32.mrf.mxu0 }
 0x2f8   : > { %v7094_v19 = vpop.f32.mrf.mxu3 }
 0x2f9   : > { %9685 = vst [vmem:[#allocation31_spill] sm:$0xff] %v7094_v19  ;;  %v7098_v43 = vpop.f32.mrf.mxu1 }
 0x2fd   : > { %v7102_v17 = vpop.f32.mrf.mxu2 }
 0x2fe   : > { %9686 = vst [vmem:[#allocation32_spill] sm:$0xff] %v7102_v17  ;;  %v5990_v17 = vld [vmem:[#allocation3 + $0x190] sm:$0xff] }
 0x2ff   : > { %v7104_v23 = vpop.f32.mrf.mxu0 }
 0x300   : > { %v7106_v46 = vpop.f32.mrf.mxu3 }
 0x301   : > { %9687 = vst [vmem:[#allocation33_spill] sm:$0xff] %v7106_v46  ;;  %v7110_v21 = vpop.f32.mrf.mxu1 }
 0x302   : > { %2026 = vmatmul.bf16.gmra.mxu0 %v5955_v47  ;;  %2196 = vmatmul.bf16.gmra.mxu2 %v5989_v35 }
 0x304   : > { %2355 = vmatmul.bf16.gmra.mxu1 %v5955_v47 }
 0x305   : > { %2525 = vmatmul.bf16.gmra.mxu3 %v5989_v35  ;;  %v7114_v49 = vpop.f32.mrf.mxu2 }
 0x306   : > { %9688 = vst [vmem:[#allocation34_spill] sm:$0xff] %v7114_v49 }
 0x307   : > { %v7116_v20 = vpop.f32.mrf.mxu0 }
 0x308   : > { %v7118_v19 = vpop.f32.mrf.mxu3 }
 0x309   : > { %9689 = vst [vmem:[#allocation35_spill] sm:$0xff] %v7118_v19  ;;  %v7122_v52 = vpop.f32.mrf.mxu1 }
 0x30a   : > { %9690 = vst [vmem:[#allocation36_spill] sm:$0xff] %v7122_v52  ;;  %v7798_v52 = vld [vmem:[#allocation3 + $0x60] sm:$0xff] }
 0x30d   : > { %v7126_v46 = vpop.f32.mrf.mxu2 }
 0x30e   : > { %9691 = vst [vmem:[#allocation37_spill] sm:$0xff] %v7126_v46  ;;  %v5991_v46 = vld [vmem:[#allocation3 + $0x198] sm:$0xff] }
 0x30f   : > { %v7128_v47 = vpop.f32.mrf.mxu0 }
 0x310   : > { %9692 = vst [vmem:[#allocation38_spill] sm:$0xff] %v7128_v47  ;;  %v7130_v35 = vpop.f32.mrf.mxu3 }
 0x311   : > { %9693 = vst [vmem:[#allocation39_spill] sm:$0xff] %v7130_v35  ;;  %v7134_v44 = vpop.f32.mrf.mxu1 }
 0x312   : > { %9694 = vst [vmem:[#allocation40_spill] sm:$0xff] %v7134_v44  ;;  %2031 = vmatmul.bf16.gmra.mxu0 %v5956_v7  ;;  %2201 = vmatmul.bf16.gmra.mxu2 %v5990_v17 }
 0x314   : > { %2360 = vmatmul.bf16.gmra.mxu1 %v5956_v7 }
 0x315   : > { %2530 = vmatmul.bf16.gmra.mxu3 %v5990_v17  ;;  %v7138_v55 = vpop.f32.mrf.mxu2 }
 0x316   : > { %9695 = vst [vmem:[#allocation41_spill] sm:$0xff] %v7138_v55 }
 0x317   : > { %v7140_v19 = vpop.f32.mrf.mxu0 }
 0x318   : > { %9696 = vst [vmem:[#allocation42_spill] sm:$0xff] %v7140_v19  ;;  %v7142_v49 = vpop.f32.mrf.mxu3  ;;  %v9884_v19 = vmax.f32 %v6950_v28, %v6954_v8 }
 0x319   : > { %9697 = vst [vmem:[#allocation43_spill] sm:$0xff] %v7142_v49  ;;  %v7146_v62 = vpop.f32.mrf.mxu1 }
 0x31a   : > { %9698 = vst [vmem:[#allocation44_spill] sm:$0xff] %v7146_v62 }
 0x31d   : > { %v7150_v35 = vpop.f32.mrf.mxu2 }
 0x31e   : > { %9699 = vst [vmem:[#allocation45_spill] sm:$0xff] %v7150_v35  ;;  %v5992_v35 = vld [vmem:[#allocation3 + $0x1a0] sm:$0xff] }
 0x31f   : > { %v7152_v7 = vpop.f32.mrf.mxu0 }
 0x320   : > { %9700 = vst [vmem:[#allocation46_spill] sm:$0xff] %v7152_v7  ;;  %v7154_v17 = vpop.f32.mrf.mxu3 }
 0x321   : > { %9701 = vst [vmem:[#allocation47_spill] sm:$0xff] %v7154_v17  ;;  %v7158_v54 = vpop.f32.mrf.mxu1 }
 0x322   : > { %9702 = vst [vmem:[#allocation48_spill] sm:$0xff] %v7158_v54  ;;  %2036 = vmatmul.bf16.gmra.mxu0 %v5957_v57  ;;  %2206 = vmatmul.bf16.gmra.mxu2 %v5991_v46 }
 0x324   : > { %2365 = vmatmul.bf16.gmra.mxu1 %v5957_v57 }
 0x325   : > { %2535 = vmatmul.bf16.gmra.mxu3 %v5991_v46  ;;  %v7162_v40 = vpop.f32.mrf.mxu2 }
 0x326   : > { %9703 = vst [vmem:[#allocation49_spill] sm:$0xff] %v7162_v40 }
 0x327   : > { %v7164_v49 = vpop.f32.mrf.mxu0 }
 0x328   : > { %9704 = vst [vmem:[#allocation50_spill] sm:$0xff] %v7164_v49  ;;  %v7166_v55 = vpop.f32.mrf.mxu3 }
 0x329   : > { %9705 = vst [vmem:[#allocation51_spill] sm:$0xff] %v7166_v55  ;;  %v7170_v22 = vpop.f32.mrf.mxu1 }
 0x32a   : > { %9706 = vst [vmem:[#allocation52_spill] sm:$0xff] %v7170_v22 }
 0x32d   : > { %v7174_v17 = vpop.f32.mrf.mxu2 }
 0x32e   : > { %9707 = vst [vmem:[#allocation53_spill] sm:$0xff] %v7174_v17  ;;  %v5993_v17 = vld [vmem:[#allocation3 + $0x1a8] sm:$0xff] }
 0x32f   : > { %v7176_v57 = vpop.f32.mrf.mxu0 }
 0x330   : > { %9708 = vst [vmem:[#allocation54_spill] sm:$0xff] %v7176_v57  ;;  %v7178_v46 = vpop.f32.mrf.mxu3 }
 0x331   : > { %9709 = vst [vmem:[#allocation55_spill] sm:$0xff] %v7178_v46  ;;  %v7182_v29 = vpop.f32.mrf.mxu1 }
 0x332   : > { %9710 = vst [vmem:[#allocation56_spill] sm:$0xff] %v7182_v29  ;;  %2041 = vmatmul.bf16.gmra.mxu0 %v5958_v27  ;;  %2211 = vmatmul.bf16.gmra.mxu2 %v5992_v35  ;;  %v7772_v29 = vld [vmem:[#allocation3 + $0x58] sm:$0xff] }
 0x334   : > { %2370 = vmatmul.bf16.gmra.mxu1 %v5958_v27 }
 0x335   : > { %2540 = vmatmul.bf16.gmra.mxu3 %v5992_v35  ;;  %v7186_v48 = vpop.f32.mrf.mxu2 }
 0x336   : > { %9711 = vst [vmem:[#allocation57_spill] sm:$0xff] %v7186_v48 }
 0x337   : > { %v7188_v55 = vpop.f32.mrf.mxu0 }
 0x338   : > { %9712 = vst [vmem:[#allocation58_spill] sm:$0xff] %v7188_v55  ;;  %v7190_v40 = vpop.f32.mrf.mxu3 }
 0x339   : > { %9713 = vst [vmem:[#allocation59_spill] sm:$0xff] %v7190_v40  ;;  %v7194_v39 = vpop.f32.mrf.mxu1 }
 0x33a   : > { %9714 = vst [vmem:[#allocation60_spill] sm:$0xff] %v7194_v39 }
 0x33d   : > { %v7198_v46 = vpop.f32.mrf.mxu2 }
 0x33e   : > { %9715 = vst [vmem:[#allocation61_spill] sm:$0xff] %v7198_v46  ;;  %v5994_v46 = vld [vmem:[#allocation3 + $0x1b0] sm:$0xff] }
 0x33f   : > { %v7200_v27 = vpop.f32.mrf.mxu0 }
 0x340   : > { %9716 = vst [vmem:[#allocation62_spill] sm:$0xff] %v7200_v27  ;;  %v7202_v35 = vpop.f32.mrf.mxu3 }
 0x341   : > { %9717 = vst [vmem:[#allocation63_spill] sm:$0xff] %v7202_v35  ;;  %v7206_v0 = vpop.f32.mrf.mxu1 }
 0x342   : > { %9718 = vst [vmem:[#allocation64_spill] sm:$0xff] %v7206_v0  ;;  %2046 = vmatmul.bf16.gmra.mxu0 %v5959_v1  ;;  %2216 = vmatmul.bf16.gmra.mxu2 %v5993_v17 }
 0x344   : > { %2375 = vmatmul.bf16.gmra.mxu1 %v5959_v1 }
 0x345   : > { %2545 = vmatmul.bf16.gmra.mxu3 %v5993_v17  ;;  %v7210_v53 = vpop.f32.mrf.mxu2 }
 0x346   : > { %9719 = vst [vmem:[#allocation65_spill] sm:$0xff] %v7210_v53 }
 0x347   : > { %v7212_v40 = vpop.f32.mrf.mxu0 }
 0x348   : > { %9720 = vst [vmem:[#allocation66_spill] sm:$0xff] %v7212_v40  ;;  %v7214_v48 = vpop.f32.mrf.mxu3 }
 0x349   : > { %9721 = vst [vmem:[#allocation67_spill] sm:$0xff] %v7214_v48  ;;  %v7218_v41 = vpop.f32.mrf.mxu1 }
 0x34a   : > { %9722 = vst [vmem:[#allocation68_spill] sm:$0xff] %v7218_v41 }
 0x34d   : > { %v7222_v35 = vpop.f32.mrf.mxu2 }
 0x34e   : > { %9723 = vst [vmem:[#allocation69_spill] sm:$0xff] %v7222_v35  ;;  %v5995_v35 = vld [vmem:[#allocation3 + $0x1b8] sm:$0xff] }
 0x34f   : > { %v7224_v1 = vpop.f32.mrf.mxu0 }
 0x350   : > { %9724 = vst [vmem:[#allocation70_spill] sm:$0xff] %v7224_v1  ;;  %v7226_v17 = vpop.f32.mrf.mxu3 }
 0x351   : > { %9725 = vst [vmem:[#allocation71_spill] sm:$0xff] %v7226_v17  ;;  %v7230_v42 = vpop.f32.mrf.mxu1 }
 0x352   : > { %9726 = vst [vmem:[#allocation72_spill] sm:$0xff] %v7230_v42  ;;  %2051 = vmatmul.bf16.gmra.mxu0 %v5960_v38  ;;  %2221 = vmatmul.bf16.gmra.mxu2 %v5994_v46 }
 0x354   : > { %2380 = vmatmul.bf16.gmra.mxu1 %v5960_v38 }
 0x355   : > { %2550 = vmatmul.bf16.gmra.mxu3 %v5994_v46  ;;  %v7234_v9 = vpop.f32.mrf.mxu2 }
 0x356   : > { %9727 = vst [vmem:[#allocation73_spill] sm:$0xff] %v7234_v9 }
 0x357   : > { %v7236_v48 = vpop.f32.mrf.mxu0 }
 0x358   : > { %9728 = vst [vmem:[#allocation74_spill] sm:$0xff] %v7236_v48  ;;  %v7238_v53 = vpop.f32.mrf.mxu3 }
 0x359   : > { %9729 = vst [vmem:[#allocation75_spill] sm:$0xff] %v7238_v53  ;;  %v7242_v33 = vpop.f32.mrf.mxu1 }
 0x35a   : > { %9730 = vst [vmem:[#allocation76_spill] sm:$0xff] %v7242_v33 }
 0x35d   : > { %v7246_v17 = vpop.f32.mrf.mxu2 }
 0x35e   : > { %9731 = vst [vmem:[#allocation77_spill] sm:$0xff] %v7246_v17  ;;  %v5996_v17 = vld [vmem:[#allocation3 + $0x1c0] sm:$0xff] }
 0x35f   : > { %v7248_v38 = vpop.f32.mrf.mxu0 }
 0x360   : > { %9732 = vst [vmem:[#allocation78_spill] sm:$0xff] %v7248_v38  ;;  %v7250_v46 = vpop.f32.mrf.mxu3 }
 0x361   : > { %9733 = vst [vmem:[#allocation79_spill] sm:$0xff] %v7250_v46  ;;  %v7254_v58 = vpop.f32.mrf.mxu1 }
 0x362   : > { %9734 = vst [vmem:[#allocation80_spill] sm:$0xff] %v7254_v58  ;;  %2056 = vmatmul.bf16.gmra.mxu0 %v5961_v2  ;;  %2226 = vmatmul.bf16.gmra.mxu2 %v5995_v35 }
 0x364   : > { %2385 = vmatmul.bf16.gmra.mxu1 %v5961_v2 }
 0x365   : > { %2555 = vmatmul.bf16.gmra.mxu3 %v5995_v35  ;;  %v7258_v5 = vpop.f32.mrf.mxu2 }
 0x366   : > { %9735 = vst [vmem:[#allocation81_spill] sm:$0xff] %v7258_v5 }
 0x367   : > { %v7260_v53 = vpop.f32.mrf.mxu0 }
 0x368   : > { %9736 = vst [vmem:[#allocation82_spill] sm:$0xff] %v7260_v53  ;;  %v7262_v9 = vpop.f32.mrf.mxu3 }
 0x369   : > { %9737 = vst [vmem:[#allocation83_spill] sm:$0xff] %v7262_v9  ;;  %v7266_v33 = vpop.f32.mrf.mxu1 }
 0x36a   : > { %9738 = vst [vmem:[#allocation84_spill] sm:$0xff] %v7266_v33  ;;  %v5964_v33 = vld [vmem:[#allocation3 + $0xc0] sm:$0xff] }
 0x36d   : > { %v7270_v46 = vpop.f32.mrf.mxu2 }
 0x36e   : > { %9739 = vst [vmem:[#allocation85_spill] sm:$0xff] %v7270_v46  ;;  %v5997_v46 = vld [vmem:[#allocation3 + $0x1c8] sm:$0xff] }
 0x36f   : > { %v7272_v2 = vpop.f32.mrf.mxu0 }
 0x370   : > { %9740 = vst [vmem:[#allocation86_spill] sm:$0xff] %v7272_v2  ;;  %v7274_v35 = vpop.f32.mrf.mxu3 }
 0x371   : > { %9741 = vst [vmem:[#allocation87_spill] sm:$0xff] %v7274_v35  ;;  %v7278_v38 = vpop.f32.mrf.mxu1 }
 0x372   : > { %9742 = vst [vmem:[#allocation88_spill] sm:$0xff] %v7278_v38  ;;  %2061 = vmatmul.bf16.gmra.mxu0 %v5962_v34  ;;  %2231 = vmatmul.bf16.gmra.mxu2 %v5996_v17 }
 0x374   : > { %2390 = vmatmul.bf16.gmra.mxu1 %v5962_v34 }
 0x375   : > { %2560 = vmatmul.bf16.gmra.mxu3 %v5996_v17  ;;  %v7282_v63 = vpop.f32.mrf.mxu2 }
 0x376   : > { %9743 = vst [vmem:[#allocation89_spill] sm:$0xff] %v7282_v63 }
 0x377   : > { %v7284_v9 = vpop.f32.mrf.mxu0 }
 0x378   : > { %9744 = vst [vmem:[#allocation90_spill] sm:$0xff] %v7284_v9  ;;  %v7286_v5 = vpop.f32.mrf.mxu3 }
 0x379   : > { %9745 = vst [vmem:[#allocation91_spill] sm:$0xff] %v7286_v5  ;;  %v7290_v53 = vpop.f32.mrf.mxu1 }
 0x37a   : > { %9746 = vst [vmem:[#allocation92_spill] sm:$0xff] %v7290_v53  ;;  %v5965_v53 = vld [vmem:[#allocation3 + $0xc8] sm:$0xff] }
 0x37d   : > { %v7294_v35 = vpop.f32.mrf.mxu2 }
 0x37e   : > { %9747 = vst [vmem:[#allocation93_spill] sm:$0xff] %v7294_v35  ;;  %v5998_v35 = vld [vmem:[#allocation3 + $0x1d0] sm:$0xff] }
 0x37f   : > { %v7296_v34 = vpop.f32.mrf.mxu0 }
 0x380   : > { %9748 = vst [vmem:[#allocation94_spill] sm:$0xff] %v7296_v34  ;;  %v7298_v17 = vpop.f32.mrf.mxu3 }
 0x381   : > { %9749 = vst [vmem:[#allocation95_spill] sm:$0xff] %v7298_v17  ;;  %v7302_v2 = vpop.f32.mrf.mxu1 }
 0x382   : > { %9750 = vst [vmem:[#allocation96_spill] sm:$0xff] %v7302_v2  ;;  %2066 = vmatmul.bf16.gmra.mxu0 %v5963_v25  ;;  %2236 = vmatmul.bf16.gmra.mxu2 %v5997_v46 }
 0x384   : > { %2395 = vmatmul.bf16.gmra.mxu1 %v5963_v25 }
 0x385   : > { %2565 = vmatmul.bf16.gmra.mxu3 %v5997_v46  ;;  %v7306_v58 = vpop.f32.mrf.mxu2 }
 0x386   : > { %9751 = vst [vmem:[#allocation97_spill] sm:$0xff] %v7306_v58 }
 0x387   : > { %v7308_v5 = vpop.f32.mrf.mxu0 }
 0x388   : > { %9752 = vst [vmem:[#allocation98_spill] sm:$0xff] %v7308_v5  ;;  %v7310_v63 = vpop.f32.mrf.mxu3 }
 0x389   : > { %9753 = vst [vmem:[#allocation99_spill] sm:$0xff] %v7310_v63  ;;  %v7314_v9 = vpop.f32.mrf.mxu1 }
 0x38a   : > { %9754 = vst [vmem:[#allocation100_spill] sm:$0xff] %v7314_v9  ;;  %v5966_v9 = vld [vmem:[#allocation3 + $0xd0] sm:$0xff] }
 0x38d   : > { %v7318_v17 = vpop.f32.mrf.mxu2 }
 0x38e   : > { %9755 = vst [vmem:[#allocation101_spill] sm:$0xff] %v7318_v17  ;;  %v5999_v17 = vld [vmem:[#allocation3 + $0x1d8] sm:$0xff] }
 0x38f   : > { %v7320_v25 = vpop.f32.mrf.mxu0 }
 0x390   : > { %9756 = vst [vmem:[#allocation102_spill] sm:$0xff] %v7320_v25  ;;  %v7322_v46 = vpop.f32.mrf.mxu3 }
 0x391   : > { %9757 = vst [vmem:[#allocation103_spill] sm:$0xff] %v7322_v46  ;;  %v7326_v34 = vpop.f32.mrf.mxu1 }
 0x392   : > { %9758 = vst [vmem:[#allocation104_spill] sm:$0xff] %v7326_v34  ;;  %2071 = vmatmul.bf16.gmra.mxu0 %v5964_v33  ;;  %2241 = vmatmul.bf16.gmra.mxu2 %v5998_v35 }
 0x394   : > { %2400 = vmatmul.bf16.gmra.mxu1 %v5964_v33 }
 0x395   : > { %2570 = vmatmul.bf16.gmra.mxu3 %v5998_v35  ;;  %v7330_v38 = vpop.f32.mrf.mxu2 }
 0x396   : > { %9759 = vst [vmem:[#allocation105_spill] sm:$0xff] %v7330_v38 }
 0x397   : > { %v7332_v63 = vpop.f32.mrf.mxu0 }
 0x398   : > { %9760 = vst [vmem:[#allocation106_spill] sm:$0xff] %v7332_v63  ;;  %v7334_v58 = vpop.f32.mrf.mxu3 }
 0x399   : > { %9761 = vst [vmem:[#allocation107_spill] sm:$0xff] %v7334_v58  ;;  %v7338_v5 = vpop.f32.mrf.mxu1 }
 0x39a   : > { %9762 = vst [vmem:[#allocation108_spill] sm:$0xff] %v7338_v5  ;;  %v5967_v5 = vld [vmem:[#allocation3 + $0xd8] sm:$0xff] }
 0x39d   : > { %v7342_v46 = vpop.f32.mrf.mxu2 }
 0x39e   : > { %9763 = vst [vmem:[#allocation109_spill] sm:$0xff] %v7342_v46  ;;  %v6000_v46 = vld [vmem:[#allocation3 + $0x1e0] sm:$0xff] }
 0x39f   : > { %v7344_v33 = vpop.f32.mrf.mxu0 }
 0x3a0   : > { %9764 = vst [vmem:[#allocation110_spill] sm:$0xff] %v7344_v33  ;;  %v7346_v35 = vpop.f32.mrf.mxu3 }
 0x3a1   : > { %9765 = vst [vmem:[#allocation111_spill] sm:$0xff] %v7346_v35  ;;  %v7350_v25 = vpop.f32.mrf.mxu1 }
 0x3a2   : > { %9766 = vst [vmem:[#allocation112_spill] sm:$0xff] %v7350_v25  ;;  %2076 = vmatmul.bf16.gmra.mxu0 %v5965_v53  ;;  %2246 = vmatmul.bf16.gmra.mxu2 %v5999_v17 }
 0x3a4   : > { %2405 = vmatmul.bf16.gmra.mxu1 %v5965_v53 }
 0x3a5   : > { %2575 = vmatmul.bf16.gmra.mxu3 %v5999_v17  ;;  %v7354_v2 = vpop.f32.mrf.mxu2 }
 0x3a6   : > { %9767 = vst [vmem:[#allocation113_spill] sm:$0xff] %v7354_v2 }
 0x3a7   : > { %v7356_v58 = vpop.f32.mrf.mxu0 }
 0x3a8   : > { %9768 = vst [vmem:[#allocation114_spill] sm:$0xff] %v7356_v58  ;;  %v7358_v38 = vpop.f32.mrf.mxu3 }
 0x3a9   : > { %9769 = vst [vmem:[#allocation115_spill] sm:$0xff] %v7358_v38  ;;  %v7362_v63 = vpop.f32.mrf.mxu1 }
 0x3aa   : > { %9770 = vst [vmem:[#allocation116_spill] sm:$0xff] %v7362_v63  ;;  %v5968_v63 = vld [vmem:[#allocation3 + $0xe0] sm:$0xff] }
 0x3ad   : > { %v7366_v35 = vpop.f32.mrf.mxu2 }
 0x3ae   : > { %9771 = vst [vmem:[#allocation117_spill] sm:$0xff] %v7366_v35  ;;  %v6001_v35 = vld [vmem:[#allocation3 + $0x1e8] sm:$0xff] }
 0x3af   : > { %v7368_v53 = vpop.f32.mrf.mxu0 }
 0x3b0   : > { %9772 = vst [vmem:[#allocation118_spill] sm:$0xff] %v7368_v53  ;;  %v7370_v17 = vpop.f32.mrf.mxu3 }
 0x3b1   : > { %9773 = vst [vmem:[#allocation119_spill] sm:$0xff] %v7370_v17  ;;  %v7374_v33 = vpop.f32.mrf.mxu1 }
 0x3b2   : > { %9774 = vst [vmem:[#allocation120_spill] sm:$0xff] %v7374_v33  ;;  %2081 = vmatmul.bf16.gmra.mxu0 %v5966_v9  ;;  %2251 = vmatmul.bf16.gmra.mxu2 %v6000_v46 }
 0x3b4   : > { %2410 = vmatmul.bf16.gmra.mxu1 %v5966_v9 }
 0x3b5   : > { %2580 = vmatmul.bf16.gmra.mxu3 %v6000_v46  ;;  %v7378_v34 = vpop.f32.mrf.mxu2 }
 0x3b6   : > { %9775 = vst [vmem:[#allocation121_spill] sm:$0xff] %v7378_v34 }
 0x3b7   : > { %v7380_v38 = vpop.f32.mrf.mxu0 }
 0x3b8   : > { %9776 = vst [vmem:[#allocation122_spill] sm:$0xff] %v7380_v38  ;;  %v7382_v2 = vpop.f32.mrf.mxu3 }
 0x3b9   : > { %9777 = vst [vmem:[#allocation123_spill] sm:$0xff] %v7382_v2  ;;  %v7386_v58 = vpop.f32.mrf.mxu1 }
 0x3ba   : > { %9778 = vst [vmem:[#allocation124_spill] sm:$0xff] %v7386_v58  ;;  %v5969_v58 = vld [vmem:[#allocation3 + $0xe8] sm:$0xff] }
 0x3bd   : > { %v7390_v17 = vpop.f32.mrf.mxu2 }
 0x3be   : > { %9779 = vst [vmem:[#allocation125_spill] sm:$0xff] %v7390_v17  ;;  %v6002_v17 = vld [vmem:[#allocation3 + $0x1f0] sm:$0xff] }
 0x3bf   : > { %v7392_v9 = vpop.f32.mrf.mxu0 }
 0x3c0   : > { %9780 = vst [vmem:[#allocation126_spill] sm:$0xff] %v7392_v9  ;;  %v7394_v46 = vpop.f32.mrf.mxu3 }
 0x3c1   : > { %9781 = vst [vmem:[#allocation127_spill] sm:$0xff] %v7394_v46  ;;  %v7398_v53 = vpop.f32.mrf.mxu1 }
 0x3c2   : > { %9782 = vst [vmem:[#allocation128_spill] sm:$0xff] %v7398_v53  ;;  %2086 = vmatmul.bf16.gmra.mxu0 %v5967_v5  ;;  %2256 = vmatmul.bf16.gmra.mxu2 %v6001_v35 }
 0x3c4   : > { %2415 = vmatmul.bf16.gmra.mxu1 %v5967_v5 }
 0x3c5   : > { %2585 = vmatmul.bf16.gmra.mxu3 %v6001_v35  ;;  %v7402_v25 = vpop.f32.mrf.mxu2 }
 0x3c6   : > { %9783 = vst [vmem:[#allocation129_spill] sm:$0xff] %v7402_v25 }
 0x3c7   : > { %v7404_v2 = vpop.f32.mrf.mxu0 }
 0x3c8   : > { %9784 = vst [vmem:[#allocation130_spill] sm:$0xff] %v7404_v2  ;;  %v7406_v34 = vpop.f32.mrf.mxu3 }
 0x3c9   : > { %9785 = vst [vmem:[#allocation131_spill] sm:$0xff] %v7406_v34  ;;  %v7410_v38 = vpop.f32.mrf.mxu1 }
 0x3ca   : > { %9786 = vst [vmem:[#allocation132_spill] sm:$0xff] %v7410_v38  ;;  %v5970_v38 = vld [vmem:[#allocation3 + $0xf0] sm:$0xff] }
 0x3cd   : > { %v7414_v46 = vpop.f32.mrf.mxu2 }
 0x3ce   : > { %9787 = vst [vmem:[#allocation133_spill] sm:$0xff] %v7414_v46  ;;  %v6003_v46 = vld [vmem:[#allocation3 + $0x1f8] sm:$0xff] }
 0x3cf   : > { %v7416_v5 = vpop.f32.mrf.mxu0 }
 0x3d0   : > { %9788 = vst [vmem:[#allocation134_spill] sm:$0xff] %v7416_v5  ;;  %v7418_v35 = vpop.f32.mrf.mxu3 }
 0x3d1   : > { %9789 = vst [vmem:[#allocation135_spill] sm:$0xff] %v7418_v35  ;;  %v7422_v9 = vpop.f32.mrf.mxu1 }
 0x3d2   : > { %9790 = vst [vmem:[#allocation136_spill] sm:$0xff] %v7422_v9  ;;  %2091 = vmatmul.bf16.gmra.mxu0 %v5968_v63  ;;  %2261 = vmatmul.bf16.gmra.mxu2 %v6002_v17 }
 0x3d4   : > { %2420 = vmatmul.bf16.gmra.mxu1 %v5968_v63 }
 0x3d5   : > { %2590 = vmatmul.bf16.gmra.mxu3 %v6002_v17  ;;  %v7426_v33 = vpop.f32.mrf.mxu2 }
 0x3d6   : > { %9791 = vst [vmem:[#allocation137_spill] sm:$0xff] %v7426_v33 }
 0x3d7   : > { %v7428_v34 = vpop.f32.mrf.mxu0 }
 0x3d8   : > { %9792 = vst [vmem:[#allocation138_spill] sm:$0xff] %v7428_v34  ;;  %v7430_v25 = vpop.f32.mrf.mxu3 }
 0x3d9   : > { %9793 = vst [vmem:[#allocation139_spill] sm:$0xff] %v7430_v25  ;;  %v7434_v2 = vpop.f32.mrf.mxu1 }
 0x3da   : > { %9794 = vst [vmem:[#allocation140_spill] sm:$0xff] %v7434_v2 }
 0x3dd   : > { %v7438_v35 = vpop.f32.mrf.mxu2 }
 0x3de   : > { %9795 = vst [vmem:[#allocation141_spill] sm:$0xff] %v7438_v35 }
 0x3df   : > { %v7440_v63 = vpop.f32.mrf.mxu0 }
 0x3e0   : > { %9796 = vst [vmem:[#allocation142_spill] sm:$0xff] %v7440_v63  ;;  %v7442_v17 = vpop.f32.mrf.mxu3 }
 0x3e1   : > { %9797 = vst [vmem:[#allocation143_spill] sm:$0xff] %v7442_v17  ;;  %v7446_v5 = vpop.f32.mrf.mxu1 }
 0x3e2   : > { %9798 = vst [vmem:[#allocation144_spill] sm:$0xff] %v7446_v5  ;;  %2096 = vmatmul.bf16.gmra.mxu0 %v5969_v58  ;;  %2266 = vmatmul.bf16.gmra.mxu2 %v6003_v46 }
 0x3e4   : > { %2425 = vmatmul.bf16.gmra.mxu1 %v5969_v58 }
 0x3e5   : > { %2595 = vmatmul.bf16.gmra.mxu3 %v6003_v46  ;;  %v7450_v53 = vpop.f32.mrf.mxu2 }
 0x3e6   : > { %9799 = vst [vmem:[#allocation145_spill] sm:$0xff] %v7450_v53 }
 0x3e7   : > { %v7452_v25 = vpop.f32.mrf.mxu0 }
 0x3e8   : > { %9800 = vst [vmem:[#allocation146_spill] sm:$0xff] %v7452_v25  ;;  %v7454_v33 = vpop.f32.mrf.mxu3 }
 0x3e9   : > { %9801 = vst [vmem:[#allocation147_spill] sm:$0xff] %v7454_v33  ;;  %v7458_v34 = vpop.f32.mrf.mxu1  ;;  %v7474_v33 = vld [vmem:[#allocation3] sm:$0xff] }
 0x3ea   : > { %9802 = vst [vmem:[#allocation148_spill] sm:$0xff] %v7458_v34 }
 0x3ed   : > { %v7462_v17 = vpop.f32.mrf.mxu2 }
 0x3ee   : > { %9803 = vst [vmem:[#allocation149_spill] sm:$0xff] %v7462_v17 }
 0x3ef   : > { %v7464_v35 = vpop.f32.mrf.mxu0 }
 0x3f0   : > { %9804 = vst [vmem:[#allocation150_spill] sm:$0xff] %v7464_v35  ;;  %v7466_v58 = vpop.f32.mrf.mxu3 }
 0x3f1   : > { %9805 = vst [vmem:[#allocation151_spill] sm:$0xff] %v7466_v58  ;;  %v7470_v5 = vpop.f32.mrf.mxu1 }
 0x3f2   : > { %9806 = vst [vmem:[#allocation152_spill] sm:$0xff] %v7470_v5  ;;  %2101 = vmatmul.bf16.gmra.mxu0 %v5970_v38  ;;  %2609 = vmatmul.bf16.vlgmr.msra.gmra.mxu2 %v7474_v33  ;;  %v5971_v5 = vld [vmem:[#allocation3 + $0xf8] sm:$0xff] }
 0x3f4   : > { %2430 = vmatmul.bf16.gmra.mxu1 %v5970_v38 }
 0x3f5   : > { %2938 = vmatmul.bf16.vlgmr.msra.gmra.mxu3 %v7474_v33  ;;  %v7478_v9 = vpop.f32.mrf.mxu2 }
 0x3f6   : > { %9807 = vst [vmem:[#allocation153_spill] sm:$0xff] %v7478_v9 }
 0x3f7   : > { %v7480_v53 = vpop.f32.mrf.mxu0 }
 0x3f8   : > { %9808 = vst [vmem:[#allocation154_spill] sm:$0xff] %v7480_v53  ;;  %v7482_v34 = vpop.f32.mrf.mxu3 }
 0x3f9   : > { %9809 = vst [vmem:[#allocation155_spill] sm:$0xff] %v7482_v34  ;;  %v7486_v58 = vpop.f32.mrf.mxu1  ;;  %v7502_v34 = vld [vmem:[#allocation3 + $0x8] sm:$0xff] }
 0x3fa   : > { %9810 = vst [vmem:[#allocation156_spill] sm:$0xff] %v7486_v58 }
 0x3fd   : > { %v7490_v17 = vpop.f32.mrf.mxu2 }
 0x3fe   : > { %9811 = vst [vmem:[#allocation157_spill] sm:$0xff] %v7490_v17 }
 0x3ff   : > { %v7492_v38 = vpop.f32.mrf.mxu0 }
 0x400   : > { %9812 = vst [vmem:[#allocation158_spill] sm:$0xff] %v7492_v38  ;;  %v7494_v35 = vpop.f32.mrf.mxu3 }
 0x401   : > { %9813 = vst [vmem:[#allocation159_spill] sm:$0xff] %v7494_v35  ;;  %v7498_v63 = vpop.f32.mrf.mxu1 }
 0x402   : > { %9814 = vst [vmem:[#allocation160_spill] sm:$0xff] %v7498_v63  ;;  %2106 = vmatmul.bf16.gmra.mxu0 %v5971_v5  ;;  %2614 = vmatmul.bf16.gmra.mxu2 %v7502_v34  ;;  %v5972_v63 = vld [vmem:[#allocation3 + $0x100] sm:$0xff] }
 0x404   : > { %2435 = vmatmul.bf16.gmra.mxu1 %v5971_v5 }
 0x405   : > { %2943 = vmatmul.bf16.gmra.mxu3 %v7502_v34  ;;  %v7506_v2 = vpop.f32.mrf.mxu2 }
 0x406   : > { %9815 = vst [vmem:[#allocation161_spill] sm:$0xff] %v7506_v2 }
 0x407   : > { %v7508_v9 = vpop.f32.mrf.mxu0 }
 0x408   : > { %9816 = vst [vmem:[#allocation162_spill] sm:$0xff] %v7508_v9  ;;  %v7510_v58 = vpop.f32.mrf.mxu3  ;;  %v7586_v9 = vld [vmem:[#allocation3 + $0x20] sm:$0xff] }
 0x409   : > { %9817 = vst [vmem:[#allocation163_spill] sm:$0xff] %v7510_v58  ;;  %v7514_v35 = vpop.f32.mrf.mxu1  ;;  %v7530_v58 = vld [vmem:[#allocation3 + $0x10] sm:$0xff] }
 0x40a   : > { %9818 = vst [vmem:[#allocation164_spill] sm:$0xff] %v7514_v35 }
 0x40d   : > { %v7518_v17 = vpop.f32.mrf.mxu2 }
 0x40e   : > { %9819 = vst [vmem:[#allocation165_spill] sm:$0xff] %v7518_v17 }
 0x40f   : > { %v7520_v5 = vpop.f32.mrf.mxu0 }
 0x410   : > { %9820 = vst [vmem:[#allocation166_spill] sm:$0xff] %v7520_v5  ;;  %v7522_v38 = vpop.f32.mrf.mxu3 }
 0x411   : > { %9821 = vst [vmem:[#allocation167_spill] sm:$0xff] %v7522_v38  ;;  %v7526_v48 = vpop.f32.mrf.mxu1 }
 0x412   : > { %9822 = vst [vmem:[#allocation168_spill] sm:$0xff] %v7526_v48  ;;  %2111 = vmatmul.bf16.gmra.mxu0 %v5972_v63  ;;  %2619 = vmatmul.bf16.gmra.mxu2 %v7530_v58  ;;  %v5973_v48 = vld [vmem:[#allocation3 + $0x108] sm:$0xff] }
 0x414   : > { %2440 = vmatmul.bf16.gmra.mxu1 %v5972_v63 }
 0x415   : > { %2948 = vmatmul.bf16.gmra.mxu3 %v7530_v58  ;;  %v7534_v46 = vpop.f32.mrf.mxu2 }
 0x416   : > { %9823 = vst [vmem:[#allocation169_spill] sm:$0xff] %v7534_v46 }
 0x417   : > { %v7536_v2 = vpop.f32.mrf.mxu0 }
 0x418   : > { %9824 = vst [vmem:[#allocation170_spill] sm:$0xff] %v7536_v2  ;;  %v7538_v35 = vpop.f32.mrf.mxu3 }
 0x419   : > { %9825 = vst [vmem:[#allocation171_spill] sm:$0xff] %v7538_v35  ;;  %v7542_v38 = vpop.f32.mrf.mxu1  ;;  %v7558_v35 = vld [vmem:[#allocation3 + $0x18] sm:$0xff] }
 0x41a   : > { %9826 = vst [vmem:[#allocation172_spill] sm:$0xff] %v7542_v38 }
 0x41d   : > { %v7546_v17 = vpop.f32.mrf.mxu2 }
 0x41e   : > { %9827 = vst [vmem:[#allocation173_spill] sm:$0xff] %v7546_v17 }
 0x41f   : > { %v7548_v63 = vpop.f32.mrf.mxu0 }
 0x420   : > { %9828 = vst [vmem:[#allocation174_spill] sm:$0xff] %v7548_v63  ;;  %v7550_v5 = vpop.f32.mrf.mxu3 }
 0x421   : > { %9829 = vst [vmem:[#allocation175_spill] sm:$0xff] %v7550_v5  ;;  %v7554_v42 = vpop.f32.mrf.mxu1 }
 0x422   : > { %9830 = vst [vmem:[#allocation176_spill] sm:$0xff] %v7554_v42  ;;  %2116 = vmatmul.bf16.gmra.mxu0 %v5973_v48  ;;  %2624 = vmatmul.bf16.gmra.mxu2 %v7558_v35 }
 0x424   : > { %2445 = vmatmul.bf16.gmra.mxu1 %v5973_v48 }
 0x425   : > { %2953 = vmatmul.bf16.gmra.mxu3 %v7558_v35  ;;  %v7562_v25 = vpop.f32.mrf.mxu2 }
 0x426   : > { %9831 = vst [vmem:[#allocation177_spill] sm:$0xff] %v7562_v25 }
 0x427   : > { %v7564_v46 = vpop.f32.mrf.mxu0 }
 0x428   : > { %9832 = vst [vmem:[#allocation178_spill] sm:$0xff] %v7564_v46  ;;  %v7566_v38 = vpop.f32.mrf.mxu3 }
 0x429   : > { %9833 = vst [vmem:[#allocation179_spill] sm:$0xff] %v7566_v38  ;;  %v7570_v5 = vpop.f32.mrf.mxu1 }
 0x42a   : > { %9834 = vst [vmem:[#allocation180_spill] sm:$0xff] %v7570_v5 }
 0x42d   : > { %v7574_v17 = vpop.f32.mrf.mxu2 }
 0x42e   : > { %9835 = vst [vmem:[#allocation181_spill] sm:$0xff] %v7574_v17 }
 0x42f   : > { %v7576_v42 = vpop.f32.mrf.mxu0 }
 0x430   : > { %9836 = vst [vmem:[#allocation182_spill] sm:$0xff] %v7576_v42  ;;  %v7578_v48 = vpop.f32.mrf.mxu3 }
 0x431   : > { %9837 = vst [vmem:[#allocation183_spill] sm:$0xff] %v7578_v48  ;;  %v7582_v2 = vpop.f32.mrf.mxu1  ;;  %v7616_v48 = vld [vmem:[#allocation3 + $0x28] sm:$0xff] }
 0x432   : > { %9838 = vst [vmem:[#allocation184_spill] sm:$0xff] %v7582_v2  ;;  %2629 = vmatmul.bf16.gmra.mxu2 %v7586_v9  ;;  %3267 = vmatmul.bf16.vlgmr.msra.gmra.mxu0 %v7474_v33 }
 0x434   : > { %3596 = vmatmul.bf16.vlgmr.msra.gmra.mxu1 %v7474_v33 }
 0x435   : > { %2958 = vmatmul.bf16.gmra.mxu3 %v7586_v9  ;;  %v7592_v53 = vpop.f32.mrf.mxu2 }
 0x436   : > { %9839 = vst [vmem:[#allocation185_spill] sm:$0xff] %v7592_v53 }
 0x437   : > { %v7594_v38 = vpop.f32.mrf.mxu0 }
 0x438   : > { %9840 = vst [vmem:[#allocation186_spill] sm:$0xff] %v7594_v38  ;;  %v7596_v63 = vpop.f32.mrf.mxu3 }
 0x439   : > { %9841 = vst [vmem:[#allocation187_spill] sm:$0xff] %v7596_v63  ;;  %v7600_v1 = vpop.f32.mrf.mxu1 }
 0x43a   : > { %9842 = vst [vmem:[#allocation188_spill] sm:$0xff] %v7600_v1 }
 0x43d   : > { %v7604_v25 = vpop.f32.mrf.mxu2 }
 0x43e   : > { %9843 = vst [vmem:[#allocation189_spill] sm:$0xff] %v7604_v25 }
 0x43f   : > { %v7606_v2 = vpop.f32.mrf.mxu0 }
 0x440   : > { %9844 = vst [vmem:[#allocation190_spill] sm:$0xff] %v7606_v2  ;;  %v7608_v42 = vpop.f32.mrf.mxu3 }
 0x441   : > { %9845 = vst [vmem:[#allocation191_spill] sm:$0xff] %v7608_v42  ;;  %v7612_v5 = vpop.f32.mrf.mxu1  ;;  %v7646_v42 = vld [vmem:[#allocation3 + $0x30] sm:$0xff] }
 0x442   : > { %9846 = vst [vmem:[#allocation192_spill] sm:$0xff] %v7612_v5  ;;  %2634 = vmatmul.bf16.gmra.mxu2 %v7616_v48  ;;  %3272 = vmatmul.bf16.gmra.mxu0 %v7502_v34 }
 0x444   : > { %3601 = vmatmul.bf16.gmra.mxu1 %v7502_v34 }
 0x445   : > { %2963 = vmatmul.bf16.gmra.mxu3 %v7616_v48  ;;  %v7622_v17 = vpop.f32.mrf.mxu2 }
 0x446   : > { %9847 = vst [vmem:[#allocation193_spill] sm:$0xff] %v7622_v17 }
 0x447   : > { %v7624_v63 = vpop.f32.mrf.mxu0 }
 0x448   : > { %9848 = vst [vmem:[#allocation194_spill] sm:$0xff] %v7624_v63  ;;  %v7626_v33 = vpop.f32.mrf.mxu3 }
 0x449   : > { %9849 = vst [vmem:[#allocation195_spill] sm:$0xff] %v7626_v33  ;;  %v7630_v46 = vpop.f32.mrf.mxu1 }
 0x44a   : > { %9850 = vst [vmem:[#allocation196_spill] sm:$0xff] %v7630_v46 }
 0x44d   : > { %v7634_v53 = vpop.f32.mrf.mxu2 }
 0x44e   : > { %9851 = vst [vmem:[#allocation197_spill] sm:$0xff] %v7634_v53 }
 0x44f   : > { %v7636_v5 = vpop.f32.mrf.mxu0 }
 0x450   : > { %9852 = vst [vmem:[#allocation198_spill] sm:$0xff] %v7636_v5  ;;  %v7638_v2 = vpop.f32.mrf.mxu3 }
 0x451   : > { %9853 = vst [vmem:[#allocation199_spill] sm:$0xff] %v7638_v2  ;;  %v7642_v1 = vpop.f32.mrf.mxu1  ;;  %v7676_v2 = vld [vmem:[#allocation3 + $0x38] sm:$0xff] }
 0x452   : > { %9854 = vst [vmem:[#allocation200_spill] sm:$0xff] %v7642_v1  ;;  %2639 = vmatmul.bf16.gmra.mxu2 %v7646_v42  ;;  %3277 = vmatmul.bf16.gmra.mxu0 %v7530_v58 }
 0x454   : > { %3606 = vmatmul.bf16.gmra.mxu1 %v7530_v58 }
 0x455   : > { %2968 = vmatmul.bf16.gmra.mxu3 %v7646_v42  ;;  %v7652_v25 = vpop.f32.mrf.mxu2 }
 0x456   : > { %9855 = vst [vmem:[#allocation201_spill] sm:$0xff] %v7652_v25 }
 0x457   : > { %v7654_v33 = vpop.f32.mrf.mxu0 }
 0x458   : > { %9856 = vst [vmem:[#allocation202_spill] sm:$0xff] %v7654_v33  ;;  %v7656_v34 = vpop.f32.mrf.mxu3 }
 0x459   : > { %9857 = vst [vmem:[#allocation203_spill] sm:$0xff] %v7656_v34  ;;  %v7660_v38 = vpop.f32.mrf.mxu1 }
 0x45a   : > { %9858 = vst [vmem:[#allocation204_spill] sm:$0xff] %v7660_v38 }
 0x45d   : > { %v7664_v17 = vpop.f32.mrf.mxu2 }
 0x45e   : > { %9859 = vst [vmem:[#allocation205_spill] sm:$0xff] %v7664_v17 }
 0x45f   : > { %v7666_v1 = vpop.f32.mrf.mxu0 }
 0x460   : > { %9860 = vst [vmem:[#allocation206_spill] sm:$0xff] %v7666_v1  ;;  %v7668_v5 = vpop.f32.mrf.mxu3 }
 0x461   : > { %9861 = vst [vmem:[#allocation207_spill] sm:$0xff] %v7668_v5  ;;  %v7672_v46 = vpop.f32.mrf.mxu1  ;;  %v7706_v5 = vld [vmem:[#allocation3 + $0x40] sm:$0xff] }
 0x462   : > { %9862 = vst [vmem:[#allocation208_spill] sm:$0xff] %v7672_v46  ;;  %2644 = vmatmul.bf16.gmra.mxu2 %v7676_v2  ;;  %3282 = vmatmul.bf16.gmra.mxu0 %v7558_v35 }
 0x464   : > { %3611 = vmatmul.bf16.gmra.mxu1 %v7558_v35 }
 0x465   : > { %2973 = vmatmul.bf16.gmra.mxu3 %v7676_v2  ;;  %v7682_v53 = vpop.f32.mrf.mxu2 }
 0x466   : > { %9863 = vst [vmem:[#allocation209_spill] sm:$0xff] %v7682_v53 }
 0x467   : > { %v7684_v34 = vpop.f32.mrf.mxu0 }
 0x468   : > { %9864 = vst [vmem:[#allocation210_spill] sm:$0xff] %v7684_v34  ;;  %v7686_v58 = vpop.f32.mrf.mxu3 }
 0x469   : > { %9865 = vst [vmem:[#allocation211_spill] sm:$0xff] %v7686_v58  ;;  %v7690_v63 = vpop.f32.mrf.mxu1 }
 0x46a   : > { %9866 = vst [vmem:[#allocation212_spill] sm:$0xff] %v7690_v63 }
 0x46d   : > { %v7694_v25 = vpop.f32.mrf.mxu2 }
 0x46e   : > { %9867 = vst [vmem:[#allocation213_spill] sm:$0xff] %v7694_v25 }
 0x46f   : > { %v7696_v46 = vpop.f32.mrf.mxu0 }
 0x470   : > { %9868 = vst [vmem:[#allocation214_spill] sm:$0xff] %v7696_v46  ;;  %v7698_v1 = vpop.f32.mrf.mxu3 }
 0x471   : > { %9869 = vst [vmem:[#allocation215_spill] sm:$0xff] %v7698_v1  ;;  %v7702_v38 = vpop.f32.mrf.mxu1 }
 0x472   : > { %9870 = vst [vmem:[#allocation216_spill] sm:$0xff] %v7702_v38  ;;  %2649 = vmatmul.bf16.gmra.mxu2 %v7706_v5  ;;  %3287 = vmatmul.bf16.gmra.mxu0 %v7586_v9 }
 0x474   : > { %3616 = vmatmul.bf16.gmra.mxu1 %v7586_v9  ;;  %v7726_v9 = vld [vmem:[#allocation3 + $0x48] sm:$0xff] }
 0x475   : > { %2978 = vmatmul.bf16.gmra.mxu3 %v7706_v5  ;;  %v2610_v17 = vpop.f32.mrf.mxu2 }
 0x477   : > { %v7712_v58 = vpop.f32.mrf.mxu0 }
 0x478   : > { %9871 = vst [vmem:[#allocation217_spill] sm:$0xff] %v7712_v58  ;;  %v2939_v53 = vpop.f32.mrf.mxu3 }
 0x479   : > { %v7714_v35 = vpop.f32.mrf.mxu1 }
 0x47a   : > { %9872 = vst [vmem:[#allocation218_spill] sm:$0xff] %v7714_v35 }
 0x47d   : > { %v2612_v33 = vpop.f32.mrf.mxu2 }
 0x47e   : > { %v4046_v44 = vmax.f32 %v9884_v19, %v2612_v33 }
 0x47f   : > { %v7718_v25 = vpop.f32.mrf.mxu0 }
 0x480   : > { %9873 = vst [vmem:[#allocation219_spill] sm:$0xff] %v7718_v25  ;;  %v7720_v38 = vpop.f32.mrf.mxu3 }
 0x481   : > { %v7722_v46 = vpop.f32.mrf.mxu1 }
 0x482   : > { %9874 = vst [vmem:[#allocation220_spill] sm:$0xff] %v7722_v46  ;;  %2654 = vmatmul.bf16.gmra.mxu2 %v7726_v9  ;;  %3292 = vmatmul.bf16.gmra.mxu0 %v7616_v48 }
 0x484   : > { %3621 = vmatmul.bf16.gmra.mxu1 %v7616_v48  ;;  %v7746_v48 = vld [vmem:[#allocation3 + $0x50] sm:$0xff] }
 0x485   : > { %2983 = vmatmul.bf16.gmra.mxu3 %v7726_v9  ;;  %v2615_v1 = vpop.f32.mrf.mxu2 }
 0x487   : > { %v7732_v35 = vpop.f32.mrf.mxu0 }
 0x488   : > { %9875 = vst [vmem:[#allocation221_spill] sm:$0xff] %v7732_v35  ;;  %v2944_v58 = vpop.f32.mrf.mxu3 }
 0x489   : > { %v7734_v34 = vpop.f32.mrf.mxu1 }
 0x48a   : > { %9876 = vst [vmem:[#allocation222_spill] sm:$0xff] %v7734_v34 }
 0x48d   : > { %v2617_v63 = vpop.f32.mrf.mxu2 }
 0x48f   : > { %v7738_v46 = vpop.f32.mrf.mxu0 }
 0x490   : > { %9877 = vst [vmem:[#allocation223_spill] sm:$0xff] %v7738_v46  ;;  %v7740_v25 = vpop.f32.mrf.mxu3 }
 0x491   : > { %v7742_v40 = vpop.f32.mrf.mxu1 }
 0x492   : > { %9878 = vst [vmem:[#allocation224_spill] sm:$0xff] %v7742_v40  ;;  %2659 = vmatmul.bf16.gmra.mxu2 %v7746_v48  ;;  %3297 = vmatmul.bf16.gmra.mxu0 %v7646_v42 }
 0x494   : > { %3626 = vmatmul.bf16.gmra.mxu1 %v7646_v42  ;;  %v9883_v42 = vmax.f32 %v6940_v3, %v6942_v4  ;;  %v4174_v4 = vmax.f32 %v4046_v44, %v7720_v38  ;;  %v9886_v44 = vmax.f32 %v6974_v61, %v6978_v30 }
 0x495   : > { %2988 = vmatmul.bf16.gmra.mxu3 %v7746_v48  ;;  %v7752_v41 = vpop.f32.mrf.mxu2 }
 0x496   : > { %v4048_v38 = vmax.f32 %v9886_v44, %v2617_v63 }
 0x497   : > { %v7754_v34 = vpop.f32.mrf.mxu0 }
 0x498   : > { %9879 = vst [vmem:[#allocation225_spill] sm:$0xff] %v7754_v34  ;;  %v7756_v35 = vpop.f32.mrf.mxu3 }
 0x499   : > { %v7758_v27 = vpop.f32.mrf.mxu1 }
 0x49a   : > { %9880 = vst [vmem:[#allocation226_spill] sm:$0xff] %v7758_v27 }
 0x49d   : > { %v7762_v40 = vpop.f32.mrf.mxu2 }
 0x49f   : > { %v7764_v46 = vpop.f32.mrf.mxu0 }
 0x4a0   : > { %9881 = vst [vmem:[#allocation227_spill] sm:$0xff] %v7764_v46  ;;  %v7766_v39 = vpop.f32.mrf.mxu3 }
 0x4a1   : > { %v7768_v55 = vpop.f32.mrf.mxu1 }
 0x4a2   : > { %9882 = vst [vmem:[#allocation228_spill] sm:$0xff] %v7768_v55  ;;  %2664 = vmatmul.bf16.gmra.mxu2 %v7772_v29  ;;  %3302 = vmatmul.bf16.gmra.mxu0 %v7676_v2  ;;  %v4045_v55 = vmax.f32 %v9883_v42, %v2610_v17 }
 0x4a4   : > { %3631 = vmatmul.bf16.gmra.mxu1 %v7676_v2  ;;  %v4173_v49 = vmax.f32 %v4045_v55, %v2939_v53 }
 0x4a5   : > { %2993 = vmatmul.bf16.gmra.mxu3 %v7772_v29  ;;  %v7778_v0 = vpop.f32.mrf.mxu2 }
 0x4a7   : > { %v7780_v27 = vpop.f32.mrf.mxu0 }
 0x4a8   : > { %v7782_v34 = vpop.f32.mrf.mxu3 }
 0x4a9   : > { %v7784_v57 = vpop.f32.mrf.mxu1 }
 0x4aa   : > { %v3984_v46 = vmax.f32 %v7780_v27, %v7784_v57  ;;  %v10053_v27 = vld [vmem:[#allocation21_spill] sm:$0xff] }
 0x4ad   : > { %v7791_v22 = vpop.f32.mrf.mxu2 }
 0x4af   : > { %v3268_v2 = vpop.f32.mrf.mxu0 }
 0x4b0   : > { %v7793_v54 = vpop.f32.mrf.mxu3  ;;  %v4301_v7 = vmax.f32 %v4173_v49, %v3268_v2  ;;  %v9885_v49 = vmax.f32 %v6962_v24, %v6966_v50  ;;  %v4176_v50 = vmax.f32 %v4048_v38, %v7740_v25 }
 0x4b1   : > { %v3597_v62 = vpop.f32.mrf.mxu1 }
 0x4b2   : > { %v4429_v47 = vmax.f32 %v4301_v7, %v3597_v62  ;;  %2669 = vmatmul.bf16.gmra.mxu2 %v7798_v52  ;;  %3307 = vmatmul.bf16.gmra.mxu0 %v7706_v5  ;;  %v4047_v62 = vmax.f32 %v9885_v49, %v2615_v1 }
 0x4b4   : > { %3636 = vmatmul.bf16.gmra.mxu1 %v7706_v5  ;;  %5072 = vmax.xlane.f32.xlu0 %v4429_v47  ;;  %v4175_v17 = vmax.f32 %v4047_v62, %v2944_v58  ;;  %v9887_v58 = vmax.f32 %v6986_v10, %v6990_v13 }
 0x4b5   : > { %2998 = vmatmul.bf16.gmra.mxu3 %v7798_v52  ;;  %v7804_v3 = vpop.f32.mrf.mxu2 }
 0x4b7   : > { %v3270_v28 = vpop.f32.mrf.mxu0 }
 0x4b8   : > { %v7807_v55 = vpop.f32.mrf.mxu3  ;;  %v4302_v8 = vmax.f32 %v4174_v4, %v3270_v28  ;;  %v7819_v4 = vld [vmem:[#allocation3 + $0x68] sm:$0xff]  ;;  %v4049_v28 = vmax.f32 %v9887_v58, %v7752_v41 }
 0x4b9   : > { %v3599_v19 = vpop.f32.mrf.mxu1 }
 0x4ba   : > { %v4430_v7 = vmax.f32 %v4302_v8, %v3599_v19 }
 0x4bc   : > { %5074 = vmax.xlane.f32.xlu1 %v4430_v7 }
 0x4bd   : > { %v7812_v53 = vpop.f32.mrf.mxu2 }
 0x4bf   : > { %v3273_v47 = vpop.f32.mrf.mxu0 }
 0x4c0   : > { %v7814_v5 = vpop.f32.mrf.mxu3  ;;  %v4303_v33 = vmax.f32 %v4175_v17, %v3273_v47  ;;  %v9888_v17 = vmax.f32 %v6998_v31, %v7002_v11 }
 0x4c1   : > { %v3602_v42 = vpop.f32.mrf.mxu1 }
 0x4c2   : > { %v4431_v2 = vmax.f32 %v4303_v33, %v3602_v42  ;;  %2674 = vmatmul.bf16.gmra.mxu2 %v7819_v4  ;;  %3312 = vmatmul.bf16.gmra.mxu0 %v7726_v9  ;;  %v4050_v47 = vmax.f32 %v9888_v17, %v7762_v40  ;;  %v7843_v42 = vld [vmem:[#allocation3 + $0x70] sm:$0xff] }
 0x4c4   : > { %3641 = vmatmul.bf16.gmra.mxu1 %v7726_v9  ;;  %5076 = vmax.xlane.f32.xlu2 %v4431_v2  ;;  %v4177_v9 = vmax.f32 %v4049_v28, %v7756_v35  ;;  %v4178_v10 = vmax.f32 %v4050_v47, %v7766_v39  ;;  %v9889_v35 = vmax.f32 %v7010_v36, %v7014_v51 }
 0x4c5   : > { %3003 = vmatmul.bf16.gmra.mxu3 %v7819_v4  ;;  %v7825_v24 = vpop.f32.mrf.mxu2 }
 0x4c6   : > { %v4051_v44 = vmax.f32 %v9889_v35, %v7778_v0 }
 0x4c7   : > { %v3275_v61 = vpop.f32.mrf.mxu0 }
 0x4c8   : > { %v7828_v1 = vpop.f32.mrf.mxu3  ;;  %v4304_v30 = vmax.f32 %v4176_v50, %v3275_v61 }
 0x4c9   : > { %v3604_v63 = vpop.f32.mrf.mxu1 }
 0x4ca   : > { %v4432_v8 = vmax.f32 %v4304_v30, %v3604_v63  ;;  %v9890_v63 = vmax.f32 %v7022_v15, %v7026_v14 }
 0x4cc   : > { %5078 = vmax.xlane.f32.xlu2 %v4432_v8  ;;  %v4052_v58 = vmax.f32 %v9890_v63, %v7791_v22  ;;  %v7867_v8 = vld [vmem:[#allocation3 + $0x78] sm:$0xff] }
 0x4cd   : > { %v7834_v19 = vpop.f32.mrf.mxu2 }
 0x4ce   : > { %v4180_v36 = vmax.f32 %v4052_v58, %v7793_v54  ;;  %v7915_v58 = vld [vmem:[#allocation3 + $0x88] sm:$0xff] }
 0x4cf   : > { %v3278_v62 = vpop.f32.mrf.mxu0 }
 0x4d0   : > { %v7837_v49 = vpop.f32.mrf.mxu3  ;;  %v4305_v25 = vmax.f32 %v4177_v9, %v3278_v62 }
 0x4d1   : > { %v3607_v7 = vpop.f32.mrf.mxu1 }
 0x4d2   : > { %v4433_v33 = vmax.f32 %v4305_v25, %v3607_v7  ;;  %2679 = vmatmul.bf16.gmra.mxu2 %v7843_v42  ;;  %3317 = vmatmul.bf16.gmra.mxu0 %v7746_v48 }
 0x4d4   : > { %3646 = vmatmul.bf16.gmra.mxu1 %v7746_v48  ;;  %5080 = vmax.xlane.f32.xlu0 %v4433_v33  ;;  %v4179_v48 = vmax.f32 %v4051_v44, %v7782_v34  ;;  %v9891_v34 = vmax.f32 %v7034_v59, %v7038_v45  ;;  %v9892_v33 = vmax.f32 %v7046_v16, %v7050_v26 }
 0x4d5   : > { %3008 = vmatmul.bf16.gmra.mxu3 %v7843_v42  ;;  %v7849_v41 = vpop.f32.mrf.mxu2 }
 0x4d6   : > { %v4053_v9 = vmax.f32 %v9891_v34, %v7804_v3 }
 0x4d7   : > { %v3280_v31 = vpop.f32.mrf.mxu0 }
 0x4d8   : > { %v7852_v13 = vpop.f32.mrf.mxu3  ;;  %v4306_v40 = vmax.f32 %v4178_v10, %v3280_v31  ;;  %v4054_v10 = vmax.f32 %v9892_v33, %v7812_v53  ;;  %v9893_v53 = vmax.f32 %v7058_v56, %v7062_v12 }
 0x4d9   : > { %v3609_v11 = vpop.f32.mrf.mxu1 }
 0x4da   : > { %v4434_v38 = vmax.f32 %v4306_v40, %v3609_v11  ;;  %v7891_v40 = vld [vmem:[#allocation3 + $0x80] sm:$0xff]  ;;  %v4182_v45 = vmax.f32 %v4054_v10, %v7814_v5  ;;  %v4055_v11 = vmax.f32 %v9893_v53, %v7825_v24 }
 0x4dc   : > { %5082 = vmax.xlane.f32.xlu1 %v4434_v38 }
 0x4dd   : > { %v7858_v2 = vpop.f32.mrf.mxu2 }
 0x4df   : > { %v3283_v61 = vpop.f32.mrf.mxu0 }
 0x4e0   : > { %v7861_v50 = vpop.f32.mrf.mxu3  ;;  %v4307_v39 = vmax.f32 %v4179_v48, %v3283_v61 }
 0x4e1   : > { %v3612_v30 = vpop.f32.mrf.mxu1 }
 0x4e2   : > { %v4435_v28 = vmax.f32 %v4307_v39, %v3612_v30  ;;  %2684 = vmatmul.bf16.gmra.mxu2 %v7867_v8  ;;  %3322 = vmatmul.bf16.gmra.mxu0 %v7772_v29  ;;  %v9894_v39 = vmax.f32 %v7070_v60, %v7074_v37 }
 0x4e4   : > { %3651 = vmatmul.bf16.gmra.mxu1 %v7772_v29  ;;  %5084 = vmax.xlane.f32.xlu2 %v4435_v28  ;;  %v4181_v29 = vmax.f32 %v4053_v9, %v7807_v55  ;;  %v4056_v30 = vmax.f32 %v9894_v39, %v7834_v19  ;;  %v9895_v19 = vmax.f32 %v7082_v18, %v7086_v32 }
 0x4e5   : > { %3013 = vmatmul.bf16.gmra.mxu3 %v7867_v8  ;;  %v7873_v0 = vpop.f32.mrf.mxu2  ;;  %v9896_v9 = vmax.f32 %v7092_v6, %v7098_v43 }
 0x4e6   : > { %v4184_v12 = vmax.f32 %v4056_v30, %v7837_v49  ;;  %v4057_v28 = vmax.f32 %v9895_v19, %v7849_v41  ;;  %v9904_v19 = vld [vmem:[#allocation44_spill] sm:$0xff] }
 0x4e7   : > { %v3285_v15 = vpop.f32.mrf.mxu0 }
 0x4e8   : > { %v7876_v51 = vpop.f32.mrf.mxu3  ;;  %v4308_v14 = vmax.f32 %v4180_v36, %v3285_v15 }
 0x4e9   : > { %v3614_v22 = vpop.f32.mrf.mxu1 }
 0x4ea   : > { %v4436_v62 = vmax.f32 %v4308_v14, %v3614_v22 }
 0x4ec   : > { %5086 = vmax.xlane.f32.xlu0 %v4436_v62  ;;  %v4058_v62 = vmax.f32 %v9896_v9, %v7858_v2  ;;  %v9897_v2 = vmax.f32 %v7104_v23, %v7110_v21 }
 0x4ed   : > { %v7882_v25 = vpop.f32.mrf.mxu2 }
 0x4ee   : > { %v4186_v32 = vmax.f32 %v4058_v62, %v7861_v50 }
 0x4ef   : > { %v3288_v17 = vpop.f32.mrf.mxu0 }
 0x4f0   : > { %v7885_v7 = vpop.f32.mrf.mxu3  ;;  %v4309_v54 = vmax.f32 %v4181_v29, %v3288_v17  ;;  %v7939_v17 = vld [vmem:[#allocation3 + $0x90] sm:$0xff] }
 0x4f1   : > { %v3617_v47 = vpop.f32.mrf.mxu1 }
 0x4f2   : > { %v4437_v31 = vmax.f32 %v4309_v54, %v3617_v47  ;;  %2689 = vmatmul.bf16.gmra.mxu2 %v7891_v40  ;;  %3327 = vmatmul.bf16.gmra.mxu0 %v7798_v52  ;;  %v4059_v54 = vmax.f32 %v9897_v2, %v7873_v0 }
 0x4f4   : > { %3656 = vmatmul.bf16.gmra.mxu1 %v7798_v52  ;;  %5088 = vmax.xlane.f32.xlu1 %v4437_v31  ;;  %v4183_v52 = vmax.f32 %v4055_v11, %v7828_v1  ;;  %v7963_v11 = vld [vmem:[#allocation3 + $0x98] sm:$0xff] }
 0x4f5   : > { %3018 = vmatmul.bf16.gmra.mxu3 %v7891_v40  ;;  %v7897_v59 = vpop.f32.mrf.mxu2 }
 0x4f7   : > { %v3290_v16 = vpop.f32.mrf.mxu0 }
 0x4f8   : > { %v7900_v3 = vpop.f32.mrf.mxu3  ;;  %v4310_v26 = vmax.f32 %v4182_v45, %v3290_v16  ;;  %v9898_v16 = vld [vmem:[#allocation36_spill] sm:$0xff] }
 0x4f9   : > { %v3619_v55 = vpop.f32.mrf.mxu1 }
 0x4fa   : > { %v4438_v35 = vmax.f32 %v4310_v26, %v3619_v55  ;;  %v9899_v26 = vmax.f32 %v7116_v20, %v9898_v16 }
 0x4fc   : > { %5090 = vmax.xlane.f32.xlu2 %v4438_v35  ;;  %v4060_v55 = vmax.f32 %v9899_v26, %v7882_v25 }
 0x4fd   : > { %v7906_v44 = vpop.f32.mrf.mxu2 }
 0x4fe   : > { %v4188_v23 = vmax.f32 %v4060_v55, %v7885_v7  ;;  %v9901_v7 = vld [vmem:[#allocation40_spill] sm:$0xff] }
 0x4ff   : > { %v3293_v48 = vpop.f32.mrf.mxu0 }
 0x500   : > { %v7909_v38 = vpop.f32.mrf.mxu3  ;;  %v4311_v5 = vmax.f32 %v4183_v52, %v3293_v48  ;;  %v9900_v52 = vld [vmem:[#allocation38_spill] sm:$0xff] }
 0x501   : > { %v3622_v61 = vpop.f32.mrf.mxu1  ;;  %v9902_v48 = vmax.f32 %v9900_v52, %v9901_v7 }
 0x502   : > { %v4439_v63 = vmax.f32 %v4311_v5, %v3622_v61  ;;  %2694 = vmatmul.bf16.gmra.mxu2 %v7915_v58  ;;  %3332 = vmatmul.bf16.gmra.mxu0 %v7819_v4 }
 0x503   : > { %v4061_v5 = vmax.f32 %v9902_v48, %v7897_v59  ;;  %v9903_v59 = vld [vmem:[#allocation42_spill] sm:$0xff] }
 0x504   : > { %3661 = vmatmul.bf16.gmra.mxu1 %v7819_v4  ;;  %5092 = vmax.xlane.f32.xlu0 %v4439_v63  ;;  %v4185_v4 = vmax.f32 %v4057_v28, %v7852_v13  ;;  %v9905_v28 = vmax.f32 %v9903_v59, %v9904_v19  ;;  %v9916_v59 = vld [vmem:[#allocation60_spill] sm:$0xff] }
 0x505   : > { %3023 = vmatmul.bf16.gmra.mxu3 %v7915_v58  ;;  %v7921_v56 = vpop.f32.mrf.mxu2  ;;  %v4189_v39 = vmax.f32 %v4061_v5, %v7900_v3 }
 0x506   : > { %v4062_v3 = vmax.f32 %v9905_v28, %v7906_v44  ;;  %v9906_v44 = vld [vmem:[#allocation46_spill] sm:$0xff] }
 0x507   : > { %v3295_v37 = vpop.f32.mrf.mxu0 }
 0x508   : > { %v7924_v24 = vpop.f32.mrf.mxu3  ;;  %v4312_v60 = vmax.f32 %v4184_v12, %v3295_v37 }
 0x509   : > { %v3624_v1 = vpop.f32.mrf.mxu1 }
 0x50a   : > { %v4440_v36 = vmax.f32 %v4312_v60, %v3624_v1  ;;  %v7993_v1 = vld [vmem:[#allocation3 + $0xa0] sm:$0xff] }
 0x50c   : > { %5094 = vmax.xlane.f32.xlu1 %v4440_v36 }
 0x50d   : > { %v7930_v15 = vpop.f32.mrf.mxu2 }
 0x50f   : > { %v3298_v22 = vpop.f32.mrf.mxu0 }
 0x510   : > { %v7933_v14 = vpop.f32.mrf.mxu3  ;;  %v4313_v49 = vmax.f32 %v4185_v4, %v3298_v22  ;;  %v4190_v22 = vmax.f32 %v4062_v3, %v7909_v38 }
 0x511   : > { %v3627_v34 = vpop.f32.mrf.mxu1 }
 0x512   : > { %v4441_v29 = vmax.f32 %v4313_v49, %v3627_v34  ;;  %2699 = vmatmul.bf16.gmra.mxu2 %v7939_v17  ;;  %3337 = vmatmul.bf16.gmra.mxu0 %v7843_v42 }
 0x514   : > { %3666 = vmatmul.bf16.gmra.mxu1 %v7843_v42  ;;  %5096 = vmax.xlane.f32.xlu2 %v4441_v29  ;;  %v4187_v42 = vmax.f32 %v4059_v54, %v7876_v51 }
 0x515   : > { %3028 = vmatmul.bf16.gmra.mxu3 %v7939_v17  ;;  %v7945_v18 = vpop.f32.mrf.mxu2 }
 0x517   : > { %v3300_v43 = vpop.f32.mrf.mxu0 }
 0x518   : > { %v7948_v41 = vpop.f32.mrf.mxu3  ;;  %v4314_v6 = vmax.f32 %v4186_v32, %v3300_v43  ;;  %v9907_v32 = vld [vmem:[#allocation48_spill] sm:$0xff] }
 0x519   : > { %v3629_v13 = vpop.f32.mrf.mxu1  ;;  %v9908_v43 = vmax.f32 %v9906_v44, %v9907_v32  ;;  %v9919_v44 = vld [vmem:[#allocation64_spill] sm:$0xff] }
 0x51a   : > { %v4442_v47 = vmax.f32 %v4314_v6, %v3629_v13 }
 0x51b   : > { %v4063_v6 = vmax.f32 %v9908_v43, %v7921_v56  ;;  %v9909_v56 = vld [vmem:[#allocation50_spill] sm:$0xff] }
 0x51c   : > { %5098 = vmax.xlane.f32.xlu0 %v4442_v47 }
 0x51d   : > { %v7954_v33 = vpop.f32.mrf.mxu2  ;;  %v4191_v2 = vmax.f32 %v4063_v6, %v7924_v24 }
 0x51f   : > { %v3303_v50 = vpop.f32.mrf.mxu0 }
 0x520   : > { %v7957_v10 = vpop.f32.mrf.mxu3  ;;  %v4315_v31 = vmax.f32 %v4187_v42, %v3303_v50 }
 0x521   : > { %v3632_v45 = vpop.f32.mrf.mxu1 }
 0x522   : > { %v4443_v53 = vmax.f32 %v4315_v31, %v3632_v45  ;;  %2704 = vmatmul.bf16.gmra.mxu2 %v7963_v11  ;;  %3342 = vmatmul.bf16.gmra.mxu0 %v7867_v8  ;;  %v8021_v31 = vld [vmem:[#allocation3 + $0xa8] sm:$0xff]  ;;  %v9910_v45 = vld [vmem:[#allocation52_spill] sm:$0xff] }
 0x523   : > { %v9911_v16 = vmax.f32 %v9909_v56, %v9910_v45  ;;  %v9922_v56 = vld [vmem:[#allocation68_spill] sm:$0xff] }
 0x524   : > { %3671 = vmatmul.bf16.gmra.mxu1 %v7867_v8  ;;  %5100 = vmax.xlane.f32.xlu1 %v4443_v53 }
 0x525   : > { %3033 = vmatmul.bf16.gmra.mxu3 %v7963_v11  ;;  %v7970_v21 = vpop.f32.mrf.mxu2  ;;  %v4064_v24 = vmax.f32 %v9911_v16, %v7930_v15  ;;  %v9912_v15 = vld [vmem:[#allocation54_spill] sm:$0xff] }
 0x527   : > { %v3305_v0 = vpop.f32.mrf.mxu0  ;;  %v5073_v51 = vpop.xlane.xlu0 %5072  ;;  %v4192_v53 = vmax.f32 %v4064_v24, %v7933_v14 }
 0x528   : > { %v7978_v20 = vpop.f32.mrf.mxu3  ;;  %v4316_v25 = vmax.f32 %v4188_v23, %v3305_v0  ;;  %5329 = vst.msk [vmem:[%s7976_s9] sm:$0xff] %vm5328_vm4, %v5073_v51 }
 0x529   : > { %v3634_v8 = vpop.f32.mrf.mxu1 }
 0x52a   : > { %v4444_v35 = vmax.f32 %v4316_v25, %v3634_v8 }
 0x52c   : > { %5102 = vmax.xlane.f32.xlu2 %v4444_v35  ;;  %v9913_v35 = vld [vmem:[#allocation56_spill] sm:$0xff] }
 0x52d   : > { %v7986_v61 = vpop.f32.mrf.mxu2  ;;  %v9914_v52 = vmax.f32 %v9912_v15, %v9913_v35  ;;  %v9925_v15 = vld [vmem:[#allocation72_spill] sm:$0xff] }
 0x52f   : > { %v5075_v63 = vpop.xlane.xlu1 %5074  ;;  %v3308_v12 = vpop.f32.mrf.mxu0  ;;  %v4065_v7 = vmax.f32 %v9914_v52, %v7945_v18  ;;  %v9915_v18 = vld [vmem:[#allocation58_spill] sm:$0xff] }
 0x530   : > { %v7989_v30 = vpop.f32.mrf.mxu3  ;;  %5330 = vst.msk [vmem:[%s7976_s9 + $0x8] sm:$0xff] %vm5328_vm4, %v5075_v63  ;;  %v4317_v37 = vmax.f32 %v4189_v39, %v3308_v12  ;;  %v9917_v19 = vmax.f32 %v9915_v18, %v9916_v59  ;;  %v9928_v18 = vld [vmem:[#allocation76_spill] sm:$0xff] }
 0x531   : > { %v3637_v60 = vpop.f32.mrf.mxu1  ;;  %v4193_v5 = vmax.f32 %v4065_v7, %v7948_v41 }
 0x532   : > { %2709 = vmatmul.bf16.gmra.mxu2 %v7993_v1  ;;  %3347 = vmatmul.bf16.gmra.mxu0 %v7891_v40  ;;  %v4445_v36 = vmax.f32 %v4317_v37, %v3637_v60  ;;  %v8049_v60 = vld [vmem:[#allocation3 + $0xb0] sm:$0xff]  ;;  %v4066_v41 = vmax.f32 %v9917_v19, %v7954_v33  ;;  %v9918_v33 = vld [vmem:[#allocation62_spill] sm:$0xff] }
 0x533   : > { %v9920_v32 = vmax.f32 %v9918_v33, %v9919_v44  ;;  %v9931_v33 = vld [vmem:[#allocation80_spill] sm:$0xff] }
 0x534   : > { %3676 = vmatmul.bf16.gmra.mxu1 %v7891_v40  ;;  %5104 = vmax.xlane.f32.xlu0 %v4445_v36  ;;  %v4194_v36 = vmax.f32 %v4066_v41, %v7957_v10 }
 0x535   : > { %3038 = vmatmul.bf16.gmra.mxu3 %v7993_v1  ;;  %v8003_v4 = vpop.f32.mrf.mxu2  ;;  %v4067_v43 = vmax.f32 %v9920_v32, %v7970_v21  ;;  %v9921_v21 = vld [vmem:[#allocation66_spill] sm:$0xff] }
 0x536   : > { %v9923_v45 = vmax.f32 %v9921_v21, %v9922_v56  ;;  %v9934_v21 = vld [vmem:[#allocation84_spill] sm:$0xff] }
 0x537   : > { %v5077_v34 = vpop.xlane.xlu2 %5076  ;;  %v3310_v9 = vpop.f32.mrf.mxu0 }
 0x538   : > { %v8006_v49 = vpop.f32.mrf.mxu3  ;;  %5331 = vst.msk [vmem:[%s7976_s9 + $0x10] sm:$0xff] %vm5328_vm4, %v5077_v34  ;;  %v4318_v62 = vmax.f32 %v4190_v22, %v3310_v9 }
 0x539   : > { %v3639_v29 = vpop.f32.mrf.mxu1 }
 0x53a   : > { %v4446_v40 = vmax.f32 %v4318_v62, %v3639_v29 }
 0x53c   : > { %5106 = vmax.xlane.f32.xlu1 %v4446_v40  ;;  %v4195_v40 = vmax.f32 %v4067_v43, %v7978_v20  ;;  %v4068_v20 = vmax.f32 %v9923_v45, %v7986_v61  ;;  %v9924_v61 = vld [vmem:[#allocation70_spill] sm:$0xff] }
 0x53d   : > { %v8014_v13 = vpop.f32.mrf.mxu2  ;;  %v9926_v35 = vmax.f32 %v9924_v61, %v9925_v15  ;;  %v9937_v61 = vld [vmem:[#allocation88_spill] sm:$0xff] }
 0x53f   : > { %v5079_v54 = vpop.xlane.xlu2 %5078  ;;  %v3313_v47 = vpop.f32.mrf.mxu0  ;;  %v4069_v52 = vmax.f32 %v9926_v35, %v8003_v4  ;;  %v9927_v4 = vld [vmem:[#allocation74_spill] sm:$0xff] }
 0x540   : > { %v8017_v38 = vpop.f32.mrf.mxu3  ;;  %5332 = vst.msk [vmem:[%s7976_s9 + $0x18] sm:$0xff] %vm5328_vm4, %v5079_v54  ;;  %v4319_v42 = vmax.f32 %v4191_v2, %v3313_v47  ;;  %v9929_v59 = vmax.f32 %v9927_v4, %v9928_v18  ;;  %v9940_v4 = vld [vmem:[#allocation92_spill] sm:$0xff] }
 0x541   : > { %v3642_v50 = vpop.f32.mrf.mxu1 }
 0x542   : > { %2714 = vmatmul.bf16.gmra.mxu2 %v8021_v31  ;;  %3352 = vmatmul.bf16.gmra.mxu0 %v7915_v58  ;;  %v4447_v26 = vmax.f32 %v4319_v42, %v3642_v50  ;;  %v8077_v50 = vld [vmem:[#allocation3 + $0xb8] sm:$0xff] }
 0x544   : > { %3681 = vmatmul.bf16.gmra.mxu1 %v7915_v58  ;;  %5108 = vmax.xlane.f32.xlu2 %v4447_v26  ;;  %v4196_v26 = vmax.f32 %v4068_v20, %v7989_v30 }
 0x545   : > { %3043 = vmatmul.bf16.gmra.mxu3 %v8021_v31  ;;  %v8031_v55 = vpop.f32.mrf.mxu2 }
 0x547   : > { %v5081_v0 = vpop.xlane.xlu0 %5080  ;;  %v3315_v51 = vpop.f32.mrf.mxu0 }
 0x548   : > { %v8034_v23 = vpop.f32.mrf.mxu3  ;;  %5333 = vst.msk [vmem:[%s7976_s9 + $0x20] sm:$0xff] %vm5328_vm4, %v5081_v0  ;;  %v4320_v25 = vmax.f32 %v4192_v53, %v3315_v51 }
 0x549   : > { %v3644_v8 = vpop.f32.mrf.mxu1 }
 0x54a   : > { %v4448_v58 = vmax.f32 %v4320_v25, %v3644_v8 }
 0x54c   : > { %5110 = vmax.xlane.f32.xlu0 %v4448_v58  ;;  %v4197_v58 = vmax.f32 %v4069_v52, %v8006_v49  ;;  %v4070_v49 = vmax.f32 %v9929_v59, %v8014_v13  ;;  %v9930_v13 = vld [vmem:[#allocation78_spill] sm:$0xff] }
 0x54d   : > { %v8042_v48 = vpop.f32.mrf.mxu2  ;;  %v9932_v44 = vmax.f32 %v9930_v13, %v9931_v33  ;;  %v9943_v13 = vld [vmem:[#allocation96_spill] sm:$0xff] }
 0x54f   : > { %v5083_v39 = vpop.xlane.xlu1 %5082  ;;  %v3318_v63 = vpop.f32.mrf.mxu0  ;;  %v4071_v32 = vmax.f32 %v9932_v44, %v8031_v55  ;;  %v9933_v55 = vld [vmem:[#allocation82_spill] sm:$0xff] }
 0x550   : > { %v8045_v14 = vpop.f32.mrf.mxu3  ;;  %5334 = vst.msk [vmem:[%s7976_s9 + $0x28] sm:$0xff] %vm5328_vm4, %v5083_v39  ;;  %v4321_v12 = vmax.f32 %v4193_v5, %v3318_v63  ;;  %v9935_v56 = vmax.f32 %v9933_v55, %v9934_v21  ;;  %v9946_v55 = vld [vmem:[#allocation100_spill] sm:$0xff] }
 0x551   : > { %v3647_v37 = vpop.f32.mrf.mxu1 }
 0x552   : > { %2719 = vmatmul.bf16.gmra.mxu2 %v8049_v60  ;;  %3357 = vmatmul.bf16.gmra.mxu0 %v7939_v17  ;;  %v4449_v28 = vmax.f32 %v4321_v12, %v3647_v37  ;;  %v8105_v37 = vld [vmem:[#allocation3 + $0xc0] sm:$0xff] }
 0x554   : > { %3686 = vmatmul.bf16.gmra.mxu1 %v7939_v17  ;;  %5112 = vmax.xlane.f32.xlu1 %v4449_v28  ;;  %v4198_v28 = vmax.f32 %v4070_v49, %v8017_v38 }
 0x555   : > { %3048 = vmatmul.bf16.gmra.mxu3 %v8049_v60  ;;  %v8059_v3 = vpop.f32.mrf.mxu2 }
 0x557   : > { %v5085_v34 = vpop.xlane.xlu2 %5084  ;;  %v3320_v9 = vpop.f32.mrf.mxu0 }
 0x558   : > { %v8062_v22 = vpop.f32.mrf.mxu3  ;;  %5335 = vst.msk [vmem:[%s7976_s9 + $0x30] sm:$0xff] %vm5328_vm4, %v5085_v34  ;;  %v4322_v62 = vmax.f32 %v4194_v36, %v3320_v9 }
 0x559   : > { %v3649_v29 = vpop.f32.mrf.mxu1 }
 0x55a   : > { %v4450_v17 = vmax.f32 %v4322_v62, %v3649_v29 }
 0x55c   : > { %5114 = vmax.xlane.f32.xlu2 %v4450_v17  ;;  %v4199_v17 = vmax.f32 %v4071_v32, %v8034_v23  ;;  %v4072_v23 = vmax.f32 %v9935_v56, %v8042_v48  ;;  %v9936_v48 = vld [vmem:[#allocation86_spill] sm:$0xff] }
 0x55d   : > { %v8070_v6 = vpop.f32.mrf.mxu2  ;;  %v9938_v15 = vmax.f32 %v9936_v48, %v9937_v61  ;;  %v9949_v48 = vld [vmem:[#allocation104_spill] sm:$0xff] }
 0x55f   : > { %v5087_v2 = vpop.xlane.xlu0 %5086  ;;  %v3323_v54 = vpop.f32.mrf.mxu0  ;;  %v4073_v35 = vmax.f32 %v9938_v15, %v8059_v3  ;;  %v9939_v3 = vld [vmem:[#allocation90_spill] sm:$0xff] }
 0x560   : > { %v8073_v10 = vpop.f32.mrf.mxu3  ;;  %5336 = vst.msk [vmem:[%s7976_s9 + $0x38] sm:$0xff] %vm5328_vm4, %v5087_v2  ;;  %v4323_v47 = vmax.f32 %v4195_v40, %v3323_v54  ;;  %v9941_v18 = vmax.f32 %v9939_v3, %v9940_v4  ;;  %v9952_v3 = vld [vmem:[#allocation108_spill] sm:$0xff] }
 0x561   : > { %v3652_v42 = vpop.f32.mrf.mxu1 }
 0x562   : > { %2724 = vmatmul.bf16.gmra.mxu2 %v8077_v50  ;;  %3362 = vmatmul.bf16.gmra.mxu0 %v7963_v11  ;;  %v4451_v16 = vmax.f32 %v4323_v47, %v3652_v42  ;;  %v8133_v42 = vld [vmem:[#allocation3 + $0xc8] sm:$0xff] }
 0x564   : > { %3691 = vmatmul.bf16.gmra.mxu1 %v7963_v11  ;;  %5116 = vmax.xlane.f32.xlu0 %v4451_v16  ;;  %v4200_v16 = vmax.f32 %v4072_v23, %v8045_v14 }
 0x565   : > { %3053 = vmatmul.bf16.gmra.mxu3 %v8077_v50  ;;  %v8087_v24 = vpop.f32.mrf.mxu2 }
 0x567   : > { %v5089_v0 = vpop.xlane.xlu1 %5088  ;;  %v3325_v51 = vpop.f32.mrf.mxu0 }
 0x568   : > { %v8090_v53 = vpop.f32.mrf.mxu3  ;;  %5337 = vst.msk [vmem:[%s7976_s9 + $0x40] sm:$0xff] %vm5328_vm4, %v5089_v0  ;;  %v4324_v25 = vmax.f32 %v4196_v26, %v3325_v51 }
 0x569   : > { %v3654_v8 = vpop.f32.mrf.mxu1 }
 0x56a   : > { %v4452_v11 = vmax.f32 %v4324_v25, %v3654_v8 }
 0x56c   : > { %5118 = vmax.xlane.f32.xlu1 %v4452_v11  ;;  %v4201_v11 = vmax.f32 %v4073_v35, %v8062_v22  ;;  %v4074_v22 = vmax.f32 %v9941_v18, %v8070_v6  ;;  %v9942_v6 = vld [vmem:[#allocation94_spill] sm:$0xff] }
 0x56d   : > { %v8098_v7 = vpop.f32.mrf.mxu2  ;;  %v9944_v33 = vmax.f32 %v9942_v6, %v9943_v13  ;;  %v9955_v6 = vld [vmem:[#allocation112_spill] sm:$0xff] }
 0x56f   : > { %v5091_v5 = vpop.xlane.xlu2 %5090  ;;  %v3328_v39 = vpop.f32.mrf.mxu0  ;;  %v4075_v44 = vmax.f32 %v9944_v33, %v8087_v24  ;;  %v9945_v24 = vld [vmem:[#allocation98_spill] sm:$0xff] }
 0x570   : > { %v8101_v30 = vpop.f32.mrf.mxu3  ;;  %5338 = vst.msk [vmem:[%s7976_s9 + $0x48] sm:$0xff] %vm5328_vm4, %v5091_v5  ;;  %v4325_v63 = vmax.f32 %v4197_v58, %v3328_v39  ;;  %v9947_v21 = vmax.f32 %v9945_v24, %v9946_v55  ;;  %v9958_v24 = vld [vmem:[#allocation116_spill] sm:$0xff] }
 0x571   : > { %v3657_v12 = vpop.f32.mrf.mxu1 }
 0x572   : > { %2729 = vmatmul.bf16.gmra.mxu2 %v8105_v37  ;;  %3367 = vmatmul.bf16.gmra.mxu0 %v7993_v1  ;;  %v4453_v19 = vmax.f32 %v4325_v63, %v3657_v12  ;;  %v8161_v12 = vld [vmem:[#allocation3 + $0xd0] sm:$0xff] }
 0x574   : > { %3696 = vmatmul.bf16.gmra.mxu1 %v7993_v1  ;;  %5120 = vmax.xlane.f32.xlu2 %v4453_v19  ;;  %v4202_v19 = vmax.f32 %v4074_v22, %v8073_v10 }
 0x575   : > { %3058 = vmatmul.bf16.gmra.mxu3 %v8105_v37  ;;  %v8115_v41 = vpop.f32.mrf.mxu2 }
 0x577   : > { %v5093_v34 = vpop.xlane.xlu0 %5092  ;;  %v3330_v9 = vpop.f32.mrf.mxu0 }
 0x578   : > { %v8118_v36 = vpop.f32.mrf.mxu3  ;;  %5339 = vst.msk [vmem:[%s7976_s9 + $0x50] sm:$0xff] %vm5328_vm4, %v5093_v34  ;;  %v4326_v62 = vmax.f32 %v4198_v28, %v3330_v9 }
 0x579   : > { %v3659_v29 = vpop.f32.mrf.mxu1 }
 0x57a   : > { %v4454_v1 = vmax.f32 %v4326_v62, %v3659_v29 }
 0x57c   : > { %5122 = vmax.xlane.f32.xlu0 %v4454_v1  ;;  %v4203_v1 = vmax.f32 %v4075_v44, %v8090_v53  ;;  %v4076_v53 = vmax.f32 %v9947_v21, %v8098_v7  ;;  %v9948_v7 = vld [vmem:[#allocation102_spill] sm:$0xff] }
 0x57d   : > { %v8126_v43 = vpop.f32.mrf.mxu2  ;;  %v9950_v61 = vmax.f32 %v9948_v7, %v9949_v48  ;;  %v9961_v7 = vld [vmem:[#allocation120_spill] sm:$0xff] }
 0x57f   : > { %v5095_v40 = vpop.xlane.xlu1 %5094  ;;  %v3333_v2 = vpop.f32.mrf.mxu0  ;;  %v4077_v15 = vmax.f32 %v9950_v61, %v8115_v41  ;;  %v9951_v41 = vld [vmem:[#allocation106_spill] sm:$0xff] }
 0x580   : > { %v8129_v38 = vpop.f32.mrf.mxu3  ;;  %5340 = vst.msk [vmem:[%s7976_s9 + $0x58] sm:$0xff] %vm5328_vm4, %v5095_v40  ;;  %v4327_v54 = vmax.f32 %v4199_v17, %v3333_v2  ;;  %v9953_v4 = vmax.f32 %v9951_v41, %v9952_v3  ;;  %v9964_v41 = vld [vmem:[#allocation124_spill] sm:$0xff] }
 0x581   : > { %v3662_v47 = vpop.f32.mrf.mxu1 }
 0x582   : > { %2734 = vmatmul.bf16.gmra.mxu2 %v8133_v42  ;;  %3372 = vmatmul.bf16.gmra.mxu0 %v8021_v31  ;;  %v4455_v45 = vmax.f32 %v4327_v54, %v3662_v47  ;;  %v8189_v47 = vld [vmem:[#allocation3 + $0xd8] sm:$0xff] }
 0x584   : > { %3701 = vmatmul.bf16.gmra.mxu1 %v8021_v31  ;;  %5124 = vmax.xlane.f32.xlu1 %v4455_v45  ;;  %v4204_v45 = vmax.f32 %v4076_v53, %v8101_v30 }
 0x585   : > { %3063 = vmatmul.bf16.gmra.mxu3 %v8133_v42  ;;  %v8143_v20 = vpop.f32.mrf.mxu2 }
 0x587   : > { %v5097_v0 = vpop.xlane.xlu2 %5096  ;;  %v3335_v51 = vpop.f32.mrf.mxu0 }
 0x588   : > { %v8146_v26 = vpop.f32.mrf.mxu3  ;;  %5341 = vst.msk [vmem:[%s7976_s9 + $0x60] sm:$0xff] %vm5328_vm4, %v5097_v0  ;;  %v4328_v25 = vmax.f32 %v4200_v16, %v3335_v51 }
 0x589   : > { %v3664_v8 = vpop.f32.mrf.mxu1 }
 0x58a   : > { %v4456_v31 = vmax.f32 %v4328_v25, %v3664_v8 }
 0x58c   : > { %5126 = vmax.xlane.f32.xlu2 %v4456_v31  ;;  %v4205_v31 = vmax.f32 %v4077_v15, %v8118_v36  ;;  %v4078_v36 = vmax.f32 %v9953_v4, %v8126_v43  ;;  %v9954_v43 = vld [vmem:[#allocation110_spill] sm:$0xff] }
 0x58d   : > { %v8154_v52 = vpop.f32.mrf.mxu2  ;;  %v9956_v13 = vmax.f32 %v9954_v43, %v9955_v6  ;;  %v9967_v43 = vld [vmem:[#allocation128_spill] sm:$0xff] }
 0x58f   : > { %v5099_v58 = vpop.xlane.xlu0 %5098  ;;  %v3338_v5 = vpop.f32.mrf.mxu0  ;;  %v4079_v33 = vmax.f32 %v9956_v13, %v8143_v20  ;;  %v9957_v20 = vld [vmem:[#allocation114_spill] sm:$0xff] }
 0x590   : > { %v8157_v14 = vpop.f32.mrf.mxu3  ;;  %5342 = vst.msk [vmem:[%s7976_s9 + $0x68] sm:$0xff] %vm5328_vm4, %v5099_v58  ;;  %v4329_v39 = vmax.f32 %v4201_v11, %v3338_v5  ;;  %v9959_v55 = vmax.f32 %v9957_v20, %v9958_v24  ;;  %v9970_v20 = vld [vmem:[#allocation132_spill] sm:$0xff] }
 0x591   : > { %v3667_v63 = vpop.f32.mrf.mxu1 }
 0x592   : > { %2739 = vmatmul.bf16.gmra.mxu2 %v8161_v12  ;;  %3377 = vmatmul.bf16.gmra.mxu0 %v8049_v60  ;;  %v4457_v59 = vmax.f32 %v4329_v39, %v3667_v63  ;;  %v8217_v63 = vld [vmem:[#allocation3 + $0xe0] sm:$0xff] }
 0x594   : > { %3706 = vmatmul.bf16.gmra.mxu1 %v8049_v60  ;;  %5128 = vmax.xlane.f32.xlu0 %v4457_v59  ;;  %v4206_v59 = vmax.f32 %v4078_v36, %v8129_v38 }
 0x595   : > { %3068 = vmatmul.bf16.gmra.mxu3 %v8161_v12  ;;  %v8171_v49 = vpop.f32.mrf.mxu2 }
 0x597   : > { %v5101_v34 = vpop.xlane.xlu1 %5100  ;;  %v3340_v9 = vpop.f32.mrf.mxu0 }
 0x598   : > { %v8174_v28 = vpop.f32.mrf.mxu3  ;;  %5343 = vst.msk [vmem:[%s7976_s9 + $0x70] sm:$0xff] %vm5328_vm4, %v5101_v34  ;;  %v4330_v62 = vmax.f32 %v4202_v19, %v3340_v9 }
 0x599   : > { %v3669_v29 = vpop.f32.mrf.mxu1 }
 0x59a   : > { %v4458_v60 = vmax.f32 %v4330_v62, %v3669_v29 }
 0x59c   : > { %5130 = vmax.xlane.f32.xlu1 %v4458_v60  ;;  %v4207_v60 = vmax.f32 %v4079_v33, %v8146_v26  ;;  %v4080_v26 = vmax.f32 %v9959_v55, %v8154_v52  ;;  %v9960_v52 = vld [vmem:[#allocation118_spill] sm:$0xff] }
 0x59d   : > { %v8182_v32 = vpop.f32.mrf.mxu2  ;;  %v9962_v48 = vmax.f32 %v9960_v52, %v9961_v7  ;;  %v9973_v52 = vld [vmem:[#allocation136_spill] sm:$0xff] }
 0x59f   : > { %v5103_v17 = vpop.xlane.xlu2 %5102  ;;  %v3343_v40 = vpop.f32.mrf.mxu0  ;;  %v4081_v61 = vmax.f32 %v9962_v48, %v8171_v49  ;;  %v9963_v49 = vld [vmem:[#allocation122_spill] sm:$0xff] }
 0x5a0   : > { %v8185_v10 = vpop.f32.mrf.mxu3  ;;  %5344 = vst.msk [vmem:[%s7976_s9 + $0x78] sm:$0xff] %vm5328_vm4, %v5103_v17  ;;  %v4331_v2 = vmax.f32 %v4203_v1, %v3343_v40  ;;  %v9965_v3 = vmax.f32 %v9963_v49, %v9964_v41  ;;  %v9976_v49 = vld [vmem:[#allocation140_spill] sm:$0xff] }
 0x5a1   : > { %v3672_v54 = vpop.f32.mrf.mxu1 }
 0x5a2   : > { %2744 = vmatmul.bf16.gmra.mxu2 %v8189_v47  ;;  %3382 = vmatmul.bf16.gmra.mxu0 %v8077_v50  ;;  %v4459_v56 = vmax.f32 %v4331_v2, %v3672_v54  ;;  %v8245_v54 = vld [vmem:[#allocation3 + $0xe8] sm:$0xff] }
 0x5a4   : > { %3711 = vmatmul.bf16.gmra.mxu1 %v8077_v50  ;;  %5132 = vmax.xlane.f32.xlu2 %v4459_v56  ;;  %v4208_v56 = vmax.f32 %v4080_v26, %v8157_v14 }
 0x5a5   : > { %3073 = vmatmul.bf16.gmra.mxu3 %v8189_v47  ;;  %v8199_v23 = vpop.f32.mrf.mxu2 }
 0x5a7   : > { %v5105_v0 = vpop.xlane.xlu0 %5104  ;;  %v3345_v51 = vpop.f32.mrf.mxu0 }
 0x5a8   : > { %v8202_v16 = vpop.f32.mrf.mxu3  ;;  %5345 = vst.msk [vmem:[%s7976_s9 + $0x80] sm:$0xff] %vm5328_vm4, %v5105_v0  ;;  %v4332_v25 = vmax.f32 %v4204_v45, %v3345_v51 }
 0x5a9   : > { %v3674_v8 = vpop.f32.mrf.mxu1 }
 0x5aa   : > { %v4460_v50 = vmax.f32 %v4332_v25, %v3674_v8 }
 0x5ac   : > { %5134 = vmax.xlane.f32.xlu0 %v4460_v50  ;;  %v4209_v50 = vmax.f32 %v4081_v61, %v8174_v28  ;;  %v4082_v28 = vmax.f32 %v9965_v3, %v8182_v32  ;;  %v9966_v32 = vld [vmem:[#allocation126_spill] sm:$0xff] }
 0x5ad   : > { %v8210_v35 = vpop.f32.mrf.mxu2  ;;  %v9968_v6 = vmax.f32 %v9966_v32, %v9967_v43  ;;  %v9979_v32 = vld [vmem:[#allocation144_spill] sm:$0xff] }
 0x5af   : > { %v5107_v11 = vpop.xlane.xlu1 %5106  ;;  %v3348_v58 = vpop.f32.mrf.mxu0  ;;  %v4083_v13 = vmax.f32 %v9968_v6, %v8199_v23  ;;  %v9969_v23 = vld [vmem:[#allocation130_spill] sm:$0xff] }
 0x5b0   : > { %v8213_v30 = vpop.f32.mrf.mxu3  ;;  %5346 = vst.msk [vmem:[%s7976_s9 + $0x88] sm:$0xff] %vm5328_vm4, %v5107_v11  ;;  %v4333_v5 = vmax.f32 %v4205_v31, %v3348_v58  ;;  %v9971_v24 = vmax.f32 %v9969_v23, %v9970_v20  ;;  %v9982_v23 = vld [vmem:[#allocation148_spill] sm:$0xff] }
 0x5b1   : > { %v3677_v39 = vpop.f32.mrf.mxu1 }
 0x5b2   : > { %2749 = vmatmul.bf16.gmra.mxu2 %v8217_v63  ;;  %3387 = vmatmul.bf16.gmra.mxu0 %v8105_v37  ;;  %v4461_v18 = vmax.f32 %v4333_v5, %v3677_v39  ;;  %v8273_v39 = vld [vmem:[#allocation3 + $0xf0] sm:$0xff] }
 0x5b4   : > { %3716 = vmatmul.bf16.gmra.mxu1 %v8105_v37  ;;  %5136 = vmax.xlane.f32.xlu1 %v4461_v18  ;;  %v4210_v18 = vmax.f32 %v4082_v28, %v8185_v10 }
 0x5b5   : > { %3078 = vmatmul.bf16.gmra.mxu3 %v8217_v63  ;;  %v8227_v22 = vpop.f32.mrf.mxu2 }
 0x5b7   : > { %v5109_v34 = vpop.xlane.xlu2 %5108  ;;  %v3350_v9 = vpop.f32.mrf.mxu0 }
 0x5b8   : > { %v8230_v19 = vpop.f32.mrf.mxu3  ;;  %5347 = vst.msk [vmem:[%s7976_s9 + $0x90] sm:$0xff] %vm5328_vm4, %v5109_v34  ;;  %v4334_v62 = vmax.f32 %v4206_v59, %v3350_v9 }
 0x5b9   : > { %v3679_v29 = vpop.f32.mrf.mxu1 }
 0x5ba   : > { %v4462_v37 = vmax.f32 %v4334_v62, %v3679_v29 }
 0x5bc   : > { %5138 = vmax.xlane.f32.xlu2 %v4462_v37  ;;  %v4211_v37 = vmax.f32 %v4083_v13, %v8202_v16  ;;  %v4084_v16 = vmax.f32 %v9971_v24, %v8210_v35  ;;  %v9972_v35 = vld [vmem:[#allocation134_spill] sm:$0xff] }
 0x5bd   : > { %v8238_v44 = vpop.f32.mrf.mxu2  ;;  %v9974_v7 = vmax.f32 %v9972_v35, %v9973_v52  ;;  %v9985_v35 = vld [vmem:[#allocation152_spill] sm:$0xff] }
 0x5bf   : > { %v5111_v1 = vpop.xlane.xlu0 %5110  ;;  %v3353_v17 = vpop.f32.mrf.mxu0  ;;  %v4085_v48 = vmax.f32 %v9974_v7, %v8227_v22  ;;  %v9975_v22 = vld [vmem:[#allocation138_spill] sm:$0xff] }
 0x5c0   : > { %v8241_v38 = vpop.f32.mrf.mxu3  ;;  %5348 = vst.msk [vmem:[%s7976_s9 + $0x98] sm:$0xff] %vm5328_vm4, %v5111_v1  ;;  %v4335_v40 = vmax.f32 %v4207_v60, %v3353_v17  ;;  %v9977_v41 = vmax.f32 %v9975_v22, %v9976_v49  ;;  %v9988_v22 = vld [vmem:[#allocation156_spill] sm:$0xff] }
 0x5c1   : > { %v3682_v2 = vpop.f32.mrf.mxu1 }
 0x5c2   : > { %2754 = vmatmul.bf16.gmra.mxu2 %v8245_v54  ;;  %3392 = vmatmul.bf16.gmra.mxu0 %v8133_v42  ;;  %v4463_v21 = vmax.f32 %v4335_v40, %v3682_v2  ;;  %v8301_v2 = vld [vmem:[#allocation3 + $0xf8] sm:$0xff] }
 0x5c4   : > { %3721 = vmatmul.bf16.gmra.mxu1 %v8133_v42  ;;  %5140 = vmax.xlane.f32.xlu0 %v4463_v21  ;;  %v4212_v21 = vmax.f32 %v4084_v16, %v8213_v30 }
 0x5c5   : > { %3083 = vmatmul.bf16.gmra.mxu3 %v8245_v54  ;;  %v8255_v53 = vpop.f32.mrf.mxu2 }
 0x5c7   : > { %v5113_v0 = vpop.xlane.xlu1 %5112  ;;  %v3355_v51 = vpop.f32.mrf.mxu0 }
 0x5c8   : > { %v8258_v45 = vpop.f32.mrf.mxu3  ;;  %5349 = vst.msk [vmem:[%s7976_s9 + $0xa0] sm:$0xff] %vm5328_vm4, %v5113_v0  ;;  %v4336_v25 = vmax.f32 %v4208_v56, %v3355_v51 }
 0x5c9   : > { %v3684_v8 = vpop.f32.mrf.mxu1 }
 0x5ca   : > { %v4464_v42 = vmax.f32 %v4336_v25, %v3684_v8 }
 0x5cc   : > { %5142 = vmax.xlane.f32.xlu1 %v4464_v42  ;;  %v4213_v42 = vmax.f32 %v4085_v48, %v8230_v19  ;;  %v4086_v19 = vmax.f32 %v9977_v41, %v8238_v44  ;;  %v9978_v44 = vld [vmem:[#allocation142_spill] sm:$0xff] }
 0x5cd   : > { %v8266_v15 = vpop.f32.mrf.mxu2  ;;  %v9980_v43 = vmax.f32 %v9978_v44, %v9979_v32  ;;  %v9991_v44 = vld [vmem:[#allocation160_spill] sm:$0xff] }
 0x5cf   : > { %v5115_v31 = vpop.xlane.xlu2 %5114  ;;  %v3358_v11 = vpop.f32.mrf.mxu0  ;;  %v4087_v6 = vmax.f32 %v9980_v43, %v8255_v53  ;;  %v9981_v53 = vld [vmem:[#allocation146_spill] sm:$0xff] }
 0x5d0   : > { %v8269_v14 = vpop.f32.mrf.mxu3  ;;  %5350 = vst.msk [vmem:[%s7976_s9 + $0xa8] sm:$0xff] %vm5328_vm4, %v5115_v31  ;;  %v4337_v58 = vmax.f32 %v4209_v50, %v3358_v11  ;;  %v9983_v20 = vmax.f32 %v9981_v53, %v9982_v23  ;;  %v9994_v53 = vld [vmem:[#allocation164_spill] sm:$0xff] }
 0x5d1   : > { %v3687_v5 = vpop.f32.mrf.mxu1 }
 0x5d2   : > { %2759 = vmatmul.bf16.gmra.mxu2 %v8273_v39  ;;  %3397 = vmatmul.bf16.gmra.mxu0 %v8161_v12  ;;  %v4465_v4 = vmax.f32 %v4337_v58, %v3687_v5  ;;  %v8329_v5 = vld [vmem:[#allocation3 + $0x100] sm:$0xff] }
 0x5d4   : > { %3726 = vmatmul.bf16.gmra.mxu1 %v8161_v12  ;;  %5144 = vmax.xlane.f32.xlu2 %v4465_v4  ;;  %v4214_v4 = vmax.f32 %v4086_v19, %v8241_v38 }
 0x5d5   : > { %3088 = vmatmul.bf16.gmra.mxu3 %v8273_v39  ;;  %v8283_v36 = vpop.f32.mrf.mxu2 }
 0x5d7   : > { %v5117_v34 = vpop.xlane.xlu0 %5116  ;;  %v3360_v9 = vpop.f32.mrf.mxu0 }
 0x5d8   : > { %v8286_v59 = vpop.f32.mrf.mxu3  ;;  %5351 = vst.msk [vmem:[%s7976_s9 + $0xb0] sm:$0xff] %vm5328_vm4, %v5117_v34  ;;  %v4338_v62 = vmax.f32 %v4210_v18, %v3360_v9 }
 0x5d9   : > { %v3689_v29 = vpop.f32.mrf.mxu1 }
 0x5da   : > { %v4466_v12 = vmax.f32 %v4338_v62, %v3689_v29 }
 0x5dc   : > { %5146 = vmax.xlane.f32.xlu0 %v4466_v12  ;;  %v4215_v12 = vmax.f32 %v4087_v6, %v8258_v45  ;;  %v4088_v45 = vmax.f32 %v9983_v20, %v8266_v15  ;;  %v9984_v15 = vld [vmem:[#allocation150_spill] sm:$0xff] }
 0x5dd   : > { %v8294_v33 = vpop.f32.mrf.mxu2  ;;  %v9986_v52 = vmax.f32 %v9984_v15, %v9985_v35  ;;  %v9997_v15 = vld [vmem:[#allocation168_spill] sm:$0xff] }
 0x5df   : > { %v5119_v60 = vpop.xlane.xlu1 %5118  ;;  %v3363_v1 = vpop.f32.mrf.mxu0  ;;  %v4089_v7 = vmax.f32 %v9986_v52, %v8283_v36  ;;  %v9987_v36 = vld [vmem:[#allocation154_spill] sm:$0xff] }
 0x5e0   : > { %v8297_v10 = vpop.f32.mrf.mxu3  ;;  %5352 = vst.msk [vmem:[%s7976_s9 + $0xb8] sm:$0xff] %vm5328_vm4, %v5119_v60  ;;  %v4339_v17 = vmax.f32 %v4211_v37, %v3363_v1  ;;  %v9989_v49 = vmax.f32 %v9987_v36, %v9988_v22  ;;  %v10000_v36 = vld [vmem:[#allocation172_spill] sm:$0xff] }
 0x5e1   : > { %v3692_v40 = vpop.f32.mrf.mxu1 }
 0x5e2   : > { %2764 = vmatmul.bf16.gmra.mxu2 %v8301_v2  ;;  %3402 = vmatmul.bf16.gmra.mxu0 %v8189_v47  ;;  %v4467_v55 = vmax.f32 %v4339_v17, %v3692_v40  ;;  %v8357_v40 = vld [vmem:[#allocation3 + $0x108] sm:$0xff] }
 0x5e4   : > { %3731 = vmatmul.bf16.gmra.mxu1 %v8189_v47  ;;  %5148 = vmax.xlane.f32.xlu1 %v4467_v55  ;;  %v4216_v55 = vmax.f32 %v4088_v45, %v8269_v14 }
 0x5e5   : > { %3093 = vmatmul.bf16.gmra.mxu3 %v8301_v2  ;;  %v8311_v26 = vpop.f32.mrf.mxu2 }
 0x5e7   : > { %v5121_v0 = vpop.xlane.xlu2 %5120  ;;  %v3365_v51 = vpop.f32.mrf.mxu0 }
 0x5e8   : > { %v8314_v56 = vpop.f32.mrf.mxu3  ;;  %5353 = vst.msk [vmem:[%s7976_s9 + $0xc0] sm:$0xff] %vm5328_vm4, %v5121_v0  ;;  %v4340_v25 = vmax.f32 %v4212_v21, %v3365_v51 }
 0x5e9   : > { %v3694_v8 = vpop.f32.mrf.mxu1 }
 0x5ea   : > { %v4468_v47 = vmax.f32 %v4340_v25, %v3694_v8 }
 0x5ec   : > { %5150 = vmax.xlane.f32.xlu2 %v4468_v47  ;;  %v4217_v47 = vmax.f32 %v4089_v7, %v8286_v59  ;;  %v4090_v59 = vmax.f32 %v9989_v49, %v8294_v33  ;;  %v9990_v33 = vld [vmem:[#allocation158_spill] sm:$0xff] }
 0x5ed   : > { %v8322_v61 = vpop.f32.mrf.mxu2  ;;  %v9992_v32 = vmax.f32 %v9990_v33, %v9991_v44  ;;  %v10003_v33 = vld [vmem:[#allocation176_spill] sm:$0xff] }
 0x5ef   : > { %v5123_v50 = vpop.xlane.xlu0 %5122  ;;  %v3368_v31 = vpop.f32.mrf.mxu0  ;;  %v4091_v43 = vmax.f32 %v9992_v32, %v8311_v26  ;;  %v9993_v26 = vld [vmem:[#allocation162_spill] sm:$0xff] }
 0x5f0   : > { %v8325_v30 = vpop.f32.mrf.mxu3  ;;  %5354 = vst.msk [vmem:[%s7976_s9 + $0xc8] sm:$0xff] %vm5328_vm4, %v5123_v50  ;;  %v4341_v11 = vmax.f32 %v4213_v42, %v3368_v31  ;;  %v9995_v23 = vmax.f32 %v9993_v26, %v9994_v53  ;;  %v10006_v26 = vld [vmem:[#allocation180_spill] sm:$0xff] }
 0x5f1   : > { %v3697_v58 = vpop.f32.mrf.mxu1 }
 0x5f2   : > { %2769 = vmatmul.bf16.gmra.mxu2 %v8329_v5  ;;  %3407 = vmatmul.bf16.gmra.mxu0 %v8217_v63  ;;  %v4469_v3 = vmax.f32 %v4341_v11, %v3697_v58  ;;  %v8385_v58 = vld [vmem:[#allocation3 + $0x110] sm:$0xff] }
 0x5f4   : > { %3736 = vmatmul.bf16.gmra.mxu1 %v8217_v63  ;;  %5152 = vmax.xlane.f32.xlu0 %v4469_v3  ;;  %v4218_v3 = vmax.f32 %v4090_v59, %v8297_v10 }
 0x5f5   : > { %3098 = vmatmul.bf16.gmra.mxu3 %v8329_v5  ;;  %v8339_v28 = vpop.f32.mrf.mxu2 }
 0x5f7   : > { %v5125_v34 = vpop.xlane.xlu1 %5124  ;;  %v3370_v9 = vpop.f32.mrf.mxu0 }
 0x5f8   : > { %v8342_v18 = vpop.f32.mrf.mxu3  ;;  %5355 = vst.msk [vmem:[%s7976_s9 + $0xd0] sm:$0xff] %vm5328_vm4, %v5125_v34  ;;  %v4342_v62 = vmax.f32 %v4214_v4, %v3370_v9 }
 0x5f9   : > { %v3699_v29 = vpop.f32.mrf.mxu1 }
 0x5fa   : > { %v4470_v63 = vmax.f32 %v4342_v62, %v3699_v29 }
 0x5fc   : > { %5154 = vmax.xlane.f32.xlu1 %v4470_v63  ;;  %v4219_v63 = vmax.f32 %v4091_v43, %v8314_v56  ;;  %v4092_v56 = vmax.f32 %v9995_v23, %v8322_v61  ;;  %v9996_v61 = vld [vmem:[#allocation166_spill] sm:$0xff] }
 0x5fd   : > { %v8350_v13 = vpop.f32.mrf.mxu2  ;;  %v9998_v35 = vmax.f32 %v9996_v61, %v9997_v15  ;;  %v10009_v61 = vld [vmem:[#allocation184_spill] sm:$0xff] }
 0x5ff   : > { %v5127_v37 = vpop.xlane.xlu2 %5126  ;;  %v3373_v60 = vpop.f32.mrf.mxu0  ;;  %v4093_v52 = vmax.f32 %v9998_v35, %v8339_v28  ;;  %v9999_v28 = vld [vmem:[#allocation170_spill] sm:$0xff] }
 0x600   : > { %v8353_v38 = vpop.f32.mrf.mxu3  ;;  %5356 = vst.msk [vmem:[%s7976_s9 + $0xd8] sm:$0xff] %vm5328_vm4, %v5127_v37  ;;  %v4343_v1 = vmax.f32 %v4215_v12, %v3373_v60  ;;  %v10001_v22 = vmax.f32 %v9999_v28, %v10000_v36  ;;  %v10012_v28 = vld [vmem:[#allocation188_spill] sm:$0xff] }
 0x601   : > { %v3702_v17 = vpop.f32.mrf.mxu1 }
 0x602   : > { %2774 = vmatmul.bf16.gmra.mxu2 %v8357_v40  ;;  %3412 = vmatmul.bf16.gmra.mxu0 %v8245_v54  ;;  %v4471_v24 = vmax.f32 %v4343_v1, %v3702_v17  ;;  %v8413_v17 = vld [vmem:[#allocation3 + $0x118] sm:$0xff] }
 0x604   : > { %3741 = vmatmul.bf16.gmra.mxu1 %v8245_v54  ;;  %5156 = vmax.xlane.f32.xlu2 %v4471_v24  ;;  %v4220_v24 = vmax.f32 %v4092_v56, %v8325_v30 }
 0x605   : > { %3103 = vmatmul.bf16.gmra.mxu3 %v8357_v40  ;;  %v8367_v16 = vpop.f32.mrf.mxu2 }
 0x607   : > { %v5129_v0 = vpop.xlane.xlu0 %5128  ;;  %v3375_v51 = vpop.f32.mrf.mxu0 }
 0x608   : > { %v8370_v21 = vpop.f32.mrf.mxu3  ;;  %5357 = vst.msk [vmem:[%s7976_s9 + $0xe0] sm:$0xff] %vm5328_vm4, %v5129_v0  ;;  %v4344_v25 = vmax.f32 %v4216_v55, %v3375_v51 }
 0x609   : > { %v3704_v8 = vpop.f32.mrf.mxu1 }
 0x60a   : > { %v4472_v54 = vmax.f32 %v4344_v25, %v3704_v8 }
 0x60c   : > { %5158 = vmax.xlane.f32.xlu0 %v4472_v54  ;;  %v4221_v54 = vmax.f32 %v4093_v52, %v8342_v18  ;;  %v4094_v18 = vmax.f32 %v10001_v22, %v8350_v13  ;;  %v10002_v13 = vld [vmem:[#allocation174_spill] sm:$0xff] }
 0x60d   : > { %v8378_v48 = vpop.f32.mrf.mxu2  ;;  %v10004_v44 = vmax.f32 %v10002_v13, %v10003_v33  ;;  %v10015_v13 = vld [vmem:[#allocation192_spill] sm:$0xff] }
 0x60f   : > { %v5131_v42 = vpop.xlane.xlu1 %5130  ;;  %v3378_v50 = vpop.f32.mrf.mxu0  ;;  %v4095_v32 = vmax.f32 %v10004_v44, %v8367_v16  ;;  %v10005_v16 = vld [vmem:[#allocation178_spill] sm:$0xff] }
 0x610   : > { %v8381_v14 = vpop.f32.mrf.mxu3  ;;  %5358 = vst.msk [vmem:[%s7976_s9 + $0xe8] sm:$0xff] %vm5328_vm4, %v5131_v42  ;;  %v4345_v31 = vmax.f32 %v4217_v47, %v3378_v50  ;;  %v10007_v53 = vmax.f32 %v10005_v16, %v10006_v26  ;;  %v10018_v16 = vld [vmem:[#allocation196_spill] sm:$0xff] }
 0x611   : > { %v3707_v11 = vpop.f32.mrf.mxu1 }
 0x612   : > { %2779 = vmatmul.bf16.gmra.mxu2 %v8385_v58  ;;  %3417 = vmatmul.bf16.gmra.mxu0 %v8273_v39  ;;  %v4473_v41 = vmax.f32 %v4345_v31, %v3707_v11  ;;  %v8441_v11 = vld [vmem:[#allocation3 + $0x120] sm:$0xff] }
 0x614   : > { %3746 = vmatmul.bf16.gmra.mxu1 %v8273_v39  ;;  %5160 = vmax.xlane.f32.xlu1 %v4473_v41  ;;  %v4222_v41 = vmax.f32 %v4094_v18, %v8353_v38 }
 0x615   : > { %3108 = vmatmul.bf16.gmra.mxu3 %v8385_v58  ;;  %v8395_v19 = vpop.f32.mrf.mxu2 }
 0x617   : > { %v5133_v34 = vpop.xlane.xlu2 %5132  ;;  %v3380_v9 = vpop.f32.mrf.mxu0 }
 0x618   : > { %v8398_v4 = vpop.f32.mrf.mxu3  ;;  %5359 = vst.msk [vmem:[%s7976_s9 + $0xf0] sm:$0xff] %vm5328_vm4, %v5133_v34  ;;  %v4346_v62 = vmax.f32 %v4218_v3, %v3380_v9 }
 0x619   : > { %v3709_v29 = vpop.f32.mrf.mxu1 }
 0x61a   : > { %v4474_v39 = vmax.f32 %v4346_v62, %v3709_v29 }
 0x61c   : > { %5162 = vmax.xlane.f32.xlu2 %v4474_v39  ;;  %v4223_v39 = vmax.f32 %v4095_v32, %v8370_v21  ;;  %v4096_v21 = vmax.f32 %v10007_v53, %v8378_v48  ;;  %v10008_v48 = vld [vmem:[#allocation182_spill] sm:$0xff] }
 0x61d   : > { %v8406_v6 = vpop.f32.mrf.mxu2  ;;  %v10010_v15 = vmax.f32 %v10008_v48, %v10009_v61  ;;  %v10021_v48 = vld [vmem:[#allocation200_spill] sm:$0xff] }
 0x61f   : > { %v5135_v12 = vpop.xlane.xlu0 %5134  ;;  %v3383_v37 = vpop.f32.mrf.mxu0  ;;  %v4097_v35 = vmax.f32 %v10010_v15, %v8395_v19  ;;  %v10011_v19 = vld [vmem:[#allocation186_spill] sm:$0xff] }
 0x620   : > { %v8409_v10 = vpop.f32.mrf.mxu3  ;;  %5360 = vst.msk [vmem:[%s7976_s9 + $0xf8] sm:$0xff] %vm5328_vm4, %v5135_v12  ;;  %v4347_v60 = vmax.f32 %v4219_v63, %v3383_v37  ;;  %v10013_v36 = vmax.f32 %v10011_v19, %v10012_v28  ;;  %v10024_v19 = vld [vmem:[#allocation204_spill] sm:$0xff] }
 0x621   : > { %v3712_v1 = vpop.f32.mrf.mxu1 }
 0x622   : > { %2784 = vmatmul.bf16.gmra.mxu2 %v8413_v17  ;;  %3422 = vmatmul.bf16.gmra.mxu0 %v8301_v2  ;;  %v4475_v20 = vmax.f32 %v4347_v60, %v3712_v1  ;;  %v8469_v1 = vld [vmem:[#allocation3 + $0x128] sm:$0xff] }
 0x624   : > { %3751 = vmatmul.bf16.gmra.mxu1 %v8301_v2  ;;  %5164 = vmax.xlane.f32.xlu0 %v4475_v20  ;;  %v4224_v20 = vmax.f32 %v4096_v21, %v8381_v14 }
 0x625   : > { %3113 = vmatmul.bf16.gmra.mxu3 %v8413_v17  ;;  %v8423_v45 = vpop.f32.mrf.mxu2 }
 0x627   : > { %v5137_v0 = vpop.xlane.xlu1 %5136  ;;  %v3385_v51 = vpop.f32.mrf.mxu0 }
 0x628   : > { %v8426_v55 = vpop.f32.mrf.mxu3  ;;  %5361 = vst.msk [vmem:[%s7976_s9 + $0x100] sm:$0xff] %vm5328_vm4, %v5137_v0  ;;  %v4348_v25 = vmax.f32 %v4220_v24, %v3385_v51 }
 0x629   : > { %v3714_v8 = vpop.f32.mrf.mxu1 }
 0x62a   : > { %v4476_v2 = vmax.f32 %v4348_v25, %v3714_v8 }
 0x62c   : > { %5166 = vmax.xlane.f32.xlu1 %v4476_v2  ;;  %v4225_v2 = vmax.f32 %v4097_v35, %v8398_v4  ;;  %v4098_v4 = vmax.f32 %v10013_v36, %v8406_v6  ;;  %v10014_v6 = vld [vmem:[#allocation190_spill] sm:$0xff] }
 0x62d   : > { %v8434_v7 = vpop.f32.mrf.mxu2  ;;  %v10016_v33 = vmax.f32 %v10014_v6, %v10015_v13  ;;  %v10027_v6 = vld [vmem:[#allocation208_spill] sm:$0xff] }
 0x62f   : > { %v5139_v47 = vpop.xlane.xlu2 %5138  ;;  %v3388_v42 = vpop.f32.mrf.mxu0  ;;  %v4099_v44 = vmax.f32 %v10016_v33, %v8423_v45  ;;  %v10017_v45 = vld [vmem:[#allocation194_spill] sm:$0xff] }
 0x630   : > { %v8437_v30 = vpop.f32.mrf.mxu3  ;;  %5362 = vst.msk [vmem:[%s7976_s9 + $0x108] sm:$0xff] %vm5328_vm4, %v5139_v47  ;;  %v4349_v50 = vmax.f32 %v4221_v54, %v3388_v42  ;;  %v10019_v26 = vmax.f32 %v10017_v45, %v10018_v16  ;;  %v10030_v45 = vld [vmem:[#allocation212_spill] sm:$0xff] }
 0x631   : > { %v3717_v31 = vpop.f32.mrf.mxu1 }
 0x632   : > { %2789 = vmatmul.bf16.gmra.mxu2 %v8441_v11  ;;  %3427 = vmatmul.bf16.gmra.mxu0 %v8329_v5  ;;  %v4477_v49 = vmax.f32 %v4349_v50, %v3717_v31  ;;  %v8497_v31 = vld [vmem:[#allocation3 + $0x130] sm:$0xff] }
 0x634   : > { %3756 = vmatmul.bf16.gmra.mxu1 %v8329_v5  ;;  %5168 = vmax.xlane.f32.xlu2 %v4477_v49  ;;  %v4226_v49 = vmax.f32 %v4098_v4, %v8409_v10 }
 0x635   : > { %3118 = vmatmul.bf16.gmra.mxu3 %v8441_v11  ;;  %v8451_v59 = vpop.f32.mrf.mxu2 }
 0x637   : > { %v5141_v34 = vpop.xlane.xlu0 %5140  ;;  %v3390_v9 = vpop.f32.mrf.mxu0 }
 0x638   : > { %v8454_v3 = vpop.f32.mrf.mxu3  ;;  %5363 = vst.msk [vmem:[%s7976_s9 + $0x110] sm:$0xff] %vm5328_vm4, %v5141_v34  ;;  %v4350_v62 = vmax.f32 %v4222_v41, %v3390_v9 }
 0x639   : > { %v3719_v29 = vpop.f32.mrf.mxu1 }
 0x63a   : > { %v4478_v5 = vmax.f32 %v4350_v62, %v3719_v29 }
 0x63c   : > { %5170 = vmax.xlane.f32.xlu0 %v4478_v5  ;;  %v4227_v5 = vmax.f32 %v4099_v44, %v8426_v55  ;;  %v4100_v55 = vmax.f32 %v10019_v26, %v8434_v7  ;;  %v10020_v7 = vld [vmem:[#allocation198_spill] sm:$0xff] }
 0x63d   : > { %v8462_v43 = vpop.f32.mrf.mxu2  ;;  %v10022_v61 = vmax.f32 %v10020_v7, %v10021_v48  ;;  %v10033_v7 = vld [vmem:[#allocation216_spill] sm:$0xff] }
 0x63f   : > { %v5143_v63 = vpop.xlane.xlu1 %5142  ;;  %v3393_v12 = vpop.f32.mrf.mxu0  ;;  %v4101_v15 = vmax.f32 %v10022_v61, %v8451_v59  ;;  %v10023_v59 = vld [vmem:[#allocation202_spill] sm:$0xff] }
 0x640   : > { %v8465_v38 = vpop.f32.mrf.mxu3  ;;  %5364 = vst.msk [vmem:[%s7976_s9 + $0x118] sm:$0xff] %vm5328_vm4, %v5143_v63  ;;  %v4351_v37 = vmax.f32 %v4223_v39, %v3393_v12  ;;  %v10025_v28 = vmax.f32 %v10023_v59, %v10024_v19  ;;  %v10036_v59 = vld [vmem:[#allocation218_spill] sm:$0xff] }
 0x641   : > { %v3722_v60 = vpop.f32.mrf.mxu1 }
 0x642   : > { %2794 = vmatmul.bf16.gmra.mxu2 %v8469_v1  ;;  %3432 = vmatmul.bf16.gmra.mxu0 %v8357_v40  ;;  %v4479_v23 = vmax.f32 %v4351_v37, %v3722_v60  ;;  %v8525_v60 = vld [vmem:[#allocation3 + $0x138] sm:$0xff] }
 0x644   : > { %3761 = vmatmul.bf16.gmra.mxu1 %v8357_v40  ;;  %5172 = vmax.xlane.f32.xlu1 %v4479_v23  ;;  %v4228_v23 = vmax.f32 %v4100_v55, %v8437_v30 }
 0x645   : > { %3123 = vmatmul.bf16.gmra.mxu3 %v8469_v1  ;;  %v8479_v56 = vpop.f32.mrf.mxu2 }
 0x647   : > { %v5145_v0 = vpop.xlane.xlu2 %5144  ;;  %v3395_v51 = vpop.f32.mrf.mxu0 }
 0x648   : > { %v8482_v24 = vpop.f32.mrf.mxu3  ;;  %5365 = vst.msk [vmem:[%s7976_s9 + $0x120] sm:$0xff] %vm5328_vm4, %v5145_v0  ;;  %v4352_v25 = vmax.f32 %v4224_v20, %v3395_v51 }
 0x649   : > { %v3724_v8 = vpop.f32.mrf.mxu1 }
 0x64a   : > { %v4480_v40 = vmax.f32 %v4352_v25, %v3724_v8 }
 0x64c   : > { %5174 = vmax.xlane.f32.xlu2 %v4480_v40  ;;  %v4229_v40 = vmax.f32 %v4101_v15, %v8454_v3  ;;  %v4102_v3 = vmax.f32 %v10025_v28, %v8462_v43  ;;  %v10026_v43 = vld [vmem:[#allocation206_spill] sm:$0xff] }
 0x64d   : > { %v8490_v52 = vpop.f32.mrf.mxu2  ;;  %v10028_v13 = vmax.f32 %v10026_v43, %v10027_v6  ;;  %v10039_v43 = vld [vmem:[#allocation220_spill] sm:$0xff] }
 0x64f   : > { %v5147_v54 = vpop.xlane.xlu0 %5146  ;;  %v3398_v47 = vpop.f32.mrf.mxu0  ;;  %v4103_v33 = vmax.f32 %v10028_v13, %v8479_v56  ;;  %v10029_v56 = vld [vmem:[#allocation210_spill] sm:$0xff] }
 0x650   : > { %v8493_v14 = vpop.f32.mrf.mxu3  ;;  %5366 = vst.msk [vmem:[%s7976_s9 + $0x128] sm:$0xff] %vm5328_vm4, %v5147_v54  ;;  %v4353_v42 = vmax.f32 %v4225_v2, %v3398_v47  ;;  %v10031_v16 = vmax.f32 %v10029_v56, %v10030_v45  ;;  %v10042_v56 = vld [vmem:[#allocation222_spill] sm:$0xff] }
 0x651   : > { %v3727_v50 = vpop.f32.mrf.mxu1 }
 0x652   : > { %2799 = vmatmul.bf16.gmra.mxu2 %v8497_v31  ;;  %3437 = vmatmul.bf16.gmra.mxu0 %v8385_v58  ;;  %v4481_v22 = vmax.f32 %v4353_v42, %v3727_v50  ;;  %v8553_v50 = vld [vmem:[#allocation3 + $0x140] sm:$0xff] }
 0x654   : > { %3766 = vmatmul.bf16.gmra.mxu1 %v8385_v58  ;;  %5176 = vmax.xlane.f32.xlu0 %v4481_v22  ;;  %v4230_v22 = vmax.f32 %v4102_v3, %v8465_v38 }
 0x655   : > { %3128 = vmatmul.bf16.gmra.mxu3 %v8497_v31  ;;  %v8507_v18 = vpop.f32.mrf.mxu2 }
 0x657   : > { %v5149_v34 = vpop.xlane.xlu1 %5148  ;;  %v3400_v9 = vpop.f32.mrf.mxu0 }
 0x658   : > { %v8510_v41 = vpop.f32.mrf.mxu3  ;;  %5367 = vst.msk [vmem:[%s7976_s9 + $0x130] sm:$0xff] %vm5328_vm4, %v5149_v34  ;;  %v4354_v62 = vmax.f32 %v4226_v49, %v3400_v9 }
 0x659   : > { %v3729_v29 = vpop.f32.mrf.mxu1 }
 0x65a   : > { %v4482_v58 = vmax.f32 %v4354_v62, %v3729_v29 }
 0x65c   : > { %5178 = vmax.xlane.f32.xlu1 %v4482_v58  ;;  %v4231_v58 = vmax.f32 %v4103_v33, %v8482_v24  ;;  %v4104_v24 = vmax.f32 %v10031_v16, %v8490_v52  ;;  %v10032_v52 = vld [vmem:[#allocation214_spill] sm:$0xff] }
 0x65d   : > { %v8518_v32 = vpop.f32.mrf.mxu2  ;;  %v10034_v48 = vmax.f32 %v10032_v52, %v10033_v7  ;;  %v10045_v52 = vld [vmem:[#allocation224_spill] sm:$0xff] }
 0x65f   : > { %v5151_v39 = vpop.xlane.xlu2 %5150  ;;  %v3403_v63 = vpop.f32.mrf.mxu0  ;;  %v4105_v61 = vmax.f32 %v10034_v48, %v8507_v18  ;;  %v10035_v18 = vld [vmem:[#allocation217_spill] sm:$0xff] }
 0x660   : > { %v8521_v10 = vpop.f32.mrf.mxu3  ;;  %5368 = vst.msk [vmem:[%s7976_s9 + $0x138] sm:$0xff] %vm5328_vm4, %v5151_v39  ;;  %v4355_v12 = vmax.f32 %v4227_v5, %v3403_v63  ;;  %v10037_v19 = vmax.f32 %v10035_v18, %v10036_v59  ;;  %v10048_v18 = vld [vmem:[#allocation226_spill] sm:$0xff] }
 0x661   : > { %v3732_v37 = vpop.f32.mrf.mxu1 }
 0x662   : > { %2804 = vmatmul.bf16.gmra.mxu2 %v8525_v60  ;;  %3442 = vmatmul.bf16.gmra.mxu0 %v8413_v17  ;;  %v4483_v53 = vmax.f32 %v4355_v12, %v3732_v37  ;;  %v8581_v37 = vld [vmem:[#allocation3 + $0x148] sm:$0xff] }
 0x664   : > { %3771 = vmatmul.bf16.gmra.mxu1 %v8413_v17  ;;  %5180 = vmax.xlane.f32.xlu2 %v4483_v53  ;;  %v4232_v53 = vmax.f32 %v4104_v24, %v8493_v14 }
 0x665   : > { %3133 = vmatmul.bf16.gmra.mxu3 %v8525_v60  ;;  %v8535_v21 = vpop.f32.mrf.mxu2 }
 0x667   : > { %v5153_v0 = vpop.xlane.xlu0 %5152  ;;  %v3405_v51 = vpop.f32.mrf.mxu0 }
 0x668   : > { %v8538_v20 = vpop.f32.mrf.mxu3  ;;  %5369 = vst.msk [vmem:[%s7976_s9 + $0x140] sm:$0xff] %vm5328_vm4, %v5153_v0  ;;  %v4356_v25 = vmax.f32 %v4228_v23, %v3405_v51 }
 0x669   : > { %v3734_v8 = vpop.f32.mrf.mxu1 }
 0x66a   : > { %v4484_v17 = vmax.f32 %v4356_v25, %v3734_v8 }
 0x66c   : > { %5182 = vmax.xlane.f32.xlu0 %v4484_v17  ;;  %v4233_v17 = vmax.f32 %v4105_v61, %v8510_v41  ;;  %v4106_v41 = vmax.f32 %v10037_v19, %v8518_v32  ;;  %v10038_v32 = vld [vmem:[#allocation219_spill] sm:$0xff] }
 0x66d   : > { %v8546_v35 = vpop.f32.mrf.mxu2  ;;  %v10040_v6 = vmax.f32 %v10038_v32, %v10039_v43  ;;  %v10051_v32 = vld [vmem:[#allocation228_spill] sm:$0xff] }
 0x66f   : > { %v5155_v2 = vpop.xlane.xlu1 %5154  ;;  %v3408_v54 = vpop.f32.mrf.mxu0  ;;  %v4107_v13 = vmax.f32 %v10040_v6, %v8535_v21  ;;  %v10041_v21 = vld [vmem:[#allocation221_spill] sm:$0xff] }
 0x670   : > { %v8549_v30 = vpop.f32.mrf.mxu3  ;;  %5370 = vst.msk [vmem:[%s7976_s9 + $0x148] sm:$0xff] %vm5328_vm4, %v5155_v2  ;;  %v4357_v47 = vmax.f32 %v4229_v40, %v3408_v54  ;;  %v10043_v45 = vmax.f32 %v10041_v21, %v10042_v56 }
 0x671   : > { %v3737_v42 = vpop.f32.mrf.mxu1 }
 0x672   : > { %2809 = vmatmul.bf16.gmra.mxu2 %v8553_v50  ;;  %3447 = vmatmul.bf16.gmra.mxu0 %v8441_v11  ;;  %v4485_v36 = vmax.f32 %v4357_v47, %v3737_v42  ;;  %v8609_v42 = vld [vmem:[#allocation3 + $0x150] sm:$0xff] }
 0x674   : > { %3776 = vmatmul.bf16.gmra.mxu1 %v8441_v11  ;;  %5184 = vmax.xlane.f32.xlu1 %v4485_v36  ;;  %v4234_v36 = vmax.f32 %v4106_v41, %v8521_v10 }
 0x675   : > { %3138 = vmatmul.bf16.gmra.mxu3 %v8553_v50  ;;  %v8563_v4 = vpop.f32.mrf.mxu2 }
 0x677   : > { %v5157_v34 = vpop.xlane.xlu2 %5156  ;;  %v3410_v9 = vpop.f32.mrf.mxu0 }
 0x678   : > { %v8566_v49 = vpop.f32.mrf.mxu3  ;;  %5371 = vst.msk [vmem:[%s7976_s9 + $0x150] sm:$0xff] %vm5328_vm4, %v5157_v34  ;;  %v4358_v62 = vmax.f32 %v4230_v22, %v3410_v9 }
 0x679   : > { %v3739_v29 = vpop.f32.mrf.mxu1 }
 0x67a   : > { %v4486_v11 = vmax.f32 %v4358_v62, %v3739_v29 }
 0x67c   : > { %5186 = vmax.xlane.f32.xlu2 %v4486_v11  ;;  %v4235_v11 = vmax.f32 %v4107_v13, %v8538_v20  ;;  %v4108_v20 = vmax.f32 %v10043_v45, %v8546_v35  ;;  %v10044_v35 = vld [vmem:[#allocation223_spill] sm:$0xff] }
 0x67d   : > { %v8574_v44 = vpop.f32.mrf.mxu2  ;;  %v10046_v7 = vmax.f32 %v10044_v35, %v10045_v52 }
 0x67f   : > { %v5159_v5 = vpop.xlane.xlu0 %5158  ;;  %v3413_v39 = vpop.f32.mrf.mxu0  ;;  %v4109_v48 = vmax.f32 %v10046_v7, %v8563_v4  ;;  %v10047_v4 = vld [vmem:[#allocation225_spill] sm:$0xff] }
 0x680   : > { %v8577_v38 = vpop.f32.mrf.mxu3  ;;  %5372 = vst.msk [vmem:[%s7976_s9 + $0x158] sm:$0xff] %vm5328_vm4, %v5159_v5  ;;  %v4359_v63 = vmax.f32 %v4231_v58, %v3413_v39  ;;  %v10049_v59 = vmax.f32 %v10047_v4, %v10048_v18 }
 0x681   : > { %v3742_v12 = vpop.f32.mrf.mxu1 }
 0x682   : > { %2814 = vmatmul.bf16.gmra.mxu2 %v8581_v37  ;;  %3452 = vmatmul.bf16.gmra.mxu0 %v8469_v1  ;;  %v4487_v26 = vmax.f32 %v4359_v63, %v3742_v12  ;;  %v8637_v12 = vld [vmem:[#allocation3 + $0x158] sm:$0xff] }
 0x684   : > { %3781 = vmatmul.bf16.gmra.mxu1 %v8469_v1  ;;  %5188 = vmax.xlane.f32.xlu0 %v4487_v26  ;;  %v4236_v26 = vmax.f32 %v4108_v20, %v8549_v30 }
 0x685   : > { %3143 = vmatmul.bf16.gmra.mxu3 %v8581_v37  ;;  %v8591_v55 = vpop.f32.mrf.mxu2 }
 0x687   : > { %v5161_v0 = vpop.xlane.xlu1 %5160  ;;  %v3415_v51 = vpop.f32.mrf.mxu0 }
 0x688   : > { %v8594_v23 = vpop.f32.mrf.mxu3  ;;  %5373 = vst.msk [vmem:[%s7976_s9 + $0x160] sm:$0xff] %vm5328_vm4, %v5161_v0  ;;  %v4360_v25 = vmax.f32 %v4232_v53, %v3415_v51 }
 0x689   : > { %v3744_v8 = vpop.f32.mrf.mxu1 }
 0x68a   : > { %v4488_v1 = vmax.f32 %v4360_v25, %v3744_v8 }
 0x68c   : > { %5190 = vmax.xlane.f32.xlu1 %v4488_v1  ;;  %v4237_v1 = vmax.f32 %v4109_v48, %v8566_v49  ;;  %v4110_v49 = vmax.f32 %v10049_v59, %v8574_v44  ;;  %v10050_v44 = vld [vmem:[#allocation227_spill] sm:$0xff]  ;;  %v8721_v48 = vld [vmem:[#allocation3 + $0x170] sm:$0xff] }
 0x68d   : > { %v8602_v15 = vpop.f32.mrf.mxu2  ;;  %v10052_v43 = vmax.f32 %v10050_v44, %v10051_v32 }
 0x68f   : > { %v5163_v40 = vpop.xlane.xlu2 %5162  ;;  %v3418_v2 = vpop.f32.mrf.mxu0  ;;  %v4111_v6 = vmax.f32 %v10052_v43, %v8591_v55  ;;  %v4112_v55 = vmax.f32 %v3984_v46, %v8602_v15  ;;  %v10054_v46 = vld [vmem:[#allocation22_spill] sm:$0xff] }
 0x690   : > { %v8605_v14 = vpop.f32.mrf.mxu3  ;;  %5374 = vst.msk [vmem:[%s7976_s9 + $0x168] sm:$0xff] %vm5328_vm4, %v5163_v40  ;;  %v4361_v54 = vmax.f32 %v4233_v17, %v3418_v2  ;;  %v10055_v15 = vmax.f32 %v10053_v27, %v10054_v46 }
 0x691   : > { %v3747_v47 = vpop.f32.mrf.mxu1  ;;  %v4240_v56 = vmax.f32 %v4112_v55, %v8605_v14 }
 0x692   : > { %2819 = vmatmul.bf16.gmra.mxu2 %v8609_v42  ;;  %3457 = vmatmul.bf16.gmra.mxu0 %v8497_v31  ;;  %v4489_v28 = vmax.f32 %v4361_v54, %v3747_v47  ;;  %v8665_v47 = vld [vmem:[#allocation3 + $0x160] sm:$0xff] }
 0x694   : > { %3786 = vmatmul.bf16.gmra.mxu1 %v8497_v31  ;;  %5192 = vmax.xlane.f32.xlu2 %v4489_v28  ;;  %v4238_v28 = vmax.f32 %v4110_v49, %v8577_v38 }
 0x695   : > { %3148 = vmatmul.bf16.gmra.mxu3 %v8609_v42  ;;  %v8619_v3 = vpop.f32.mrf.mxu2 }
 0x697   : > { %v5165_v34 = vpop.xlane.xlu0 %5164  ;;  %v3420_v9 = vpop.f32.mrf.mxu0 }
 0x698   : > { %v8622_v22 = vpop.f32.mrf.mxu3  ;;  %5375 = vst.msk [vmem:[%s7976_s9 + $0x170] sm:$0xff] %vm5328_vm4, %v5165_v34  ;;  %v4362_v62 = vmax.f32 %v4234_v36, %v3420_v9 }
 0x699   : > { %v3749_v29 = vpop.f32.mrf.mxu1 }
 0x69a   : > { %v4490_v31 = vmax.f32 %v4362_v62, %v3749_v29 }
 0x69c   : > { %5194 = vmax.xlane.f32.xlu0 %v4490_v31  ;;  %v4239_v31 = vmax.f32 %v4111_v6, %v8594_v23  ;;  %v8749_v6 = vld [vmem:[#allocation3 + $0x178] sm:$0xff] }
 0x69d   : > { %v8630_v33 = vpop.f32.mrf.mxu2 }
 0x69f   : > { %v5167_v58 = vpop.xlane.xlu1 %5166  ;;  %v3423_v5 = vpop.f32.mrf.mxu0 }
 0x6a0   : > { %v8633_v10 = vpop.f32.mrf.mxu3  ;;  %5376 = vst.msk [vmem:[%s7976_s9 + $0x178] sm:$0xff] %vm5328_vm4, %v5167_v58  ;;  %v4363_v39 = vmax.f32 %v4235_v11, %v3423_v5 }
 0x6a1   : > { %v3752_v63 = vpop.f32.mrf.mxu1 }
 0x6a2   : > { %2824 = vmatmul.bf16.gmra.mxu2 %v8637_v12  ;;  %3462 = vmatmul.bf16.gmra.mxu0 %v8525_v60  ;;  %v4491_v16 = vmax.f32 %v4363_v39, %v3752_v63  ;;  %v8693_v63 = vld [vmem:[#allocation3 + $0x168] sm:$0xff] }
 0x6a4   : > { %3791 = vmatmul.bf16.gmra.mxu1 %v8525_v60  ;;  %5196 = vmax.xlane.f32.xlu1 %v4491_v16 }
 0x6a5   : > { %3153 = vmatmul.bf16.gmra.mxu3 %v8637_v12  ;;  %v8647_v24 = vpop.f32.mrf.mxu2 }
 0x6a7   : > { %v5169_v0 = vpop.xlane.xlu2 %5168  ;;  %v3425_v51 = vpop.f32.mrf.mxu0 }
 0x6a8   : > { %v8650_v53 = vpop.f32.mrf.mxu3  ;;  %5377 = vst.msk [vmem:[%s7976_s9 + $0x180] sm:$0xff] %vm5328_vm4, %v5169_v0  ;;  %v4364_v25 = vmax.f32 %v4236_v26, %v3425_v51  ;;  %v4113_v0 = vmax.f32 %v10055_v15, %v8619_v3  ;;  %v10056_v3 = vld [vmem:[#allocation13_spill] sm:$0xff] }
 0x6a9   : > { %v3754_v8 = vpop.f32.mrf.mxu1 }
 0x6aa   : > { %v4492_v60 = vmax.f32 %v4364_v25, %v3754_v8  ;;  %v4241_v25 = vmax.f32 %v4113_v0, %v8622_v22 }
 0x6ac   : > { %5198 = vmax.xlane.f32.xlu2 %v4492_v60  ;;  %v10057_v60 = vld [vmem:[#allocation19_spill] sm:$0xff] }
 0x6ad   : > { %v8658_v61 = vpop.f32.mrf.mxu2 }
 0x6af   : > { %v5171_v17 = vpop.xlane.xlu0 %5170  ;;  %v3428_v40 = vpop.f32.mrf.mxu0 }
 0x6b0   : > { %v8661_v30 = vpop.f32.mrf.mxu3  ;;  %5378 = vst.msk [vmem:[%s7976_s9 + $0x188] sm:$0xff] %vm5328_vm4, %v5171_v17  ;;  %v4365_v2 = vmax.f32 %v4237_v1, %v3428_v40  ;;  %v10058_v1 = vmax.f32 %v10056_v3, %v10057_v60 }
 0x6b1   : > { %v3757_v54 = vpop.f32.mrf.mxu1 }
 0x6b2   : > { %2829 = vmatmul.bf16.gmra.mxu2 %v8665_v47  ;;  %3467 = vmatmul.bf16.gmra.mxu0 %v8553_v50  ;;  %v4493_v19 = vmax.f32 %v4365_v2, %v3757_v54  ;;  %v4114_v22 = vmax.f32 %v10058_v1, %v8630_v33  ;;  %v10059_v33 = vld [vmem:[#allocation20_spill] sm:$0xff] }
 0x6b4   : > { %3796 = vmatmul.bf16.gmra.mxu1 %v8553_v50  ;;  %5200 = vmax.xlane.f32.xlu0 %v4493_v19  ;;  %v4242_v2 = vmax.f32 %v4114_v22, %v8633_v10  ;;  %v10060_v19 = vld [vmem:[#allocation16_spill] sm:$0xff] }
 0x6b5   : > { %3158 = vmatmul.bf16.gmra.mxu3 %v8665_v47  ;;  %v8675_v41 = vpop.f32.mrf.mxu2 }
 0x6b7   : > { %v5173_v34 = vpop.xlane.xlu1 %5172  ;;  %v3430_v9 = vpop.f32.mrf.mxu0 }
 0x6b8   : > { %v8678_v36 = vpop.f32.mrf.mxu3  ;;  %5379 = vst.msk [vmem:[%s7976_s9 + $0x190] sm:$0xff] %vm5328_vm4, %v5173_v34  ;;  %v4366_v62 = vmax.f32 %v4238_v28, %v3430_v9  ;;  %v10061_v28 = vmax.f32 %v10059_v33, %v10060_v19 }
 0x6b9   : > { %v3759_v29 = vpop.f32.mrf.mxu1 }
 0x6ba   : > { %v4494_v50 = vmax.f32 %v4366_v62, %v3759_v29  ;;  %v4115_v34 = vmax.f32 %v10061_v28, %v8647_v24  ;;  %v10062_v24 = vld [vmem:[#allocation17_spill] sm:$0xff] }
 0x6bc   : > { %5202 = vmax.xlane.f32.xlu1 %v4494_v50  ;;  %v4243_v62 = vmax.f32 %v4115_v34, %v8650_v53  ;;  %v10063_v50 = vld [vmem:[#allocation18_spill] sm:$0xff] }
 0x6bd   : > { %v8686_v13 = vpop.f32.mrf.mxu2 }
 0x6bf   : > { %v5175_v11 = vpop.xlane.xlu2 %5174  ;;  %v3433_v58 = vpop.f32.mrf.mxu0 }
 0x6c0   : > { %v8689_v38 = vpop.f32.mrf.mxu3  ;;  %5380 = vst.msk [vmem:[%s7976_s9 + $0x198] sm:$0xff] %vm5328_vm4, %v5175_v11  ;;  %v4367_v5 = vmax.f32 %v4239_v31, %v3433_v58  ;;  %v10064_v31 = vmax.f32 %v10062_v24, %v10063_v50 }
 0x6c1   : > { %v3762_v39 = vpop.f32.mrf.mxu1 }
 0x6c2   : > { %2834 = vmatmul.bf16.gmra.mxu2 %v8693_v63  ;;  %3472 = vmatmul.bf16.gmra.mxu0 %v8581_v37  ;;  %v4495_v23 = vmax.f32 %v4367_v5, %v3762_v39  ;;  %v4116_v53 = vmax.f32 %v10064_v31, %v8658_v61  ;;  %v10065_v61 = vld [vmem:[#allocation6_spill] sm:$0xff] }
 0x6c4   : > { %3801 = vmatmul.bf16.gmra.mxu1 %v8581_v37  ;;  %5204 = vmax.xlane.f32.xlu2 %v4495_v23  ;;  %v4244_v5 = vmax.f32 %v4116_v53, %v8661_v30 }
 0x6c5   : > { %3163 = vmatmul.bf16.gmra.mxu3 %v8693_v63  ;;  %v8703_v21 = vpop.f32.mrf.mxu2 }
 0x6c7   : > { %v5177_v20 = vpop.xlane.xlu0 %5176  ;;  %v3435_v16 = vpop.f32.mrf.mxu0 }
 0x6c8   : > { %v8706_v45 = vpop.f32.mrf.mxu3  ;;  %5381 = vst.msk [vmem:[%s7976_s9 + $0x1a0] sm:$0xff] %vm5328_vm4, %v5177_v20  ;;  %v4368_v26 = vmax.f32 %v4240_v56, %v3435_v16  ;;  %v10066_v16 = vld [vmem:[#allocation14_spill] sm:$0xff] }
 0x6c9   : > { %v3764_v57 = vpop.f32.mrf.mxu1 }
 0x6ca   : > { %v4496_v37 = vmax.f32 %v4368_v26, %v3764_v57  ;;  %v10067_v26 = vmax.f32 %v10065_v61, %v10066_v16 }
 0x6cc   : > { %5206 = vmax.xlane.f32.xlu0 %v4496_v37  ;;  %v4117_v57 = vmax.f32 %v10067_v26, %v8675_v41  ;;  %v10068_v41 = vld [vmem:[#allocation15_spill] sm:$0xff] }
 0x6cd   : > { %v8714_v51 = vpop.f32.mrf.mxu2 }
 0x6ce   : > { %v4245_v46 = vmax.f32 %v4117_v57, %v8678_v36 }
 0x6cf   : > { %v5179_v8 = vpop.xlane.xlu1 %5178  ;;  %v3438_v35 = vpop.f32.mrf.mxu0 }
 0x6d0   : > { %v8717_v14 = vpop.f32.mrf.mxu3  ;;  %5382 = vst.msk [vmem:[%s7976_s9 + $0x1a8] sm:$0xff] %vm5328_vm4, %v5179_v8  ;;  %v4369_v52 = vmax.f32 %v4241_v25, %v3438_v35  ;;  %v8777_v8 = vld [vmem:[#allocation3 + $0x180] sm:$0xff] }
 0x6d1   : > { %v3767_v7 = vpop.f32.mrf.mxu1  ;;  %v10069_v35 = vld [vmem:[#allocation10_spill] sm:$0xff] }
 0x6d2   : > { %2839 = vmatmul.bf16.gmra.mxu2 %v8721_v48  ;;  %3477 = vmatmul.bf16.gmra.mxu0 %v8609_v42  ;;  %v4497_v17 = vmax.f32 %v4369_v52, %v3767_v7  ;;  %v10070_v52 = vmax.f32 %v10068_v41, %v10069_v35 }
 0x6d4   : > { %3806 = vmatmul.bf16.gmra.mxu1 %v8609_v42  ;;  %5208 = vmax.xlane.f32.xlu1 %v4497_v17  ;;  %v4118_v36 = vmax.f32 %v10070_v52, %v8686_v13  ;;  %v10071_v13 = vld [vmem:[#allocation11_spill] sm:$0xff] }
 0x6d5   : > { %3168 = vmatmul.bf16.gmra.mxu3 %v8721_v48  ;;  %v8731_v40 = vpop.f32.mrf.mxu2 }
 0x6d6   : > { %v4246_v60 = vmax.f32 %v4118_v36, %v8689_v38 }
 0x6d7   : > { %v5181_v4 = vpop.xlane.xlu2 %5180  ;;  %v3440_v18 = vpop.f32.mrf.mxu0 }
 0x6d8   : > { %v8734_v54 = vpop.f32.mrf.mxu3  ;;  %5383 = vst.msk [vmem:[%s7976_s9 + $0x1b0] sm:$0xff] %vm5328_vm4, %v5181_v4  ;;  %v4370_v59 = vmax.f32 %v4242_v2, %v3440_v18  ;;  %v10072_v18 = vld [vmem:[#allocation12_spill] sm:$0xff] }
 0x6d9   : > { %v3769_v49 = vpop.f32.mrf.mxu1 }
 0x6da   : > { %v4498_v42 = vmax.f32 %v4370_v59, %v3769_v49  ;;  %v10073_v59 = vmax.f32 %v10071_v13, %v10072_v18 }
 0x6dc   : > { %5210 = vmax.xlane.f32.xlu2 %v4498_v42  ;;  %v4119_v49 = vmax.f32 %v10073_v59, %v8703_v21  ;;  %v10074_v21 = vld [vmem:[#allocation9_spill] sm:$0xff] }
 0x6dd   : > { %v8742_v9 = vpop.f32.mrf.mxu2 }
 0x6de   : > { %v4247_v19 = vmax.f32 %v4119_v49, %v8706_v45 }
 0x6df   : > { %v5183_v29 = vpop.xlane.xlu0 %5182  ;;  %v3443_v44 = vpop.f32.mrf.mxu0 }
 0x6e0   : > { %v8745_v10 = vpop.f32.mrf.mxu3  ;;  %5384 = vst.msk [vmem:[%s7976_s9 + $0x1b8] sm:$0xff] %vm5328_vm4, %v5183_v29  ;;  %v4371_v32 = vmax.f32 %v4243_v62, %v3443_v44  ;;  %v8805_v29 = vld [vmem:[#allocation3 + $0x188] sm:$0xff] }
 0x6e1   : > { %v3772_v43 = vpop.f32.mrf.mxu1  ;;  %v10075_v44 = vld [vmem:[#allocation7_spill] sm:$0xff] }
 0x6e2   : > { %2844 = vmatmul.bf16.gmra.mxu2 %v8749_v6  ;;  %3482 = vmatmul.bf16.gmra.mxu0 %v8637_v12  ;;  %v4499_v11 = vmax.f32 %v4371_v32, %v3772_v43  ;;  %v10076_v32 = vmax.f32 %v10074_v21, %v10075_v44 }
 0x6e4   : > { %3811 = vmatmul.bf16.gmra.mxu1 %v8637_v12  ;;  %5212 = vmax.xlane.f32.xlu0 %v4499_v11  ;;  %v4120_v45 = vmax.f32 %v10076_v32, %v8714_v51  ;;  %v10077_v51 = vld [vmem:[#allocation8_spill] sm:$0xff] }
 0x6e5   : > { %3173 = vmatmul.bf16.gmra.mxu3 %v8749_v6  ;;  %v8759_v58 = vpop.f32.mrf.mxu2 }
 0x6e6   : > { %v4248_v50 = vmax.f32 %v4120_v45, %v8717_v14 }
 0x6e7   : > { %v5185_v55 = vpop.xlane.xlu1 %5184  ;;  %v3445_v23 = vpop.f32.mrf.mxu0 }
 0x6e8   : > { %v8762_v39 = vpop.f32.mrf.mxu3  ;;  %5385 = vst.msk [vmem:[%s7976_s9 + $0x1c0] sm:$0xff] %vm5328_vm4, %v5185_v55  ;;  %v4372_v56 = vmax.f32 %v4244_v5, %v3445_v23  ;;  %v10078_v23 = vld [vmem:[#allocation23_spill] sm:$0xff] }
 0x6e9   : > { %v3774_v20 = vpop.f32.mrf.mxu1 }
 0x6ea   : > { %v4500_v12 = vmax.f32 %v4372_v56, %v3774_v20  ;;  %v10079_v56 = vmax.f32 %v10077_v51, %v10078_v23 }
 0x6ec   : > { %5214 = vmax.xlane.f32.xlu1 %v4500_v12  ;;  %v4121_v20 = vmax.f32 %v10079_v56, %v8731_v40  ;;  %v10080_v40 = vld [vmem:[#allocation24_spill] sm:$0xff] }
 0x6ed   : > { %v8770_v27 = vpop.f32.mrf.mxu2 }
 0x6ee   : > { %v4249_v16 = vmax.f32 %v4121_v20, %v8734_v54 }
 0x6ef   : > { %v5187_v15 = vpop.xlane.xlu2 %5186  ;;  %v3448_v0 = vpop.f32.mrf.mxu0 }
 0x6f0   : > { %v8773_v30 = vpop.f32.mrf.mxu3  ;;  %5386 = vst.msk [vmem:[%s7976_s9 + $0x1c8] sm:$0xff] %vm5328_vm4, %v5187_v15  ;;  %v4373_v37 = vmax.f32 %v4245_v46, %v3448_v0  ;;  %v8833_v15 = vld [vmem:[#allocation3 + $0x190] sm:$0xff]  ;;  %v10081_v0 = vld [vmem:[#allocation25_spill] sm:$0xff] }
 0x6f1   : > { %v3777_v25 = vpop.f32.mrf.mxu1 }
 0x6f2   : > { %2849 = vmatmul.bf16.gmra.mxu2 %v8777_v8  ;;  %3487 = vmatmul.bf16.gmra.mxu0 %v8665_v47  ;;  %v4501_v7 = vmax.f32 %v4373_v37, %v3777_v25  ;;  %v10082_v37 = vmax.f32 %v10080_v40, %v10081_v0 }
 0x6f4   : > { %3816 = vmatmul.bf16.gmra.mxu1 %v8665_v47  ;;  %5216 = vmax.xlane.f32.xlu2 %v4501_v7  ;;  %v4122_v54 = vmax.f32 %v10082_v37, %v8742_v9  ;;  %v10083_v9 = vld [vmem:[#allocation26_spill] sm:$0xff] }
 0x6f5   : > { %3178 = vmatmul.bf16.gmra.mxu3 %v8777_v8  ;;  %v8787_v3 = vpop.f32.mrf.mxu2 }
 0x6f6   : > { %v4250_v35 = vmax.f32 %v4122_v54, %v8745_v10 }
 0x6f7   : > { %v5189_v22 = vpop.xlane.xlu0 %5188  ;;  %v3450_v17 = vpop.f32.mrf.mxu0 }
 0x6f8   : > { %v8790_v1 = vpop.f32.mrf.mxu3  ;;  %5387 = vst.msk [vmem:[%s7976_s9 + $0x1d0] sm:$0xff] %vm5328_vm4, %v5189_v22  ;;  %v4374_v2 = vmax.f32 %v4246_v60, %v3450_v17  ;;  %v10084_v17 = vld [vmem:[#allocation27_spill] sm:$0xff] }
 0x6f9   : > { %v3779_v4 = vpop.f32.mrf.mxu1 }
 0x6fa   : > { %v4502_v47 = vmax.f32 %v4374_v2, %v3779_v4  ;;  %v10085_v2 = vmax.f32 %v10083_v9, %v10084_v17 }
 0x6fc   : > { %5218 = vmax.xlane.f32.xlu0 %v4502_v47  ;;  %v4123_v4 = vmax.f32 %v10085_v2, %v8759_v58  ;;  %v10086_v58 = vld [vmem:[#allocation28_spill] sm:$0xff] }
 0x6fd   : > { %v8798_v33 = vpop.f32.mrf.mxu2 }
 0x6fe   : > { %v4251_v18 = vmax.f32 %v4123_v4, %v8762_v39 }
 0x6ff   : > { %v5191_v28 = vpop.xlane.xlu1 %5190  ;;  %v3453_v34 = vpop.f32.mrf.mxu0 }
 0x700   : > { %v8801_v38 = vpop.f32.mrf.mxu3  ;;  %5388 = vst.msk [vmem:[%s7976_s9 + $0x1d8] sm:$0xff] %vm5328_vm4, %v5191_v28  ;;  %v4375_v42 = vmax.f32 %v4247_v19, %v3453_v34  ;;  %v8861_v28 = vld [vmem:[#allocation3 + $0x198] sm:$0xff] }
 0x701   : > { %v3782_v62 = vpop.f32.mrf.mxu1  ;;  %v10087_v34 = vld [vmem:[#allocation29_spill] sm:$0xff] }
 0x702   : > { %2854 = vmatmul.bf16.gmra.mxu2 %v8805_v29  ;;  %3492 = vmatmul.bf16.gmra.mxu0 %v8693_v63  ;;  %v4503_v43 = vmax.f32 %v4375_v42, %v3782_v62  ;;  %v10088_v42 = vmax.f32 %v10086_v58, %v10087_v34 }
 0x704   : > { %3821 = vmatmul.bf16.gmra.mxu1 %v8693_v63  ;;  %5220 = vmax.xlane.f32.xlu1 %v4503_v43  ;;  %v4124_v39 = vmax.f32 %v10088_v42, %v8770_v27  ;;  %v10089_v27 = vld [vmem:[#allocation30_spill] sm:$0xff] }
 0x705   : > { %3183 = vmatmul.bf16.gmra.mxu3 %v8805_v29  ;;  %v8815_v24 = vpop.f32.mrf.mxu2 }
 0x706   : > { %v4252_v44 = vmax.f32 %v4124_v39, %v8773_v30 }
 0x707   : > { %v5193_v53 = vpop.xlane.xlu2 %5192  ;;  %v3455_v11 = vpop.f32.mrf.mxu0 }
 0x708   : > { %v8818_v31 = vpop.f32.mrf.mxu3  ;;  %5389 = vst.msk [vmem:[%s7976_s9 + $0x1e0] sm:$0xff] %vm5328_vm4, %v5193_v53  ;;  %v4376_v5 = vmax.f32 %v4248_v50, %v3455_v11  ;;  %v10090_v11 = vld [vmem:[#allocation31_spill] sm:$0xff] }
 0x709   : > { %v3784_v55 = vpop.f32.mrf.mxu1 }
 0x70a   : > { %v4504_v63 = vmax.f32 %v4376_v5, %v3784_v55  ;;  %v10091_v5 = vmax.f32 %v10089_v27, %v10090_v11 }
 0x70c   : > { %5222 = vmax.xlane.f32.xlu2 %v4504_v63  ;;  %v4125_v55 = vmax.f32 %v10091_v5, %v8787_v3  ;;  %v10092_v3 = vld [vmem:[#allocation32_spill] sm:$0xff] }
 0x70d   : > { %v8826_v61 = vpop.f32.mrf.mxu2 }
 0x70e   : > { %v4253_v23 = vmax.f32 %v4125_v55, %v8790_v1 }
 0x70f   : > { %v5195_v26 = vpop.xlane.xlu0 %5194  ;;  %v3458_v57 = vpop.f32.mrf.mxu0 }
 0x710   : > { %v8829_v14 = vpop.f32.mrf.mxu3  ;;  %5390 = vst.msk [vmem:[%s7976_s9 + $0x1e8] sm:$0xff] %vm5328_vm4, %v5195_v26  ;;  %v4377_v12 = vmax.f32 %v4249_v16, %v3458_v57  ;;  %v8889_v26 = vld [vmem:[#allocation3 + $0x1a0] sm:$0xff]  ;;  %v10093_v57 = vld [vmem:[#allocation33_spill] sm:$0xff] }
 0x711   : > { %v3787_v46 = vpop.f32.mrf.mxu1 }
 0x712   : > { %2859 = vmatmul.bf16.gmra.mxu2 %v8833_v15  ;;  %3497 = vmatmul.bf16.gmra.mxu0 %v8721_v48  ;;  %v4505_v25 = vmax.f32 %v4377_v12, %v3787_v46  ;;  %v10094_v12 = vmax.f32 %v10092_v3, %v10093_v57 }
 0x714   : > { %3826 = vmatmul.bf16.gmra.mxu1 %v8721_v48  ;;  %5224 = vmax.xlane.f32.xlu0 %v4505_v25  ;;  %v4126_v1 = vmax.f32 %v10094_v12, %v8798_v33  ;;  %v10095_v33 = vld [vmem:[#allocation34_spill] sm:$0xff] }
 0x715   : > { %3188 = vmatmul.bf16.gmra.mxu3 %v8833_v15  ;;  %v8843_v41 = vpop.f32.mrf.mxu2 }
 0x716   : > { %v4254_v0 = vmax.f32 %v4126_v1, %v8801_v38 }
 0x717   : > { %v5197_v36 = vpop.xlane.xlu1 %5196  ;;  %v3460_v7 = vpop.f32.mrf.mxu0 }
 0x718   : > { %v8846_v52 = vpop.f32.mrf.mxu3  ;;  %5391 = vst.msk [vmem:[%s7976_s9 + $0x1f0] sm:$0xff] %vm5328_vm4, %v5197_v36  ;;  %v4378_v60 = vmax.f32 %v4250_v35, %v3460_v7  ;;  %v10096_v7 = vld [vmem:[#allocation35_spill] sm:$0xff] }
 0x719   : > { %v3789_v22 = vpop.f32.mrf.mxu1 }
 0x71a   : > { %v4506_v48 = vmax.f32 %v4378_v60, %v3789_v22  ;;  %v10097_v60 = vmax.f32 %v10095_v33, %v10096_v7 }
 0x71c   : > { %5226 = vmax.xlane.f32.xlu1 %v4506_v48  ;;  %v4127_v22 = vmax.f32 %v10097_v60, %v8815_v24  ;;  %v10098_v24 = vld [vmem:[#allocation37_spill] sm:$0xff] }
 0x71d   : > { %v8854_v13 = vpop.f32.mrf.mxu2 }
 0x71e   : > { %v4255_v17 = vmax.f32 %v4127_v22, %v8818_v31 }
 0x71f   : > { %v5199_v59 = vpop.xlane.xlu2 %5198  ;;  %v3463_v49 = vpop.f32.mrf.mxu0 }
 0x720   : > { %v8857_v10 = vpop.f32.mrf.mxu3  ;;  %5392 = vst.msk [vmem:[%s7976_s9 + $0x1f8] sm:$0xff] %vm5328_vm4, %v5199_v59  ;;  %v4379_v47 = vmax.f32 %v4251_v18, %v3463_v49  ;;  %v8917_v59 = vld [vmem:[#allocation3 + $0x1a8] sm:$0xff] }
 0x721   : > { %v3792_v19 = vpop.f32.mrf.mxu1  ;;  %v10099_v49 = vld [vmem:[#allocation39_spill] sm:$0xff] }
 0x722   : > { %2864 = vmatmul.bf16.gmra.mxu2 %v8861_v28  ;;  %3502 = vmatmul.bf16.gmra.mxu0 %v8749_v6  ;;  %v4507_v62 = vmax.f32 %v4379_v47, %v3792_v19  ;;  %v10100_v47 = vmax.f32 %v10098_v24, %v10099_v49 }
 0x724   : > { %3831 = vmatmul.bf16.gmra.mxu1 %v8749_v6  ;;  %5228 = vmax.xlane.f32.xlu2 %v4507_v62  ;;  %v4128_v31 = vmax.f32 %v10100_v47, %v8826_v61  ;;  %v10101_v61 = vld [vmem:[#allocation41_spill] sm:$0xff] }
 0x725   : > { %3193 = vmatmul.bf16.gmra.mxu3 %v8861_v28  ;;  %v8871_v21 = vpop.f32.mrf.mxu2 }
 0x726   : > { %v4256_v34 = vmax.f32 %v4128_v31, %v8829_v14 }
 0x727   : > { %v5201_v45 = vpop.xlane.xlu0 %5200  ;;  %v3465_v43 = vpop.f32.mrf.mxu0 }
 0x728   : > { %v8874_v32 = vpop.f32.mrf.mxu3  ;;  %5393 = vst.msk [vmem:[%s7976_s9 + $0x200] sm:$0xff] %vm5328_vm4, %v5201_v45  ;;  %v4380_v50 = vmax.f32 %v4252_v44, %v3465_v43  ;;  %v10102_v43 = vld [vmem:[#allocation43_spill] sm:$0xff] }
 0x729   : > { %v3794_v53 = vpop.f32.mrf.mxu1 }
 0x72a   : > { %v4508_v6 = vmax.f32 %v4380_v50, %v3794_v53  ;;  %v10103_v50 = vmax.f32 %v10101_v61, %v10102_v43 }
 0x72c   : > { %5230 = vmax.xlane.f32.xlu0 %v4508_v6  ;;  %v4129_v53 = vmax.f32 %v10103_v50, %v8843_v41  ;;  %v10104_v41 = vld [vmem:[#allocation45_spill] sm:$0xff] }
 0x72d   : > { %v8882_v51 = vpop.f32.mrf.mxu2 }
 0x72e   : > { %v4257_v11 = vmax.f32 %v4129_v53, %v8846_v52 }
 0x72f   : > { %v5203_v56 = vpop.xlane.xlu1 %5202  ;;  %v3468_v20 = vpop.f32.mrf.mxu0 }
 0x730   : > { %v8885_v30 = vpop.f32.mrf.mxu3  ;;  %5394 = vst.msk [vmem:[%s7976_s9 + $0x208] sm:$0xff] %vm5328_vm4, %v5203_v56  ;;  %v4381_v63 = vmax.f32 %v4253_v23, %v3468_v20  ;;  %v8945_v56 = vld [vmem:[#allocation3 + $0x1b0] sm:$0xff]  ;;  %v10105_v20 = vld [vmem:[#allocation47_spill] sm:$0xff] }
 0x731   : > { %v3797_v16 = vpop.f32.mrf.mxu1 }
 0x732   : > { %2869 = vmatmul.bf16.gmra.mxu2 %v8889_v26  ;;  %3507 = vmatmul.bf16.gmra.mxu0 %v8777_v8  ;;  %v4509_v46 = vmax.f32 %v4381_v63, %v3797_v16  ;;  %v10106_v63 = vmax.f32 %v10104_v41, %v10105_v20 }
 0x734   : > { %3836 = vmatmul.bf16.gmra.mxu1 %v8777_v8  ;;  %5232 = vmax.xlane.f32.xlu1 %v4509_v46  ;;  %v4130_v52 = vmax.f32 %v10106_v63, %v8854_v13  ;;  %v10107_v13 = vld [vmem:[#allocation49_spill] sm:$0xff] }
 0x735   : > { %3198 = vmatmul.bf16.gmra.mxu3 %v8889_v26  ;;  %v8899_v40 = vpop.f32.mrf.mxu2 }
 0x736   : > { %v4258_v57 = vmax.f32 %v4130_v52, %v8857_v10 }
 0x737   : > { %v5205_v54 = vpop.xlane.xlu2 %5204  ;;  %v3470_v25 = vpop.f32.mrf.mxu0 }
 0x738   : > { %v8902_v37 = vpop.f32.mrf.mxu3  ;;  %5395 = vst.msk [vmem:[%s7976_s9 + $0x210] sm:$0xff] %vm5328_vm4, %v5205_v54  ;;  %v4382_v35 = vmax.f32 %v4254_v0, %v3470_v25  ;;  %v10108_v25 = vld [vmem:[#allocation51_spill] sm:$0xff] }
 0x739   : > { %v3799_v36 = vpop.f32.mrf.mxu1 }
 0x73a   : > { %v4510_v8 = vmax.f32 %v4382_v35, %v3799_v36  ;;  %v10109_v35 = vmax.f32 %v10107_v13, %v10108_v25 }
 0x73c   : > { %5234 = vmax.xlane.f32.xlu2 %v4510_v8  ;;  %v4131_v36 = vmax.f32 %v10109_v35, %v8871_v21  ;;  %v10110_v21 = vld [vmem:[#allocation53_spill] sm:$0xff] }
 0x73d   : > { %v8910_v9 = vpop.f32.mrf.mxu2 }
 0x73e   : > { %v4259_v7 = vmax.f32 %v4131_v36, %v8874_v32 }
 0x73f   : > { %v5207_v2 = vpop.xlane.xlu0 %5206  ;;  %v3473_v4 = vpop.f32.mrf.mxu0 }
 0x740   : > { %v8913_v38 = vpop.f32.mrf.mxu3  ;;  %5396 = vst.msk [vmem:[%s7976_s9 + $0x218] sm:$0xff] %vm5328_vm4, %v5207_v2  ;;  %v4383_v48 = vmax.f32 %v4255_v17, %v3473_v4  ;;  %v8973_v2 = vld [vmem:[#allocation3 + $0x1b8] sm:$0xff]  ;;  %v10111_v4 = vld [vmem:[#allocation55_spill] sm:$0xff] }
 0x741   : > { %v3802_v18 = vpop.f32.mrf.mxu1 }
 0x742   : > { %2874 = vmatmul.bf16.gmra.mxu2 %v8917_v59  ;;  %3512 = vmatmul.bf16.gmra.mxu0 %v8805_v29  ;;  %v4511_v19 = vmax.f32 %v4383_v48, %v3802_v18  ;;  %v10112_v48 = vmax.f32 %v10110_v21, %v10111_v4 }
 0x744   : > { %3841 = vmatmul.bf16.gmra.mxu1 %v8805_v29  ;;  %5236 = vmax.xlane.f32.xlu0 %v4511_v19  ;;  %v4132_v32 = vmax.f32 %v10112_v48, %v8882_v51  ;;  %v10113_v51 = vld [vmem:[#allocation57_spill] sm:$0xff] }
 0x745   : > { %3203 = vmatmul.bf16.gmra.mxu3 %v8917_v59  ;;  %v8927_v58 = vpop.f32.mrf.mxu2 }
 0x746   : > { %v4260_v49 = vmax.f32 %v4132_v32, %v8885_v30 }
 0x747   : > { %v5209_v39 = vpop.xlane.xlu1 %5208  ;;  %v3475_v62 = vpop.f32.mrf.mxu0 }
 0x748   : > { %v8930_v42 = vpop.f32.mrf.mxu3  ;;  %5397 = vst.msk [vmem:[%s7976_s9 + $0x220] sm:$0xff] %vm5328_vm4, %v5209_v39  ;;  %v4384_v44 = vmax.f32 %v4256_v34, %v3475_v62  ;;  %v10114_v62 = vld [vmem:[#allocation59_spill] sm:$0xff] }
 0x749   : > { %v3804_v45 = vpop.f32.mrf.mxu1 }
 0x74a   : > { %v4512_v29 = vmax.f32 %v4384_v44, %v3804_v45  ;;  %v10115_v44 = vmax.f32 %v10113_v51, %v10114_v62 }
 0x74c   : > { %5238 = vmax.xlane.f32.xlu1 %v4512_v29  ;;  %v4133_v45 = vmax.f32 %v10115_v44, %v8899_v40  ;;  %v10116_v40 = vld [vmem:[#allocation61_spill] sm:$0xff] }
 0x74d   : > { %v8938_v27 = vpop.f32.mrf.mxu2 }
 0x74e   : > { %v4261_v43 = vmax.f32 %v4133_v45, %v8902_v37 }
 0x74f   : > { %v5211_v5 = vpop.xlane.xlu2 %5210  ;;  %v3478_v55 = vpop.f32.mrf.mxu0 }
 0x750   : > { %v8941_v14 = vpop.f32.mrf.mxu3  ;;  %5398 = vst.msk [vmem:[%s7976_s9 + $0x228] sm:$0xff] %vm5328_vm4, %v5211_v5  ;;  %v4385_v6 = vmax.f32 %v4257_v11, %v3478_v55  ;;  %v9001_v5 = vld [vmem:[#allocation3 + $0x1c0] sm:$0xff]  ;;  %v10117_v55 = vld [vmem:[#allocation63_spill] sm:$0xff] }
 0x751   : > { %v3807_v23 = vpop.f32.mrf.mxu1 }
 0x752   : > { %2879 = vmatmul.bf16.gmra.mxu2 %v8945_v56  ;;  %3517 = vmatmul.bf16.gmra.mxu0 %v8833_v15  ;;  %v4513_v16 = vmax.f32 %v4385_v6, %v3807_v23  ;;  %v10118_v6 = vmax.f32 %v10116_v40, %v10117_v55 }
 0x754   : > { %3846 = vmatmul.bf16.gmra.mxu1 %v8833_v15  ;;  %5240 = vmax.xlane.f32.xlu2 %v4513_v16  ;;  %v4134_v37 = vmax.f32 %v10118_v6, %v8910_v9  ;;  %v10119_v9 = vld [vmem:[#allocation65_spill] sm:$0xff] }
 0x755   : > { %3208 = vmatmul.bf16.gmra.mxu3 %v8945_v56  ;;  %v8955_v3 = vpop.f32.mrf.mxu2 }
 0x756   : > { %v4262_v20 = vmax.f32 %v4134_v37, %v8913_v38 }
 0x757   : > { %v5213_v1 = vpop.xlane.xlu0 %5212  ;;  %v3480_v46 = vpop.f32.mrf.mxu0 }
 0x758   : > { %v8958_v12 = vpop.f32.mrf.mxu3  ;;  %5399 = vst.msk [vmem:[%s7976_s9 + $0x230] sm:$0xff] %vm5328_vm4, %v5213_v1  ;;  %v4386_v0 = vmax.f32 %v4258_v57, %v3480_v46  ;;  %v10120_v46 = vld [vmem:[#allocation67_spill] sm:$0xff] }
 0x759   : > { %v3809_v54 = vpop.f32.mrf.mxu1 }
 0x75a   : > { %v4514_v15 = vmax.f32 %v4386_v0, %v3809_v54  ;;  %v10121_v0 = vmax.f32 %v10119_v9, %v10120_v46 }
 0x75c   : > { %5242 = vmax.xlane.f32.xlu0 %v4514_v15  ;;  %v4135_v54 = vmax.f32 %v10121_v0, %v8927_v58  ;;  %v10122_v58 = vld [vmem:[#allocation69_spill] sm:$0xff] }
 0x75d   : > { %v8966_v33 = vpop.f32.mrf.mxu2 }
 0x75e   : > { %v4263_v25 = vmax.f32 %v4135_v54, %v8930_v42 }
 0x75f   : > { %v5215_v60 = vpop.xlane.xlu1 %5214  ;;  %v3483_v22 = vpop.f32.mrf.mxu0 }
 0x760   : > { %v8969_v10 = vpop.f32.mrf.mxu3  ;;  %5400 = vst.msk [vmem:[%s7976_s9 + $0x238] sm:$0xff] %vm5328_vm4, %v5215_v60  ;;  %v4387_v8 = vmax.f32 %v4259_v7, %v3483_v22  ;;  %v9029_v60 = vld [vmem:[#allocation3 + $0x1c8] sm:$0xff] }
 0x761   : > { %v3812_v17 = vpop.f32.mrf.mxu1  ;;  %v10123_v22 = vld [vmem:[#allocation71_spill] sm:$0xff] }
 0x762   : > { %2884 = vmatmul.bf16.gmra.mxu2 %v8973_v2  ;;  %3522 = vmatmul.bf16.gmra.mxu0 %v8861_v28  ;;  %v4515_v18 = vmax.f32 %v4387_v8, %v3812_v17  ;;  %v10124_v8 = vmax.f32 %v10122_v58, %v10123_v22 }
 0x764   : > { %3851 = vmatmul.bf16.gmra.mxu1 %v8861_v28  ;;  %5244 = vmax.xlane.f32.xlu1 %v4515_v18  ;;  %v4136_v42 = vmax.f32 %v10124_v8, %v8938_v27  ;;  %v10125_v27 = vld [vmem:[#allocation73_spill] sm:$0xff] }
 0x765   : > { %3213 = vmatmul.bf16.gmra.mxu3 %v8973_v2  ;;  %v8983_v24 = vpop.f32.mrf.mxu2 }
 0x766   : > { %v4264_v4 = vmax.f32 %v4136_v42, %v8941_v14 }
 0x767   : > { %v5217_v31 = vpop.xlane.xlu2 %5216  ;;  %v3485_v19 = vpop.f32.mrf.mxu0 }
 0x768   : > { %v8986_v47 = vpop.f32.mrf.mxu3  ;;  %5401 = vst.msk [vmem:[%s7976_s9 + $0x240] sm:$0xff] %vm5328_vm4, %v5217_v31  ;;  %v4388_v34 = vmax.f32 %v4260_v49, %v3485_v19  ;;  %v10126_v19 = vld [vmem:[#allocation75_spill] sm:$0xff] }
 0x769   : > { %v3814_v39 = vpop.f32.mrf.mxu1 }
 0x76a   : > { %v4516_v28 = vmax.f32 %v4388_v34, %v3814_v39  ;;  %v10127_v34 = vmax.f32 %v10125_v27, %v10126_v19 }
 0x76c   : > { %5246 = vmax.xlane.f32.xlu2 %v4516_v28  ;;  %v4137_v39 = vmax.f32 %v10127_v34, %v8955_v3  ;;  %v10128_v3 = vld [vmem:[#allocation77_spill] sm:$0xff] }
 0x76d   : > { %v8994_v61 = vpop.f32.mrf.mxu2 }
 0x76e   : > { %v4265_v62 = vmax.f32 %v4137_v39, %v8958_v12 }
 0x76f   : > { %v5219_v50 = vpop.xlane.xlu0 %5218  ;;  %v3488_v53 = vpop.f32.mrf.mxu0 }
 0x770   : > { %v8997_v30 = vpop.f32.mrf.mxu3  ;;  %5402 = vst.msk [vmem:[%s7976_s9 + $0x248] sm:$0xff] %vm5328_vm4, %v5219_v50  ;;  %v4389_v29 = vmax.f32 %v4261_v43, %v3488_v53  ;;  %v9057_v50 = vld [vmem:[#allocation3 + $0x1d0] sm:$0xff]  ;;  %v10129_v53 = vld [vmem:[#allocation79_spill] sm:$0xff] }
 0x771   : > { %v3817_v11 = vpop.f32.mrf.mxu1 }
 0x772   : > { %2889 = vmatmul.bf16.gmra.mxu2 %v9001_v5  ;;  %3527 = vmatmul.bf16.gmra.mxu0 %v8889_v26  ;;  %v4517_v23 = vmax.f32 %v4389_v29, %v3817_v11  ;;  %v10130_v29 = vmax.f32 %v10128_v3, %v10129_v53 }
 0x774   : > { %3856 = vmatmul.bf16.gmra.mxu1 %v8889_v26  ;;  %5248 = vmax.xlane.f32.xlu0 %v4517_v23  ;;  %v4138_v12 = vmax.f32 %v10130_v29, %v8966_v33  ;;  %v10131_v33 = vld [vmem:[#allocation81_spill] sm:$0xff] }
 0x775   : > { %3218 = vmatmul.bf16.gmra.mxu3 %v9001_v5  ;;  %v9011_v41 = vpop.f32.mrf.mxu2 }
 0x776   : > { %v4266_v55 = vmax.f32 %v4138_v12, %v8969_v10 }
 0x777   : > { %v5221_v52 = vpop.xlane.xlu1 %5220  ;;  %v3490_v16 = vpop.f32.mrf.mxu0 }
 0x778   : > { %v9014_v63 = vpop.f32.mrf.mxu3  ;;  %5403 = vst.msk [vmem:[%s7976_s9 + $0x250] sm:$0xff] %vm5328_vm4, %v5221_v52  ;;  %v4390_v57 = vmax.f32 %v4262_v20, %v3490_v16  ;;  %v10132_v16 = vld [vmem:[#allocation83_spill] sm:$0xff] }
 0x779   : > { %v3819_v1 = vpop.f32.mrf.mxu1 }
 0x77a   : > { %v4518_v26 = vmax.f32 %v4390_v57, %v3819_v1  ;;  %v10133_v57 = vmax.f32 %v10131_v33, %v10132_v16 }
 0x77c   : > { %5250 = vmax.xlane.f32.xlu1 %v4518_v26  ;;  %v4139_v1 = vmax.f32 %v10133_v57, %v8983_v24  ;;  %v10134_v24 = vld [vmem:[#allocation85_spill] sm:$0xff] }
 0x77d   : > { %v9022_v13 = vpop.f32.mrf.mxu2 }
 0x77e   : > { %v4267_v46 = vmax.f32 %v4139_v1, %v8986_v47 }
 0x77f   : > { %v5223_v35 = vpop.xlane.xlu2 %5222  ;;  %v3493_v36 = vpop.f32.mrf.mxu0 }
 0x780   : > { %v9025_v38 = vpop.f32.mrf.mxu3  ;;  %5404 = vst.msk [vmem:[%s7976_s9 + $0x258] sm:$0xff] %vm5328_vm4, %v5223_v35  ;;  %v4391_v15 = vmax.f32 %v4263_v25, %v3493_v36  ;;  %v9085_v35 = vld [vmem:[#allocation3 + $0x1d8] sm:$0xff]  ;;  %v10135_v36 = vld [vmem:[#allocation87_spill] sm:$0xff] }
 0x781   : > { %v3822_v7 = vpop.f32.mrf.mxu1 }
 0x782   : > { %2894 = vmatmul.bf16.gmra.mxu2 %v9029_v60  ;;  %3532 = vmatmul.bf16.gmra.mxu0 %v8917_v59  ;;  %v4519_v17 = vmax.f32 %v4391_v15, %v3822_v7  ;;  %v10136_v15 = vmax.f32 %v10134_v24, %v10135_v36 }
 0x784   : > { %3861 = vmatmul.bf16.gmra.mxu1 %v8917_v59  ;;  %5252 = vmax.xlane.f32.xlu2 %v4519_v17  ;;  %v4140_v47 = vmax.f32 %v10136_v15, %v8994_v61  ;;  %v10137_v61 = vld [vmem:[#allocation89_spill] sm:$0xff] }
 0x785   : > { %3223 = vmatmul.bf16.gmra.mxu3 %v9029_v60  ;;  %v9039_v21 = vpop.f32.mrf.mxu2 }
 0x786   : > { %v4268_v22 = vmax.f32 %v4140_v47, %v8997_v30 }
 0x787   : > { %v5225_v32 = vpop.xlane.xlu0 %5224  ;;  %v3495_v18 = vpop.f32.mrf.mxu0 }
 0x788   : > { %v9042_v48 = vpop.f32.mrf.mxu3  ;;  %5405 = vst.msk [vmem:[%s7976_s9 + $0x260] sm:$0xff] %vm5328_vm4, %v5225_v32  ;;  %v4392_v49 = vmax.f32 %v4264_v4, %v3495_v18  ;;  %v10138_v18 = vld [vmem:[#allocation91_spill] sm:$0xff] }
 0x789   : > { %v3824_v31 = vpop.f32.mrf.mxu1 }
 0x78a   : > { %v4520_v59 = vmax.f32 %v4392_v49, %v3824_v31  ;;  %v10139_v49 = vmax.f32 %v10137_v61, %v10138_v18 }
 0x78c   : > { %5254 = vmax.xlane.f32.xlu0 %v4520_v59  ;;  %v4141_v31 = vmax.f32 %v10139_v49, %v9011_v41  ;;  %v10140_v41 = vld [vmem:[#allocation93_spill] sm:$0xff] }
 0x78d   : > { %v9050_v51 = vpop.f32.mrf.mxu2 }
 0x78e   : > { %v4269_v27 = vmax.f32 %v4141_v31, %v9014_v63 }
 0x78f   : > { %v5227_v44 = vpop.xlane.xlu1 %5226  ;;  %v3498_v45 = vpop.f32.mrf.mxu0 }
 0x790   : > { %v9053_v14 = vpop.f32.mrf.mxu3  ;;  %5406 = vst.msk [vmem:[%s7976_s9 + $0x268] sm:$0xff] %vm5328_vm4, %v5227_v44  ;;  %v4393_v28 = vmax.f32 %v4265_v62, %v3498_v45  ;;  %v9111_v62 = vld [vmem:[#allocation3 + $0x1e0] sm:$0xff]  ;;  %v10141_v44 = vld [vmem:[#allocation95_spill] sm:$0xff] }
 0x791   : > { %v3827_v43 = vpop.f32.mrf.mxu1  ;;  %v10142_v45 = vmax.f32 %v10140_v41, %v10141_v44 }
 0x792   : > { %2899 = vmatmul.bf16.gmra.mxu2 %v9057_v50  ;;  %3537 = vmatmul.bf16.gmra.mxu0 %v8945_v56  ;;  %v4521_v11 = vmax.f32 %v4393_v28, %v3827_v43 }
 0x793   : > { %v4142_v63 = vmax.f32 %v10142_v45, %v9022_v13  ;;  %v10143_v13 = vld [vmem:[#allocation97_spill] sm:$0xff] }
 0x794   : > { %3866 = vmatmul.bf16.gmra.mxu1 %v8945_v56  ;;  %5256 = vmax.xlane.f32.xlu1 %v4521_v11 }
 0x795   : > { %3228 = vmatmul.bf16.gmra.mxu3 %v9057_v50  ;;  %v9067_v40 = vpop.f32.mrf.mxu2  ;;  %v4270_v3 = vmax.f32 %v4142_v63, %v9025_v38 }
 0x797   : > { %v5229_v37 = vpop.xlane.xlu2 %5228  ;;  %v3500_v23 = vpop.f32.mrf.mxu0 }
 0x798   : > { %v9070_v6 = vpop.f32.mrf.mxu3  ;;  %5407 = vst.msk [vmem:[%s7976_s9 + $0x270] sm:$0xff] %vm5328_vm4, %v5229_v37  ;;  %v4394_v20 = vmax.f32 %v4266_v55, %v3500_v23  ;;  %v10144_v37 = vld [vmem:[#allocation99_spill] sm:$0xff] }
 0x799   : > { %v3829_v52 = vpop.f32.mrf.mxu1  ;;  %v10145_v23 = vmax.f32 %v10143_v13, %v10144_v37 }
 0x79a   : > { %v4522_v56 = vmax.f32 %v4394_v20, %v3829_v52 }
 0x79b   : > { %v4143_v20 = vmax.f32 %v10145_v23, %v9039_v21  ;;  %v10146_v21 = vld [vmem:[#allocation101_spill] sm:$0xff] }
 0x79c   : > { %5258 = vmax.xlane.f32.xlu2 %v4522_v56  ;;  %v9137_v56 = vld [vmem:[#allocation3 + $0x1e8] sm:$0xff] }
 0x79d   : > { %v9078_v9 = vpop.f32.mrf.mxu2 }
 0x79f   : > { %v5231_v0 = vpop.xlane.xlu0 %5230  ;;  %v3503_v54 = vpop.f32.mrf.mxu0 }
 0x7a0   : > { %v9081_v10 = vpop.f32.mrf.mxu3  ;;  %5408 = vst.msk [vmem:[%s7976_s9 + $0x278] sm:$0xff] %vm5328_vm4, %v5231_v0  ;;  %v4395_v26 = vmax.f32 %v4267_v46, %v3503_v54  ;;  %v10147_v46 = vld [vmem:[#allocation103_spill] sm:$0xff] }
 0x7a1   : > { %v3832_v25 = vpop.f32.mrf.mxu1  ;;  %v10148_v0 = vmax.f32 %v10146_v21, %v10147_v46 }
 0x7a2   : > { %2904 = vmatmul.bf16.gmra.mxu2 %v9085_v35  ;;  %3542 = vmatmul.bf16.gmra.mxu0 %v8973_v2  ;;  %v4523_v7 = vmax.f32 %v4395_v26, %v3832_v25 }
 0x7a3   : > { %v4144_v54 = vmax.f32 %v10148_v0, %v9050_v51  ;;  %v10149_v51 = vld [vmem:[#allocation105_spill] sm:$0xff] }
 0x7a4   : > { %3871 = vmatmul.bf16.gmra.mxu1 %v8973_v2  ;;  %5260 = vmax.xlane.f32.xlu0 %v4523_v7 }
 0x7a5   : > { %3233 = vmatmul.bf16.gmra.mxu3 %v9085_v35  ;;  %v9095_v58 = vpop.f32.mrf.mxu2  ;;  %v4272_v25 = vmax.f32 %v4144_v54, %v9053_v14  ;;  %v10161_v54 = vld [vmem:[#allocation121_spill] sm:$0xff] }
 0x7a7   : > { %v5233_v8 = vpop.xlane.xlu1 %5232  ;;  %v3505_v42 = vpop.f32.mrf.mxu0 }
 0x7a8   : > { %v9098_v17 = vpop.f32.mrf.mxu3  ;;  %5409 = vst.msk [vmem:[%s7976_s9 + $0x280] sm:$0xff] %vm5328_vm4, %v5233_v8  ;;  %v4396_v4 = vmax.f32 %v4268_v22, %v3505_v42  ;;  %v10150_v22 = vld [vmem:[#allocation107_spill] sm:$0xff] }
 0x7a9   : > { %v3834_v32 = vpop.f32.mrf.mxu1  ;;  %v10151_v8 = vmax.f32 %v10149_v51, %v10150_v22 }
 0x7aa   : > { %v4524_v2 = vmax.f32 %v4396_v4, %v3834_v32 }
 0x7ab   : > { %v4145_v42 = vmax.f32 %v10151_v8, %v9067_v40  ;;  %v10152_v40 = vld [vmem:[#allocation109_spill] sm:$0xff] }
 0x7ac   : > { %5262 = vmax.xlane.f32.xlu1 %v4524_v2  ;;  %v9165_v2 = vld [vmem:[#allocation3 + $0x1f0] sm:$0xff]  ;;  %v10164_v8 = vld [vmem:[#allocation125_spill] sm:$0xff] }
 0x7ad   : > { %v9107_v19 = vpop.f32.mrf.mxu2 }
 0x7af   : > { %v5235_v30 = vpop.xlane.xlu2 %5234  ;;  %v3508_v34 = vpop.f32.mrf.mxu0 }
 0x7b0   : > { %5410 = vst.msk [vmem:[%s7976_s9 + $0x288] sm:$0xff] %vm5328_vm4, %v5235_v30  ;;  %v4397_v39 = vmax.f32 %v4269_v27, %v3508_v34  ;;  %v9119_v28 = vpop.f32.mrf.mxu3  ;;  %v10153_v27 = vld [vmem:[#allocation111_spill] sm:$0xff] }
 0x7b1   : > { %v3837_v59 = vpop.f32.mrf.mxu1  ;;  %v10154_v30 = vmax.f32 %v10152_v40, %v10153_v27 }
 0x7b2   : > { %2909 = vmatmul.bf16.gmra.mxu2 %v9111_v62  ;;  %3547 = vmatmul.bf16.gmra.mxu0 %v9001_v5  ;;  %v4525_v43 = vmax.f32 %v4397_v39, %v3837_v59 }
 0x7b4   : > { %3876 = vmatmul.bf16.gmra.mxu1 %v9001_v5  ;;  %5264 = vmax.xlane.f32.xlu2 %v4525_v43  ;;  %v4271_v5 = vmax.f32 %v4143_v20, %v9042_v48  ;;  %v10155_v43 = vld [vmem:[#allocation113_spill] sm:$0xff] }
 0x7b5   : > { %3238 = vmatmul.bf16.gmra.mxu3 %v9111_v62  ;;  %v9124_v12 = vpop.f32.mrf.mxu2  ;;  %v9191_v20 = vld [vmem:[#allocation3 + $0x1f8] sm:$0xff] }
 0x7b7   : > { %v5237_v53 = vpop.xlane.xlu0 %5236  ;;  %v3510_v29 = vpop.f32.mrf.mxu0 }
 0x7b8   : > { %5411 = vst.msk [vmem:[%s7976_s9 + $0x290] sm:$0xff] %vm5328_vm4, %v5237_v53  ;;  %v4398_v11 = vmax.f32 %v4270_v3, %v3510_v29  ;;  %v9132_v33 = vpop.f32.mrf.mxu3 }
 0x7b9   : > { %v3839_v55 = vpop.f32.mrf.mxu1 }
 0x7ba   : > { %v4526_v52 = vmax.f32 %v4398_v11, %v3839_v55 }
 0x7bc   : > { %5266 = vmax.xlane.f32.xlu0 %v4526_v52  ;;  %v10159_v52 = vld [vmem:[#allocation119_spill] sm:$0xff] }
 0x7bd   : > { %v9145_v26 = vpop.f32.mrf.mxu2 }
 0x7bf   : > { %v5239_v38 = vpop.xlane.xlu1 %5238  ;;  %v3513_v16 = vpop.f32.mrf.mxu0 }
 0x7c0   : > { %5412 = vst.msk [vmem:[%s7976_s9 + $0x298] sm:$0xff] %vm5328_vm4, %v5239_v38  ;;  %v4399_v57 = vmax.f32 %v4271_v5, %v3513_v16  ;;  %v9150_v24 = vpop.f32.mrf.mxu3 }
 0x7c1   : > { %v3842_v1 = vpop.f32.mrf.mxu1 }
 0x7c2   : > { %2914 = vmatmul.bf16.gmra.mxu2 %v9137_v56  ;;  %3552 = vmatmul.bf16.gmra.mxu0 %v9029_v60  ;;  %v4527_v48 = vmax.f32 %v4399_v57, %v3842_v1 }
 0x7c4   : > { %3881 = vmatmul.bf16.gmra.mxu1 %v9029_v60  ;;  %5268 = vmax.xlane.f32.xlu1 %v4527_v48  ;;  %v4273_v60 = vmax.f32 %v4145_v42, %v9070_v6  ;;  %v4146_v6 = vmax.f32 %v10154_v30, %v9078_v9  ;;  %v10156_v9 = vld [vmem:[#allocation115_spill] sm:$0xff]  ;;  %v10167_v30 = vld [vmem:[#allocation129_spill] sm:$0xff] }
 0x7c5   : > { %3243 = vmatmul.bf16.gmra.mxu3 %v9137_v56  ;;  %v9158_v32 = vpop.f32.mrf.mxu2  ;;  %v10157_v3 = vmax.f32 %v10155_v43, %v10156_v9  ;;  %v10165_v42 = vld [vmem:[#allocation127_spill] sm:$0xff]  ;;  %v10170_v43 = vld [vmem:[#allocation133_spill] sm:$0xff] }
 0x7c6   : > { %v4274_v39 = vmax.f32 %v4146_v6, %v9081_v10  ;;  %v10168_v6 = vld [vmem:[#allocation131_spill] sm:$0xff] }
 0x7c7   : > { %v5241_v36 = vpop.xlane.xlu2 %5240  ;;  %v3515_v15 = vpop.f32.mrf.mxu0  ;;  %v4147_v53 = vmax.f32 %v10157_v3, %v9095_v58  ;;  %v10158_v58 = vld [vmem:[#allocation117_spill] sm:$0xff]  ;;  %v10171_v9 = vld [vmem:[#allocation135_spill] sm:$0xff] }
 0x7c8   : > { %5413 = vst.msk [vmem:[%s7976_s9 + $0x2a0] sm:$0xff] %vm5328_vm4, %v5241_v36  ;;  %v4400_v47 = vmax.f32 %v4272_v25, %v3515_v15  ;;  %v9161_v18 = vpop.f32.mrf.mxu3  ;;  %v10160_v5 = vmax.f32 %v10158_v58, %v10159_v52  ;;  %v10172_v3 = vmax.f32 %v10170_v43, %v10171_v9  ;;  %v10173_v58 = vld [vmem:[#allocation137_spill] sm:$0xff]  ;;  %v10174_v52 = vld [vmem:[#allocation139_spill] sm:$0xff] }
 0x7c9   : > { %v3844_v7 = vpop.f32.mrf.mxu1  ;;  %v4275_v11 = vmax.f32 %v4147_v53, %v9098_v17 }
 0x7ca   : > { %v4528_v4 = vmax.f32 %v4400_v47, %v3844_v7  ;;  %v4148_v17 = vmax.f32 %v10160_v5, %v9107_v19  ;;  %v10162_v19 = vld [vmem:[#allocation123_spill] sm:$0xff]  ;;  %v10175_v5 = vmax.f32 %v10173_v58, %v10174_v52 }
 0x7cb   : > { %v10163_v48 = vmax.f32 %v10161_v54, %v10162_v19 }
 0x7cc   : > { %5270 = vmax.xlane.f32.xlu2 %v4528_v4  ;;  %v4276_v57 = vmax.f32 %v4148_v17, %v9119_v28 }
 0x7cd   : > { %v9176_v59 = vpop.f32.mrf.mxu2  ;;  %v4149_v25 = vmax.f32 %v10163_v48, %v9124_v12  ;;  %v10166_v12 = vmax.f32 %v10164_v8, %v10165_v42 }
 0x7ce   : > { %v4152_v53 = vmax.f32 %v10172_v3, %v9176_v59 }
 0x7cf   : > { %v5243_v14 = vpop.xlane.xlu0 %5242  ;;  %v3518_v61 = vpop.f32.mrf.mxu0  ;;  %v4150_v4 = vmax.f32 %v10166_v12, %v9145_v26 }
 0x7d0   : > { %5414 = vst.msk [vmem:[%s7976_s9 + $0x2a8] sm:$0xff] %vm5328_vm4, %v5243_v14  ;;  %v4401_v49 = vmax.f32 %v4273_v60, %v3518_v61  ;;  %v9184_v29 = vpop.f32.mrf.mxu3 }
 0x7d1   : > { %v3847_v31 = vpop.f32.mrf.mxu1  ;;  %v4278_v14 = vmax.f32 %v4150_v4, %v9150_v24 }
 0x7d2   : > { %2919 = vmatmul.bf16.gmra.mxu2 %v9165_v2  ;;  %3557 = vmatmul.bf16.gmra.mxu0 %v9057_v50  ;;  %v4529_v34 = vmax.f32 %v4401_v49, %v3847_v31 }
 0x7d4   : > { %3886 = vmatmul.bf16.gmra.mxu1 %v9057_v50  ;;  %5272 = vmax.xlane.f32.xlu0 %v4529_v34  ;;  %v10169_v34 = vmax.f32 %v10167_v30, %v10168_v6 }
 0x7d5   : > { %3248 = vmatmul.bf16.gmra.mxu3 %v9165_v2  ;;  %v9187_v13 = vpop.f32.mrf.mxu2 }
 0x7d6   : > { %v4151_v26 = vmax.f32 %v10169_v34, %v9158_v32  ;;  %v4153_v59 = vmax.f32 %v10175_v5, %v9187_v13 }
 0x7d7   : > { %v5245_v41 = vpop.xlane.xlu1 %5244  ;;  %v3520_v44 = vpop.f32.mrf.mxu0 }
 0x7d8   : > { %5415 = vst.msk [vmem:[%s7976_s9 + $0x2b0] sm:$0xff] %vm5328_vm4, %v5245_v41  ;;  %v4402_v45 = vmax.f32 %v4274_v39, %v3520_v44  ;;  %v9201_v16 = vpop.f32.mrf.mxu3 }
 0x7d9   : > { %v3849_v63 = vpop.f32.mrf.mxu1 }
 0x7da   : > { %v4530_v50 = vmax.f32 %v4402_v45, %v3849_v63 }
 0x7dc   : > { %5274 = vmax.xlane.f32.xlu1 %v4530_v50 }
 0x7dd   : > { %v2882_v36 = vpop.f32.mrf.mxu2 }
 0x7df   : > { %v5247_v10 = vpop.xlane.xlu2 %5246  ;;  %v3523_v55 = vpop.f32.mrf.mxu0 }
 0x7e0   : > { %5416 = vst.msk [vmem:[%s7976_s9 + $0x2b8] sm:$0xff] %vm5328_vm4, %v5247_v10  ;;  %v4403_v37 = vmax.f32 %v4275_v11, %v3523_v55  ;;  %v9211_v47 = vpop.f32.mrf.mxu3 }
 0x7e1   : > { %v3852_v23 = vpop.f32.mrf.mxu1 }
 0x7e2   : > { %2924 = vmatmul.bf16.gmra.mxu2 %v9191_v20  ;;  %3562 = vmatmul.bf16.gmra.mxu0 %v9085_v35  ;;  %v4531_v38 = vmax.f32 %v4403_v37, %v3852_v23 }
 0x7e4   : > { %3891 = vmatmul.bf16.gmra.mxu1 %v9085_v35  ;;  %5276 = vmax.xlane.f32.xlu2 %v4531_v38  ;;  %v4277_v35 = vmax.f32 %v4149_v25, %v9132_v33 }
 0x7e5   : > { %3253 = vmatmul.bf16.gmra.mxu3 %v9191_v20  ;;  %v2885_v33 = vpop.f32.mrf.mxu2 }
 0x7e7   : > { %v5249_v1 = vpop.xlane.xlu0 %5248  ;;  %v3525_v21 = vpop.f32.mrf.mxu0 }
 0x7e8   : > { %5417 = vst.msk [vmem:[%s7976_s9 + $0x2c0] sm:$0xff] %vm5328_vm4, %v5249_v1  ;;  %v4404_v46 = vmax.f32 %v4276_v57, %v3525_v21  ;;  %v3214_v31 = vpop.f32.mrf.mxu3 }
 0x7e9   : > { %v3854_v0 = vpop.f32.mrf.mxu1 }
 0x7ea   : > { %v4532_v15 = vmax.f32 %v4404_v46, %v3854_v0  ;;  %v10176_v46 = vld [vmem:[#allocation141_spill] sm:$0xff]  ;;  %v10177_v0 = vld [vmem:[#allocation143_spill] sm:$0xff] }
 0x7eb   : > { %v10178_v54 = vmax.f32 %v10176_v46, %v10177_v0 }
 0x7ec   : > { %5278 = vmax.xlane.f32.xlu0 %v4532_v15 }
 0x7ed   : > { %v2887_v41 = vpop.f32.mrf.mxu2  ;;  %v4154_v19 = vmax.f32 %v10178_v54, %v2882_v36 }
 0x7ef   : > { %v5251_v28 = vpop.xlane.xlu1 %5250  ;;  %v3528_v7 = vpop.f32.mrf.mxu0 }
 0x7f0   : > { %5418 = vst.msk [vmem:[%s7976_s9 + $0x2c8] sm:$0xff] %vm5328_vm4, %v5251_v28  ;;  %v4405_v51 = vmax.f32 %v4277_v35, %v3528_v7  ;;  %v3216_v32 = vpop.f32.mrf.mxu3 }
 0x7f1   : > { %v3857_v22 = vpop.f32.mrf.mxu1 }
 0x7f2   : > { %3567 = vmatmul.bf16.gmra.mxu0 %v9111_v62  ;;  %v4533_v60 = vmax.f32 %v4405_v51, %v3857_v22  ;;  %v10179_v51 = vld [vmem:[#allocation145_spill] sm:$0xff]  ;;  %v10180_v22 = vld [vmem:[#allocation147_spill] sm:$0xff] }
 0x7f3   : > { %v10181_v8 = vmax.f32 %v10179_v51, %v10180_v22 }
 0x7f4   : > { %3896 = vmatmul.bf16.gmra.mxu1 %v9111_v62  ;;  %5280 = vmax.xlane.f32.xlu1 %v4533_v60  ;;  %v4279_v62 = vmax.f32 %v4151_v26, %v9161_v18  ;;  %v4280_v18 = vmax.f32 %v4152_v53, %v9184_v29 }
 0x7f5   : > { %v2890_v55 = vpop.f32.mrf.mxu2  ;;  %v4155_v42 = vmax.f32 %v10181_v8, %v2885_v33 }
 0x7f7   : > { %v5253_v61 = vpop.xlane.xlu2 %5252  ;;  %v3530_v49 = vpop.f32.mrf.mxu0  ;;  %v4283_v4 = vmax.f32 %v4155_v42, %v3214_v31 }
 0x7f8   : > { %5419 = vst.msk [vmem:[%s7976_s9 + $0x2d0] sm:$0xff] %vm5328_vm4, %v5253_v61  ;;  %v4406_v40 = vmax.f32 %v4278_v14, %v3530_v49  ;;  %v3219_v38 = vpop.f32.mrf.mxu3  ;;  %v10182_v49 = vld [vmem:[#allocation149_spill] sm:$0xff] }
 0x7f9   : > { %v3859_v27 = vpop.f32.mrf.mxu1 }
 0x7fa   : > { %v4534_v39 = vmax.f32 %v4406_v40, %v3859_v27  ;;  %v10183_v40 = vld [vmem:[#allocation151_spill] sm:$0xff] }
 0x7fb   : > { %v10184_v27 = vmax.f32 %v10182_v49, %v10183_v40 }
 0x7fc   : > { %5282 = vmax.xlane.f32.xlu2 %v4534_v39 }
 0x7fd   : > { %v2892_v48 = vpop.f32.mrf.mxu2  ;;  %v4156_v30 = vmax.f32 %v10184_v27, %v2887_v41 }
 0x7ff   : > { %v5255_v44 = vpop.xlane.xlu0 %5254  ;;  %v3533_v24 = vpop.f32.mrf.mxu0  ;;  %v4284_v33 = vmax.f32 %v4156_v30, %v3216_v32 }
 0x800   : > { %5420 = vst.msk [vmem:[%s7976_s9 + $0x2d8] sm:$0xff] %vm5328_vm4, %v5255_v44  ;;  %v4407_v45 = vmax.f32 %v4279_v62, %v3533_v24  ;;  %v3221_v25 = vpop.f32.mrf.mxu3  ;;  %v10185_v44 = vld [vmem:[#allocation153_spill] sm:$0xff]  ;;  %v10186_v24 = vld [vmem:[#allocation155_spill] sm:$0xff] }
 0x801   : > { %v3862_v63 = vpop.f32.mrf.mxu1 }
 0x802   : > { %3572 = vmatmul.bf16.gmra.mxu0 %v9137_v56  ;;  %v4535_v50 = vmax.f32 %v4407_v45, %v3862_v63  ;;  %v10187_v45 = vmax.f32 %v10185_v44, %v10186_v24 }
 0x804   : > { %3901 = vmatmul.bf16.gmra.mxu1 %v9137_v56  ;;  %5284 = vmax.xlane.f32.xlu0 %v4535_v50  ;;  %v4281_v56 = vmax.f32 %v4153_v59, %v9201_v16  ;;  %v4282_v16 = vmax.f32 %v4154_v19, %v9211_v47  ;;  %v4157_v63 = vmax.f32 %v10187_v45, %v2890_v55 }
 0x805   : > { %v2895_v12 = vpop.f32.mrf.mxu2 }
 0x806   : > { %v4285_v41 = vmax.f32 %v4157_v63, %v3219_v38  ;;  %v10191_v38 = vld [vmem:[#allocation161_spill] sm:$0xff] }
 0x807   : > { %v5257_v11 = vpop.xlane.xlu1 %5256  ;;  %v3535_v10 = vpop.f32.mrf.mxu0 }
 0x808   : > { %5421 = vst.msk [vmem:[%s7976_s9 + $0x2e0] sm:$0xff] %vm5328_vm4, %v5257_v11  ;;  %v4408_v37 = vmax.f32 %v4280_v18, %v3535_v10  ;;  %v3224_v14 = vpop.f32.mrf.mxu3  ;;  %v10188_v18 = vld [vmem:[#allocation157_spill] sm:$0xff]  ;;  %v10189_v11 = vld [vmem:[#allocation159_spill] sm:$0xff] }
 0x809   : > { %v3864_v23 = vpop.f32.mrf.mxu1  ;;  %v10190_v10 = vmax.f32 %v10188_v18, %v10189_v11 }
 0x80a   : > { %v4536_v17 = vmax.f32 %v4408_v37, %v3864_v23 }
 0x80b   : > { %v4158_v37 = vmax.f32 %v10190_v10, %v2892_v48 }
 0x80c   : > { %5286 = vmax.xlane.f32.xlu1 %v4536_v17 }
 0x80d   : > { %v2897_v31 = vpop.f32.mrf.mxu2  ;;  %v4286_v55 = vmax.f32 %v4158_v37, %v3221_v25  ;;  %v10195_v25 = vld [vmem:[#allocation167_spill] sm:$0xff] }
 0x80f   : > { %v5259_v57 = vpop.xlane.xlu2 %5258  ;;  %v3538_v29 = vpop.f32.mrf.mxu0 }
 0x810   : > { %5422 = vst.msk [vmem:[%s7976_s9 + $0x2e8] sm:$0xff] %vm5328_vm4, %v5259_v57  ;;  %v4409_v1 = vmax.f32 %v4281_v56, %v3538_v29  ;;  %v3226_v43 = vpop.f32.mrf.mxu3  ;;  %v10192_v56 = vld [vmem:[#allocation163_spill] sm:$0xff] }
 0x811   : > { %v3867_v21 = vpop.f32.mrf.mxu1  ;;  %v10193_v57 = vmax.f32 %v10191_v38, %v10192_v56 }
 0x812   : > { %3577 = vmatmul.bf16.gmra.mxu0 %v9165_v2  ;;  %v4537_v13 = vmax.f32 %v4409_v1, %v3867_v21 }
 0x813   : > { %v4159_v29 = vmax.f32 %v10193_v57, %v2895_v12 }
 0x814   : > { %3906 = vmatmul.bf16.gmra.mxu1 %v9165_v2  ;;  %5288 = vmax.xlane.f32.xlu2 %v4537_v13 }
 0x815   : > { %v2900_v53 = vpop.f32.mrf.mxu2  ;;  %v4287_v46 = vmax.f32 %v4159_v29, %v3224_v14 }
 0x817   : > { %v5261_v15 = vpop.xlane.xlu0 %5260  ;;  %v3540_v35 = vpop.f32.mrf.mxu0 }
 0x818   : > { %5423 = vst.msk [vmem:[%s7976_s9 + $0x2f0] sm:$0xff] %vm5328_vm4, %v5261_v15  ;;  %v4410_v28 = vmax.f32 %v4282_v16, %v3540_v35  ;;  %v3229_v58 = vpop.f32.mrf.mxu3  ;;  %v10194_v16 = vld [vmem:[#allocation165_spill] sm:$0xff] }
 0x819   : > { %v3869_v7 = vpop.f32.mrf.mxu1  ;;  %v10196_v15 = vmax.f32 %v10194_v16, %v10195_v25 }
 0x81a   : > { %v4538_v36 = vmax.f32 %v4410_v28, %v3869_v7 }
 0x81b   : > { %v4160_v35 = vmax.f32 %v10196_v15, %v2897_v31  ;;  %v10201_v31 = vld [vmem:[#allocation175_spill] sm:$0xff] }
 0x81c   : > { %5290 = vmax.xlane.f32.xlu0 %v4538_v36 }
 0x81d   : > { %v2902_v1 = vpop.f32.mrf.mxu2  ;;  %v4288_v51 = vmax.f32 %v4160_v35, %v3226_v43 }
 0x81f   : > { %v5263_v2 = vpop.xlane.xlu1 %5262  ;;  %v3543_v60 = vpop.f32.mrf.mxu0 }
 0x820   : > { %5424 = vst.msk [vmem:[%s7976_s9 + $0x2f8] sm:$0xff] %vm5328_vm4, %v5263_v2  ;;  %v4411_v47 = vmax.f32 %v4283_v4, %v3543_v60  ;;  %v3231_v0 = vpop.f32.mrf.mxu3  ;;  %v10197_v4 = vld [vmem:[#allocation169_spill] sm:$0xff]  ;;  %v10198_v2 = vld [vmem:[#allocation171_spill] sm:$0xff] }
 0x821   : > { %v3872_v61 = vpop.f32.mrf.mxu1  ;;  %v10199_v60 = vmax.f32 %v10197_v4, %v10198_v2 }
 0x822   : > { %3582 = vmatmul.bf16.gmra.mxu0 %v9191_v20  ;;  %v4539_v6 = vmax.f32 %v4411_v47, %v3872_v61 }
 0x823   : > { %v4161_v14 = vmax.f32 %v10199_v60, %v2900_v53 }
 0x824   : > { %3911 = vmatmul.bf16.gmra.mxu1 %v9191_v20  ;;  %5292 = vmax.xlane.f32.xlu1 %v4539_v6 }
 0x825   : > { %v2905_v7 = vpop.f32.mrf.mxu2  ;;  %v4289_v61 = vmax.f32 %v4161_v14, %v3229_v58  ;;  %v10206_v58 = vld [vmem:[#allocation181_spill] sm:$0xff] }
 0x827   : > { %v5265_v34 = vpop.xlane.xlu2 %5264  ;;  %v3545_v26 = vpop.f32.mrf.mxu0 }
 0x828   : > { %5425 = vst.msk [vmem:[%s7976_s9 + $0x300] sm:$0xff] %vm5328_vm4, %v5265_v34  ;;  %v4412_v39 = vmax.f32 %v4284_v33, %v3545_v26  ;;  %v3234_v42 = vpop.f32.mrf.mxu3  ;;  %v10200_v33 = vld [vmem:[#allocation173_spill] sm:$0xff] }
 0x829   : > { %v3874_v62 = vpop.f32.mrf.mxu1  ;;  %v10202_v34 = vmax.f32 %v10200_v33, %v10201_v31 }
 0x82a   : > { %v4540_v9 = vmax.f32 %v4412_v39, %v3874_v62 }
 0x82b   : > { %v4162_v26 = vmax.f32 %v10202_v34, %v2902_v1 }
 0x82c   : > { %5294 = vmax.xlane.f32.xlu2 %v4540_v9 }
 0x82d   : > { %v2907_v49 = vpop.f32.mrf.mxu2  ;;  %v4290_v44 = vmax.f32 %v4162_v26, %v3231_v0  ;;  %v10210_v0 = vld [vmem:[#allocation187_spill] sm:$0xff] }
 0x82f   : > { %v5267_v20 = vpop.xlane.xlu0 %5266  ;;  %v3548_v3 = vpop.f32.mrf.mxu0 }
 0x830   : > { %5426 = vst.msk [vmem:[%s7976_s9 + $0x308] sm:$0xff] %vm5328_vm4, %v5267_v20  ;;  %v4413_v32 = vmax.f32 %v4285_v41, %v3548_v3  ;;  %v3236_v39 = vpop.f32.mrf.mxu3  ;;  %v10203_v41 = vld [vmem:[#allocation177_spill] sm:$0xff]  ;;  %v10204_v20 = vld [vmem:[#allocation179_spill] sm:$0xff] }
 0x831   : > { %v3877_v50 = vpop.f32.mrf.mxu1  ;;  %v10205_v3 = vmax.f32 %v10203_v41, %v10204_v20 }
 0x832   : > { %v4541_v23 = vmax.f32 %v4413_v32, %v3877_v50 }
 0x833   : > { %v4163_v53 = vmax.f32 %v10205_v3, %v2905_v7 }
 0x834   : > { %5296 = vmax.xlane.f32.xlu0 %v4541_v23 }
 0x835   : > { %v2910_v63 = vpop.f32.mrf.mxu2  ;;  %v4291_v18 = vmax.f32 %v4163_v53, %v3234_v42 }
 0x837   : > { %v5269_v52 = vpop.xlane.xlu1 %5268  ;;  %v3550_v5 = vpop.f32.mrf.mxu0 }
 0x838   : > { %5427 = vst.msk [vmem:[%s7976_s9 + $0x310] sm:$0xff] %vm5328_vm4, %v5269_v52  ;;  %v4414_v59 = vmax.f32 %v4286_v55, %v3550_v5  ;;  %v3239_v50 = vpop.f32.mrf.mxu3  ;;  %v10207_v55 = vld [vmem:[#allocation183_spill] sm:$0xff] }
 0x839   : > { %v3879_v17 = vpop.f32.mrf.mxu1  ;;  %v10208_v52 = vmax.f32 %v10206_v58, %v10207_v55 }
 0x83a   : > { %v4542_v21 = vmax.f32 %v4414_v59, %v3879_v17 }
 0x83b   : > { %v4164_v5 = vmax.f32 %v10208_v52, %v2907_v49  ;;  %v10216_v49 = vld [vmem:[#allocation195_spill] sm:$0xff] }
 0x83c   : > { %5298 = vmax.xlane.f32.xlu1 %v4542_v21 }
 0x83d   : > { %v2912_v59 = vpop.f32.mrf.mxu2  ;;  %v4292_v38 = vmax.f32 %v4164_v5, %v3236_v39 }
 0x83f   : > { %v5271_v54 = vpop.xlane.xlu2 %5270  ;;  %v3553_v19 = vpop.f32.mrf.mxu0 }
 0x840   : > { %5428 = vst.msk [vmem:[%s7976_s9 + $0x318] sm:$0xff] %vm5328_vm4, %v5271_v54  ;;  %v4415_v48 = vmax.f32 %v4287_v46, %v3553_v19  ;;  %v3241_v56 = vpop.f32.mrf.mxu3  ;;  %v10209_v46 = vld [vmem:[#allocation185_spill] sm:$0xff] }
 0x841   : > { %v3882_v13 = vpop.f32.mrf.mxu1  ;;  %v10211_v54 = vmax.f32 %v10209_v46, %v10210_v0 }
 0x842   : > { %v4543_v28 = vmax.f32 %v4415_v48, %v3882_v13 }
 0x843   : > { %v4165_v19 = vmax.f32 %v10211_v54, %v2910_v63 }
 0x844   : > { %5300 = vmax.xlane.f32.xlu2 %v4543_v28 }
 0x845   : > { %v2915_v13 = vpop.f32.mrf.mxu2  ;;  %v4293_v16 = vmax.f32 %v4165_v19, %v3239_v50  ;;  %v10221_v50 = vld [vmem:[#allocation201_spill] sm:$0xff] }
 0x847   : > { %v5273_v22 = vpop.xlane.xlu0 %5272  ;;  %v3555_v8 = vpop.f32.mrf.mxu0 }
 0x848   : > { %5429 = vst.msk [vmem:[%s7976_s9 + $0x320] sm:$0xff] %vm5328_vm4, %v5273_v22  ;;  %v4416_v36 = vmax.f32 %v4288_v51, %v3555_v8  ;;  %v3244_v35 = vpop.f32.mrf.mxu3  ;;  %v10212_v51 = vld [vmem:[#allocation189_spill] sm:$0xff]  ;;  %v10213_v22 = vld [vmem:[#allocation191_spill] sm:$0xff] }
 0x849   : > { %v3884_v12 = vpop.f32.mrf.mxu1  ;;  %v10214_v8 = vmax.f32 %v10212_v51, %v10213_v22 }
 0x84a   : > { %v4544_v47 = vmax.f32 %v4416_v36, %v3884_v12 }
 0x84b   : > { %v4166_v42 = vmax.f32 %v10214_v8, %v2912_v59 }
 0x84c   : > { %5302 = vmax.xlane.f32.xlu0 %v4544_v47 }
 0x84d   : > { %v4294_v12 = vmax.f32 %v4166_v42, %v3241_v56  ;;  %v2917_v4 = vpop.f32.mrf.mxu2  ;;  %v10225_v56 = vld [vmem:[#allocation207_spill] sm:$0xff] }
 0x84f   : > { %v5275_v40 = vpop.xlane.xlu1 %5274  ;;  %v3558_v27 = vpop.f32.mrf.mxu0 }
 0x850   : > { %5430 = vst.msk [vmem:[%s7976_s9 + $0x328] sm:$0xff] %vm5328_vm4, %v5275_v40  ;;  %v4417_v30 = vmax.f32 %v4289_v61, %v3558_v27  ;;  %v10215_v61 = vld [vmem:[#allocation193_spill] sm:$0xff] }
 0x851   : > { %v3887_v6 = vpop.f32.mrf.mxu1  ;;  %v10217_v40 = vmax.f32 %v10215_v61, %v10216_v49 }
 0x852   : > { %v4545_v62 = vmax.f32 %v4417_v30, %v3887_v6  ;;  %v3246_v30 = vpop.f32.mrf.mxu3 }
 0x853   : > { %v4167_v27 = vmax.f32 %v10217_v40, %v2915_v13 }
 0x854   : > { %5304 = vmax.xlane.f32.xlu1 %v4545_v62 }
 0x855   : > { %v4295_v33 = vmax.f32 %v4167_v27, %v3244_v35  ;;  %v2920_v26 = vpop.f32.mrf.mxu2 }
 0x857   : > { %v5277_v24 = vpop.xlane.xlu2 %5276  ;;  %v3560_v45 = vpop.f32.mrf.mxu0 }
 0x858   : > { %5431 = vst.msk [vmem:[%s7976_s9 + $0x330] sm:$0xff] %vm5328_vm4, %v5277_v24  ;;  %v4418_v43 = vmax.f32 %v4290_v44, %v3560_v45  ;;  %v10218_v44 = vld [vmem:[#allocation197_spill] sm:$0xff]  ;;  %v10219_v24 = vld [vmem:[#allocation199_spill] sm:$0xff] }
 0x859   : > { %v3889_v9 = vpop.f32.mrf.mxu1  ;;  %v10220_v45 = vmax.f32 %v10218_v44, %v10219_v24 }
 0x85a   : > { %v4546_v32 = vmax.f32 %v4418_v43, %v3889_v9  ;;  %v3249_v9 = vpop.f32.mrf.mxu3 }
 0x85b   : > { %v4168_v63 = vmax.f32 %v10220_v45, %v2917_v4  ;;  %v10231_v4 = vld [vmem:[#allocation215_spill] sm:$0xff] }
 0x85c   : > { %5306 = vmax.xlane.f32.xlu2 %v4546_v32 }
 0x85d   : > { %v4296_v41 = vmax.f32 %v4168_v63, %v3246_v30 }
 0x85f   : > { %v5279_v11 = vpop.xlane.xlu0 %5278  ;;  %v3563_v10 = vpop.f32.mrf.mxu0 }
 0x860   : > { %5432 = vst.msk [vmem:[%s7976_s9 + $0x338] sm:$0xff] %vm5328_vm4, %v5279_v11  ;;  %v4419_v37 = vmax.f32 %v4291_v18, %v3563_v10  ;;  %v10222_v18 = vld [vmem:[#allocation203_spill] sm:$0xff] }
 0x861   : > { %v3892_v23 = vpop.f32.mrf.mxu1  ;;  %v10223_v11 = vmax.f32 %v10221_v50, %v10222_v18 }
 0x862   : > { %v4547_v17 = vmax.f32 %v4419_v37, %v3892_v23  ;;  %v2922_v37 = vpop.f32.mrf.mxu2  ;;  %v3251_v55 = vpop.f32.mrf.mxu3 }
 0x863   : > { %v4169_v10 = vmax.f32 %v10223_v11, %v2920_v26 }
 0x864   : > { %5308 = vmax.xlane.f32.xlu0 %v4547_v17 }
 0x865   : > { %v4297_v58 = vmax.f32 %v4169_v10, %v3249_v9 }
 0x867   : > { %v5281_v57 = vpop.xlane.xlu1 %5280  ;;  %v3565_v29 = vpop.f32.mrf.mxu0 }
 0x868   : > { %5433 = vst.msk [vmem:[%s7976_s9 + $0x340] sm:$0xff] %vm5328_vm4, %v5281_v57  ;;  %v4420_v1 = vmax.f32 %v4292_v38, %v3565_v29  ;;  %v10224_v38 = vld [vmem:[#allocation205_spill] sm:$0xff] }
 0x869   : > { %v3894_v21 = vpop.f32.mrf.mxu1  ;;  %v10226_v57 = vmax.f32 %v10224_v38, %v10225_v56 }
 0x86a   : > { %v4548_v48 = vmax.f32 %v4420_v1, %v3894_v21  ;;  %v2925_v21 = vpop.f32.mrf.mxu2  ;;  %v3254_v13 = vpop.f32.mrf.mxu3 }
 0x86b   : > { %v4170_v29 = vmax.f32 %v10226_v57, %v2922_v37 }
 0x86c   : > { %5310 = vmax.xlane.f32.xlu1 %v4548_v48 }
 0x86d   : > { %v4298_v46 = vmax.f32 %v4170_v29, %v3251_v55 }
 0x86f   : > { %v5283_v25 = vpop.xlane.xlu2 %5282  ;;  %v3568_v15 = vpop.f32.mrf.mxu0 }
 0x870   : > { %5434 = vst.msk [vmem:[%s7976_s9 + $0x348] sm:$0xff] %vm5328_vm4, %v5283_v25  ;;  %v4421_v28 = vmax.f32 %v4293_v16, %v3568_v15  ;;  %v10227_v16 = vld [vmem:[#allocation209_spill] sm:$0xff]  ;;  %v10228_v25 = vld [vmem:[#allocation211_spill] sm:$0xff] }
 0x871   : > { %v3897_v7 = vpop.f32.mrf.mxu1  ;;  %v10229_v15 = vmax.f32 %v10227_v16, %v10228_v25 }
 0x872   : > { %v4549_v36 = vmax.f32 %v4421_v28, %v3897_v7  ;;  %v2927_v51 = vpop.f32.mrf.mxu2 }
 0x873   : > { %v4171_v35 = vmax.f32 %v10229_v15, %v2925_v21 }
 0x874   : > { %5312 = vmax.xlane.f32.xlu2 %v4549_v36 }
 0x875   : > { %v4299_v7 = vmax.f32 %v4171_v35, %v3254_v13 }
 0x877   : > { %v5285_v2 = vpop.xlane.xlu0 %5284  ;;  %v3570_v60 = vpop.f32.mrf.mxu0 }
 0x878   : > { %5435 = vst.msk [vmem:[%s7976_s9 + $0x350] sm:$0xff] %vm5328_vm4, %v5285_v2  ;;  %v4422_v14 = vmax.f32 %v4294_v12, %v3570_v60  ;;  %v10230_v12 = vld [vmem:[#allocation213_spill] sm:$0xff] }
 0x879   : > { %v3899_v47 = vpop.f32.mrf.mxu1  ;;  %v10232_v2 = vmax.f32 %v10230_v12, %v10231_v4 }
 0x87a   : > { %v4550_v6 = vmax.f32 %v4422_v14, %v3899_v47  ;;  %v3256_v47 = vpop.f32.mrf.mxu3 }
 0x87b   : > { %v4172_v60 = vmax.f32 %v10232_v2, %v2927_v51 }
 0x87c   : > { %5314 = vmax.xlane.f32.xlu0 %v4550_v6 }
 0x87d   : > { %v4300_v61 = vmax.f32 %v4172_v60, %v3256_v47 }
 0x87f   : > { %v5287_v31 = vpop.xlane.xlu1 %5286  ;;  %v3573_v34 = vpop.f32.mrf.mxu0 }
 0x880   : > { %5436 = vst.msk [vmem:[%s7976_s9 + $0x358] sm:$0xff] %vm5328_vm4, %v5287_v31  ;;  %v4423_v39 = vmax.f32 %v4295_v33, %v3573_v34 }
 0x881   : > { %v3902_v62 = vpop.f32.mrf.mxu1 }
 0x882   : > { %v4551_v43 = vmax.f32 %v4423_v39, %v3902_v62 }
 0x884   : > { %5316 = vmax.xlane.f32.xlu1 %v4551_v43 }
 0x887   : > { %v5289_v20 = vpop.xlane.xlu2 %5288  ;;  %v3575_v3 = vpop.f32.mrf.mxu0 }
 0x888   : > { %5437 = vst.msk [vmem:[%s7976_s9 + $0x360] sm:$0xff] %vm5328_vm4, %v5289_v20  ;;  %v4424_v53 = vmax.f32 %v4296_v41, %v3575_v3 }
 0x889   : > { %v3904_v32 = vpop.f32.mrf.mxu1 }
 0x88a   : > { %v4552_v23 = vmax.f32 %v4424_v53, %v3904_v32 }
 0x88c   : > { %5318 = vmax.xlane.f32.xlu2 %v4552_v23 }
 0x88f   : > { %v5291_v52 = vpop.xlane.xlu0 %5290  ;;  %v3578_v5 = vpop.f32.mrf.mxu0 }
 0x890   : > { %5438 = vst.msk [vmem:[%s7976_s9 + $0x368] sm:$0xff] %vm5328_vm4, %v5291_v52  ;;  %v4425_v59 = vmax.f32 %v4297_v58, %v3578_v5 }
 0x891   : > { %v3907_v17 = vpop.f32.mrf.mxu1 }
 0x892   : > { %v4553_v1 = vmax.f32 %v4425_v59, %v3907_v17 }
 0x894   : > { %5320 = vmax.xlane.f32.xlu0 %v4553_v1 }
 0x897   : > { %v5293_v0 = vpop.xlane.xlu1 %5292  ;;  %v3580_v54 = vpop.f32.mrf.mxu0 }
 0x898   : > { %5439 = vst.msk [vmem:[%s7976_s9 + $0x370] sm:$0xff] %vm5328_vm4, %v5293_v0  ;;  %v4426_v19 = vmax.f32 %v4298_v46, %v3580_v54 }
 0x899   : > { %v3909_v48 = vpop.f32.mrf.mxu1 }
 0x89a   : > { %v4554_v28 = vmax.f32 %v4426_v19, %v3909_v48 }
 0x89c   : > { %5322 = vmax.xlane.f32.xlu1 %v4554_v28 }
 0x89f   : > { %v5295_v22 = vpop.xlane.xlu2 %5294  ;;  %v3583_v8 = vpop.f32.mrf.mxu0 }
 0x8a0   : > { %5440 = vst.msk [vmem:[%s7976_s9 + $0x378] sm:$0xff] %vm5328_vm4, %v5295_v22  ;;  %v4427_v42 = vmax.f32 %v4299_v7, %v3583_v8 }
 0x8a1   : > { %v3912_v36 = vpop.f32.mrf.mxu1 }
 0x8a2   : > { %v4555_v14 = vmax.f32 %v4427_v42, %v3912_v36 }
 0x8a4   : > { %5324 = vmax.xlane.f32.xlu2 %v4555_v14 }
 0x8a7   : > { %v5297_v49 = vpop.xlane.xlu0 %5296  ;;  %v3585_v40 = vpop.f32.mrf.mxu0 }
 0x8a8   : > { %5441 = vst.msk [vmem:[%s7976_s9 + $0x380] sm:$0xff] %vm5328_vm4, %v5297_v49  ;;  %v4428_v27 = vmax.f32 %v4300_v61, %v3585_v40 }
 0x8a9   : > { %v3914_v30 = vpop.f32.mrf.mxu1 }
 0x8aa   : > { %v4556_v6 = vmax.f32 %v4428_v27, %v3914_v30 }
 0x8ac   : > { %5326 = vmax.xlane.f32.xlu0 %v4556_v6 }
 0x8af   : > { %v5299_v33 = vpop.xlane.xlu1 %5298 }
 0x8b0   : > { %5442 = vst.msk [vmem:[%s7976_s9 + $0x388] sm:$0xff] %vm5328_vm4, %v5299_v33 }
 0x8b7   : > { %v5301_v31 = vpop.xlane.xlu2 %5300 }
 0x8b8   : > { %5443 = vst.msk [vmem:[%s7976_s9 + $0x390] sm:$0xff] %vm5328_vm4, %v5301_v31 }
 0x8bf   : > { %v5303_v34 = vpop.xlane.xlu0 %5302 }
 0x8c0   : > { %5444 = vst.msk [vmem:[%s7976_s9 + $0x398] sm:$0xff] %vm5328_vm4, %v5303_v34 }
 0x8c7   : > { %v5305_v26 = vpop.xlane.xlu1 %5304 }
 0x8c8   : > { %5445 = vst.msk [vmem:[%s7976_s9 + $0x3a0] sm:$0xff] %vm5328_vm4, %v5305_v26 }
 0x8cf   : > { %v5307_v39 = vpop.xlane.xlu2 %5306 }
 0x8d0   : > { %5446 = vst.msk [vmem:[%s7976_s9 + $0x3a8] sm:$0xff] %vm5328_vm4, %v5307_v39 }
 0x8d7   : > { %v5309_v62 = vpop.xlane.xlu0 %5308 }
 0x8d8   : > { %5447 = vst.msk [vmem:[%s7976_s9 + $0x3b0] sm:$0xff] %vm5328_vm4, %v5309_v62 }
 0x8df   : > { %v5311_v44 = vpop.xlane.xlu1 %5310 }
 0x8e0   : > { %5448 = vst.msk [vmem:[%s7976_s9 + $0x3b8] sm:$0xff] %vm5328_vm4, %v5311_v44 }
 0x8e7   : > { %v5313_v24 = vpop.xlane.xlu2 %5312 }
 0x8e8   : > { %5449 = vst.msk [vmem:[%s7976_s9 + $0x3c0] sm:$0xff] %vm5328_vm4, %v5313_v24 }
 0x8ef   : > { %v5315_v45 = vpop.xlane.xlu0 %5314 }
 0x8f0   : > { %5450 = vst.msk [vmem:[%s7976_s9 + $0x3c8] sm:$0xff] %vm5328_vm4, %v5315_v45 }
 0x8f7   : > { %v5317_v63 = vpop.xlane.xlu1 %5316 }
 0x8f8   : > { %5451 = vst.msk [vmem:[%s7976_s9 + $0x3d0] sm:$0xff] %vm5328_vm4, %v5317_v63 }
 0x8ff   : > { %v5319_v43 = vpop.xlane.xlu2 %5318 }
 0x900   : > { %5452 = vst.msk [vmem:[%s7976_s9 + $0x3d8] sm:$0xff] %vm5328_vm4, %v5319_v43 }
 0x907   : > { %v5321_v9 = vpop.xlane.xlu0 %5320 }
 0x908   : > { %5453 = vst.msk [vmem:[%s7976_s9 + $0x3e0] sm:$0xff] %vm5328_vm4, %v5321_v9 }
 0x90f   : > { %v5323_v41 = vpop.xlane.xlu1 %5322 }
 0x910   : > { %5454 = vst.msk [vmem:[%s7976_s9 + $0x3e8] sm:$0xff] %vm5328_vm4, %v5323_v41 }
 0x917   : > { %v5325_v20 = vpop.xlane.xlu2 %5324 }
 0x918   : > { %5455 = vst.msk [vmem:[%s7976_s9 + $0x3f0] sm:$0xff] %vm5328_vm4, %v5325_v20 }
 0x91f   : > { %v5327_v3 = vpop.xlane.xlu0 %5326 }
 0x920   : > { %5456 = vst.msk [vmem:[%s7976_s9 + $0x3f8] sm:$0xff] %vm5328_vm4, %v5327_v3 }
 0x921 PF: > { %s17_s23 = sadd.s32 1, %s6183_s23   ;;  %s10233_s21 = smov %s6179_s22 }
 0x922   : > { %p14_p8 = scmp.ge.s32.totalorder %s17_s23, 4   ;;  %s10234_s22 = smov %s10236_s25 }
 0x924   :  { %16 = sbr.rel (!%p14_p8) target bundleno = 2 (0x2), region = 89 }
 0x929   :  { %5478 = vsyncpa [#allocation4], 1 }
 0x92a   :  { %5480 = vsyncpa [#allocation4 + $0x1], 1 }

</bundles_post_ra>
